<compile_context>
chip_gen: v7x
topology: tpu7x:2x2x1
jax: 0.10.0
libtpu: 0.0.40
codegen_flags: <defaults>
</compile_context>

<pallas_src>
import math
import jax
import jax.numpy as jnp
from jax import lax
from jax.experimental import pallas as pl
from jax.experimental.pallas import tpu as pltpu

# ---- static config (mirrors Attention(depth=4, i=0, dim=64, image_size=16,
# ---- patch_size=4, heads=8, qkv_bias=False)) --------------------------------
DEPTH = 4
LAYER_INDEX = 0
HEADS = 8
DIM = 64
HEAD_DIM = DIM // HEADS                              # 8
IMAGE_SIZE = 16
PATCH_SIZE = 4
T = (IMAGE_SIZE // PATCH_SIZE) ** 2                  # 16  (self.length)
SCALE = DIM ** (-0.5)                                # reference scales by full dim
NEG_SLOPE = 0.01                                     # nn.LeakyReLU() default
APPLY_MASK = LAYER_INDEX < DEPTH // 4                # adjacency masking branch
MASK_NEG = -1e30                                     # finite stand-in for -inf


def _gelu_exact(x):
    # F.gelu default (erf-based)
    return 0.5 * x * (1.0 + lax.erf(x * (1.0 / math.sqrt(2.0))))


def _leaky_relu(x):
    return jnp.where(x > 0, x, NEG_SLOPE * x)


def attention_kernel(x_ref,      # (BB, H, T, D)
                     adj_ref,    # (BB, H, T, T)
                     kron_ref,   # (H*T, H*T)  == kron(Lambda, I_T)
                     wqkvb_ref,  # (D+1, 3D)   rows 0..D-1 = [Wq|Wk|Wv], row D = [bq|bk|bv]
                     wp_ref,     # (DIM, DIM)  proj_v weight, (in, out) layout
                     out_ref,    # (BB, T, DIM)
                     rep_ref):   # (BB, H, T, T)
    bb = x_ref.shape[0]
    g = bb * HEADS

    # ---- shared q/k/v input projections: one (BB*H*T, D) @ (D, 3D) matmul ----
    # TODO(synk): GCN module source not provided in the reference file; it is
    # modeled as a single per-head graph-convolution layer  adj @ (x @ W + b).
    w_qkv = wqkvb_ref[:HEAD_DIM, :]                      # (D, 3D)
    b_qkv = wqkvb_ref[HEAD_DIM:HEAD_DIM + 1, :]          # (1, 3D)
    x_flat = x_ref[...].reshape(g * T, HEAD_DIM)
    qkv = jnp.dot(x_flat, w_qkv, preferred_element_type=jnp.float32) + b_qkv

    xqk = qkv[:, :2 * HEAD_DIM].reshape(g, T, 2 * HEAD_DIM)   # [xq | xk]
    xv = qkv[:, 2 * HEAD_DIM:].reshape(g, T, HEAD_DIM)

    # ---- graph conv for q and k (fused): adj @ [xq | xk], batched over (b,h) -
    adj_g = adj_ref[...].reshape(g, T, T)
    qk = jnp.einsum('gij,gjd->gid', adj_g, xqk, preferred_element_type=jnp.float32)
    q = qk[..., :HEAD_DIM]
    k = qk[..., HEAD_DIM:]

    # ---- attention scores: (q k^T) * scale -> LeakyReLU ----------------------
    s = jnp.einsum('gid,gjd->gij', q, k, preferred_element_type=jnp.float32) * SCALE
    s = _leaky_relu(s)                                   # (g, T, T)

    # ---- Lambda head mixing as an MXU matmul ---------------------------------
    # mixed[b, l, i, j] = sum_h Lambda[l, h] * s[b, h, i, j]
    #                   = (kron(Lambda, I_T) @ s[b].reshape(H*T, T))[l*T + i, j]
    s_rows = s.reshape(bb, HEADS * T, T)                 # head-stacked rows
    kron = kron_ref[...]
    mixed = jnp.stack(
        [jnp.dot(kron, s_rows[b], preferred_element_type=jnp.float32)
         for b in range(bb)], axis=0).reshape(g, T, T)

    # ---- optional adjacency mask + softmax (probabilities stay local) --------
    if APPLY_MASK:                                       # layer_index < depth // 4
        mixed = jnp.where(adj_g > 0, mixed, MASK_NEG)
    m = jnp.max(mixed, axis=-1, keepdims=True)
    e = jnp.exp(mixed - m)
    p = e * pl.reciprocal(jnp.sum(e, axis=-1, keepdims=True), approx=True)

    rep_ref[...] = p.reshape(bb, HEADS, T, T)            # rep_adj output

    # ---- v branch: GCN with rep_adj, GELU, proj_v (no bias) ------------------
    v = jnp.einsum('gij,gjd->gid', p, xv, preferred_element_type=jnp.float32)
    v = _gelu_exact(v)                                   # (g, T, D)

    # rearrange('b h t d -> b t (h d)') + Linear is fused as a per-head sum of
    # v_h @ Wp[h*D:(h+1)*D, :], batched over all BB*T rows of the block.
    v4 = v.reshape(bb, HEADS, T, HEAD_DIM)
    acc = jnp.zeros((bb * T, DIM), jnp.float32)
    for h in range(HEADS):
        vh = v4[:, h, :, :].reshape(bb * T, HEAD_DIM)
        acc = acc + jnp.dot(vh, wp_ref[h * HEAD_DIM:(h + 1) * HEAD_DIM, :],
                            preferred_element_type=jnp.float32)
    out_ref[...] = acc.reshape(bb, T, DIM)


def _pick_block_b(batch):
    # >=2 grid steps when possible (keeps both v7x TensorCores busy) while
    # amortizing per-step overhead over several batch elements.
    for bb in (8, 4, 2):
        if batch % bb == 0 and batch // bb >= 2:
            return bb
    return 1


def attention_forward(x, adj, params, *, block_b=None):
    B, t_in, dim_in = x.shape
    assert t_in == T and dim_in == DIM
    if block_b is None:
        block_b = _pick_block_b(B)
    assert B % block_b == 0
    grid = (B // block_b,)

    # glue: 'b t (h d) -> b h t d' head split (plain JAX, outside the kernel)
    x4 = x.reshape(B, T, HEADS, HEAD_DIM).transpose(0, 2, 1, 3)

    # parameter packing (tiny, done once):
    #   kron(Lambda, I_T) turns head mixing into a single 128x128 MXU matmul,
    #   [Wq|Wk|Wv ; bq|bk|bv] packs six tiny arrays into one VMEM slab.
    kron = jnp.kron(params["Lambda"], jnp.eye(T, dtype=jnp.float32))      # (128, 128)
    w_qkv = jnp.concatenate([params["Wq"], params["Wk"], params["Wv"]], axis=1)
    b_qkv = jnp.concatenate([params["bq"], params["bk"], params["bv"]], axis=1)
    wqkvb = jnp.concatenate([w_qkv, b_qkv], axis=0)                       # (D+1, 3D)

    in_specs = [
        pl.BlockSpec((block_b, HEADS, T, HEAD_DIM), lambda i: (i, 0, 0, 0)),  # x
        pl.BlockSpec((block_b, HEADS, T, T), lambda i: (i, 0, 0, 0)),         # adj
        pl.BlockSpec((HEADS * T, HEADS * T), lambda i: (0, 0)),               # kron(Lambda, I)
        pl.BlockSpec((HEAD_DIM + 1, 3 * HEAD_DIM), lambda i: (0, 0)),         # packed W/b
        pl.BlockSpec((DIM, DIM), lambda i: (0, 0)),                           # Wp
    ]
    out_specs = (
        pl.BlockSpec((block_b, T, DIM), lambda i: (i, 0, 0)),                 # out
        pl.BlockSpec((block_b, HEADS, T, T), lambda i: (i, 0, 0, 0)),         # rep_adj
    )
    out_shape = (
        jax.ShapeDtypeStruct((B, T, DIM), jnp.float32),
        jax.ShapeDtypeStruct((B, HEADS, T, T), jnp.float32),
    )

    return pl.pallas_call(
        attention_kernel,
        out_shape=out_shape,
        grid=grid,
        in_specs=in_specs,
        out_specs=out_specs,
        compiler_params=pltpu.CompilerParams(dimension_semantics=("parallel",)),
    )(x4, adj, kron, wqkvb, params["Wp"])


if __name__ == "__main__":
    key = jax.random.PRNGKey(0)
    ks = jax.random.split(key, 10)
    B = 8

    x = jax.random.normal(ks[0], (B, T, DIM), jnp.float32)
    # adjacency: random 0/1 with self loops (keeps the masked softmax well defined)
    adj = jnp.maximum(
        jax.random.bernoulli(ks[1], 0.5, (B, HEADS, T, T)).astype(jnp.float32),
        jnp.eye(T, dtype=jnp.float32))

    params = {
        "Lambda": jax.random.normal(ks[2], (HEADS, HEADS), jnp.float32),          # self.randomatrix
        "Wq": 0.2 * jax.random.normal(ks[3], (HEAD_DIM, HEAD_DIM), jnp.float32),
        "bq": 0.1 * jax.random.normal(ks[4], (1, HEAD_DIM), jnp.float32),
        "Wk": 0.2 * jax.random.normal(ks[5], (HEAD_DIM, HEAD_DIM), jnp.float32),
        "bk": 0.1 * jax.random.normal(ks[6], (1, HEAD_DIM), jnp.float32),
        "Wv": 0.2 * jax.random.normal(ks[7], (HEAD_DIM, HEAD_DIM), jnp.float32),
        "bv": 0.1 * jax.random.normal(ks[8], (1, HEAD_DIM), jnp.float32),
        "Wp": 0.2 * jax.random.normal(ks[9], (DIM, DIM), jnp.float32),            # proj_v (bias=False), (in,out)
    }

    out, rep_adj = attention_forward(x, adj, params)
    jax.block_until_ready((out, rep_adj))

    assert out.shape == (B, T, DIM) and rep_adj.shape == (B, HEADS, T, T)
    assert bool(jnp.all(jnp.isfinite(out))) and bool(jnp.all(jnp.isfinite(rep_adj)))
    print("KERNEL_OK")
</pallas_src>

<mosaic_0001>
module attributes {stable_mosaic.version = 11 : i64} {
  func.func @attention_kernel(%arg0: i32, %arg1: memref<4x8x16x8xf32, #tpu.memory_space<vmem>>, %arg2: memref<4x8x16x16xf32, #tpu.memory_space<vmem>>, %arg3: memref<128x128xf32, #tpu.memory_space<vmem>>, %arg4: memref<9x24xf32, #tpu.memory_space<vmem>>, %arg5: memref<64x64xf32, #tpu.memory_space<vmem>>, %arg6: memref<4x16x64xf32, #tpu.memory_space<vmem>>, %arg7: memref<4x8x16x16xf32, #tpu.memory_space<vmem>>) attributes {dimension_semantics = [#tpu.dimension_semantics<parallel>], iteration_bounds = array<i64: 2>, scalar_prefetch = 0 : i64, scratch_operands = 0 : i64, tpu.core_type = #tpu.core_type<tc>, window_params = [{transform_indices = @transform_0, window_bounds = array<i64: 4, 8, 16, 8>}, {transform_indices = @transform_1, window_bounds = array<i64: 4, 8, 16, 16>}, {pipeline_mode = #tpu.pipeline_mode<synchronous>, transform_indices = @transform_2, window_bounds = array<i64: 128, 128>}, {pipeline_mode = #tpu.pipeline_mode<synchronous>, transform_indices = @transform_3, window_bounds = array<i64: 9, 24>}, {pipeline_mode = #tpu.pipeline_mode<synchronous>, transform_indices = @transform_4, window_bounds = array<i64: 64, 64>}, {transform_indices = @transform_5, window_bounds = array<i64: 4, 16, 64>}, {transform_indices = @transform_6, window_bounds = array<i64: 4, 8, 16, 16>}]} {
    %c0 = arith.constant 0 : index
    %c0_0 = arith.constant 0 : index
    %0 = vector.load %arg4[%c0, %c0_0] : memref<9x24xf32, #tpu.memory_space<vmem>>, vector<8x24xf32>
    %c8 = arith.constant 8 : index
    %c0_1 = arith.constant 0 : index
    %1 = vector.load %arg4[%c8, %c0_1] : memref<9x24xf32, #tpu.memory_space<vmem>>, vector<1x24xf32>
    %c0_2 = arith.constant 0 : index
    %c0_3 = arith.constant 0 : index
    %c0_4 = arith.constant 0 : index
    %c0_5 = arith.constant 0 : index
    %2 = vector.load %arg1[%c0_2, %c0_3, %c0_4, %c0_5] : memref<4x8x16x8xf32, #tpu.memory_space<vmem>>, vector<4x8x16x8xf32>
    %3 = vector.shape_cast %2 : vector<4x8x16x8xf32> to vector<512x8xf32>
    %cst = arith.constant dense<0.000000e+00> : vector<512x24xf32>
    %4 = tpu.matmul %3, %0, %cst {dimension_numbers = #tpu.dot_dimension_numbers<[1], [0], [0], [1], [0, 0, 1, 1], [], []>} : vector<512x8xf32>, vector<8x24xf32>, vector<512x24xf32> -> vector<512x24xf32>
    %5 = vector.broadcast %1 : vector<1x24xf32> to vector<512x24xf32>
    %6 = arith.addf %4, %5 : vector<512x24xf32>
    %7 = vector.extract_strided_slice %6 {offsets = [0, 0], sizes = [512, 16], strides = [1, 1]} : vector<512x24xf32> to vector<512x16xf32>
    %8 = vector.shape_cast %7 : vector<512x16xf32> to vector<32x16x16xf32>
    %9 = vector.extract_strided_slice %6 {offsets = [0, 16], sizes = [512, 8], strides = [1, 1]} : vector<512x24xf32> to vector<512x8xf32>
    %10 = vector.shape_cast %9 : vector<512x8xf32> to vector<32x16x8xf32>
    %c0_6 = arith.constant 0 : index
    %c0_7 = arith.constant 0 : index
    %c0_8 = arith.constant 0 : index
    %c0_9 = arith.constant 0 : index
    %11 = vector.load %arg2[%c0_6, %c0_7, %c0_8, %c0_9] : memref<4x8x16x16xf32, #tpu.memory_space<vmem>>, vector<4x8x16x16xf32>
    %12 = vector.shape_cast %11 : vector<4x8x16x16xf32> to vector<32x16x16xf32>
    "tpu.trace_start"() <{level = 10 : i32, message = "gij,gjd->gid"}> : () -> ()
    %cst_10 = arith.constant dense<0.000000e+00> : vector<32x16x16xf32>
    %13 = tpu.matmul %12, %8, %cst_10 {dimension_numbers = #tpu.dot_dimension_numbers<[2], [1], [1], [2], [0, 0, 0, 1, 1, 2], [0], [0]>} : vector<32x16x16xf32>, vector<32x16x16xf32>, vector<32x16x16xf32> -> vector<32x16x16xf32>
    "tpu.trace_stop"() : () -> ()
    %14 = vector.extract_strided_slice %13 {offsets = [0, 0, 0], sizes = [32, 16, 8], strides = [1, 1, 1]} : vector<32x16x16xf32> to vector<32x16x8xf32>
    %15 = vector.extract_strided_slice %13 {offsets = [0, 0, 8], sizes = [32, 16, 8], strides = [1, 1, 1]} : vector<32x16x16xf32> to vector<32x16x8xf32>
    "tpu.trace_start"() <{level = 10 : i32, message = "gid,gjd->gij"}> : () -> ()
    %cst_11 = arith.constant dense<0.000000e+00> : vector<32x16x16xf32>
    %16 = tpu.matmul %14, %15, %cst_11 {dimension_numbers = #tpu.dot_dimension_numbers<[2], [2], [1], [1], [0, 0, 0, 1, 1, 1], [0], [0]>} : vector<32x16x8xf32>, vector<32x16x8xf32>, vector<32x16x16xf32> -> vector<32x16x16xf32>
    "tpu.trace_stop"() : () -> ()
    %cst_12 = arith.constant 1.250000e-01 : f32
    %17 = vector.broadcast %cst_12 : f32 to vector<32x16x16xf32>
    %18 = arith.mulf %16, %17 : vector<32x16x16xf32>
    %cst_13 = arith.constant 0.000000e+00 : f32
    %19 = vector.broadcast %cst_13 : f32 to vector<32x16x16xf32>
    %20 = arith.cmpf ogt, %18, %19 : vector<32x16x16xf32>
    %cst_14 = arith.constant 0.00999999977 : f32
    %21 = vector.broadcast %cst_14 : f32 to vector<32x16x16xf32>
    %22 = arith.mulf %21, %18 : vector<32x16x16xf32>
    %23 = arith.select %20, %18, %22 : vector<32x16x16xi1>, vector<32x16x16xf32>
    %24 = vector.shape_cast %23 : vector<32x16x16xf32> to vector<4x128x16xf32>
    %c0_15 = arith.constant 0 : index
    %c0_16 = arith.constant 0 : index
    %25 = vector.load %arg3[%c0_15, %c0_16] : memref<128x128xf32, #tpu.memory_space<vmem>>, vector<128x128xf32>
    %26 = vector.extract_strided_slice %24 {offsets = [0, 0, 0], sizes = [1, 128, 16], strides = [1, 1, 1]} : vector<4x128x16xf32> to vector<1x128x16xf32>
    %27 = vector.shape_cast %26 : vector<1x128x16xf32> to vector<128x16xf32>
    %cst_17 = arith.constant dense<0.000000e+00> : vector<128x16xf32>
    %28 = tpu.matmul %25, %27, %cst_17 {dimension_numbers = #tpu.dot_dimension_numbers<[1], [0], [0], [1], [0, 0, 1, 1], [], []>} : vector<128x128xf32>, vector<128x16xf32>, vector<128x16xf32> -> vector<128x16xf32>
    %29 = vector.extract_strided_slice %24 {offsets = [1, 0, 0], sizes = [1, 128, 16], strides = [1, 1, 1]} : vector<4x128x16xf32> to vector<1x128x16xf32>
    %30 = vector.shape_cast %29 : vector<1x128x16xf32> to vector<128x16xf32>
    %cst_18 = arith.constant dense<0.000000e+00> : vector<128x16xf32>
    %31 = tpu.matmul %25, %30, %cst_18 {dimension_numbers = #tpu.dot_dimension_numbers<[1], [0], [0], [1], [0, 0, 1, 1], [], []>} : vector<128x128xf32>, vector<128x16xf32>, vector<128x16xf32> -> vector<128x16xf32>
    %32 = vector.extract_strided_slice %24 {offsets = [2, 0, 0], sizes = [1, 128, 16], strides = [1, 1, 1]} : vector<4x128x16xf32> to vector<1x128x16xf32>
    %33 = vector.shape_cast %32 : vector<1x128x16xf32> to vector<128x16xf32>
    %cst_19 = arith.constant dense<0.000000e+00> : vector<128x16xf32>
    %34 = tpu.matmul %25, %33, %cst_19 {dimension_numbers = #tpu.dot_dimension_numbers<[1], [0], [0], [1], [0, 0, 1, 1], [], []>} : vector<128x128xf32>, vector<128x16xf32>, vector<128x16xf32> -> vector<128x16xf32>
    %35 = vector.extract_strided_slice %24 {offsets = [3, 0, 0], sizes = [1, 128, 16], strides = [1, 1, 1]} : vector<4x128x16xf32> to vector<1x128x16xf32>
    %36 = vector.shape_cast %35 : vector<1x128x16xf32> to vector<128x16xf32>
    %cst_20 = arith.constant dense<0.000000e+00> : vector<128x16xf32>
    %37 = tpu.matmul %25, %36, %cst_20 {dimension_numbers = #tpu.dot_dimension_numbers<[1], [0], [0], [1], [0, 0, 1, 1], [], []>} : vector<128x128xf32>, vector<128x16xf32>, vector<128x16xf32> -> vector<128x16xf32>
    %38 = vector.shape_cast %28 : vector<128x16xf32> to vector<1x128x16xf32>
    %39 = vector.shape_cast %31 : vector<128x16xf32> to vector<1x128x16xf32>
    %40 = vector.shape_cast %34 : vector<128x16xf32> to vector<1x128x16xf32>
    %41 = vector.shape_cast %37 : vector<128x16xf32> to vector<1x128x16xf32>
    %42 = tpu.concatenate %38, %39, %40, %41 in 0 : vector<1x128x16xf32>, vector<1x128x16xf32>, vector<1x128x16xf32>, vector<1x128x16xf32> -> vector<4x128x16xf32>
    %43 = vector.shape_cast %42 : vector<4x128x16xf32> to vector<32x16x16xf32>
    %cst_21 = arith.constant 0.000000e+00 : f32
    %44 = vector.broadcast %cst_21 : f32 to vector<32x16x16xf32>
    %45 = arith.cmpf ogt, %12, %44 : vector<32x16x16xf32>
    %cst_22 = arith.constant -1.000000e+30 : f32
    %46 = vector.broadcast %cst_22 : f32 to vector<32x16x16xf32>
    %47 = arith.select %45, %43, %46 : vector<32x16x16xi1>, vector<32x16x16xf32>
    %cst_23 = arith.constant dense<0xFF800000> : vector<32x16xf32>
    %48 = vector.multi_reduction <maximumf>, %47, %cst_23 [2] : vector<32x16x16xf32> to vector<32x16xf32>
    %49 = vector.shape_cast %48 : vector<32x16xf32> to vector<32x16x1xf32>
    %50 = vector.broadcast %49 : vector<32x16x1xf32> to vector<32x16x16xf32>
    %51 = arith.subf %47, %50 : vector<32x16x16xf32>
    %52 = math.exp %51 : vector<32x16x16xf32>
    %cst_24 = arith.constant dense<0.000000e+00> : vector<32x16xf32>
    %53 = vector.multi_reduction <add>, %52, %cst_24 [2] : vector<32x16x16xf32> to vector<32x16xf32>
    %54 = vector.shape_cast %53 : vector<32x16xf32> to vector<32x16x1xf32>
    %55 = tpu.reciprocal %54 {approx = true} : vector<32x16x1xf32> -> vector<32x16x1xf32>
    %56 = vector.broadcast %55 : vector<32x16x1xf32> to vector<32x16x16xf32>
    %57 = arith.mulf %52, %56 : vector<32x16x16xf32>
    %58 = vector.shape_cast %57 : vector<32x16x16xf32> to vector<4x8x16x16xf32>
    %c0_25 = arith.constant 0 : index
    %c0_26 = arith.constant 0 : index
    %c0_27 = arith.constant 0 : index
    %c0_28 = arith.constant 0 : index
    %59 = vector.load %arg7[%c0_25, %c0_26, %c0_27, %c0_28] : memref<4x8x16x16xf32, #tpu.memory_space<vmem>>, vector<4x8x16x16xf32>
    tpu.vector_store %arg7[%c0_25, %c0_26, %c0_27, %c0_28], %58 {strides = array<i32>} : memref<4x8x16x16xf32, #tpu.memory_space<vmem>>, vector<4x8x16x16xf32>,
    "tpu.trace_start"() <{level = 10 : i32, message = "gij,gjd->gid"}> : () -> ()
    %cst_29 = arith.constant dense<0.000000e+00> : vector<32x16x8xf32>
    %60 = tpu.matmul %57, %10, %cst_29 {dimension_numbers = #tpu.dot_dimension_numbers<[2], [1], [1], [2], [0, 0, 0, 1, 1, 2], [0], [0]>} : vector<32x16x16xf32>, vector<32x16x8xf32>, vector<32x16x8xf32> -> vector<32x16x8xf32>
    "tpu.trace_stop"() : () -> ()
    %cst_30 = arith.constant 5.000000e-01 : f32
    %61 = vector.broadcast %cst_30 : f32 to vector<32x16x8xf32>
    %62 = arith.mulf %61, %60 : vector<32x16x8xf32>
    %cst_31 = arith.constant 0.707106769 : f32
    %63 = vector.broadcast %cst_31 : f32 to vector<32x16x8xf32>
    %64 = arith.mulf %60, %63 : vector<32x16x8xf32>
    %65 = math.erf %64 : vector<32x16x8xf32>
    %cst_32 = arith.constant 1.000000e+00 : f32
    %66 = vector.broadcast %cst_32 : f32 to vector<32x16x8xf32>
    %67 = arith.addf %66, %65 : vector<32x16x8xf32>
    %68 = arith.mulf %62, %67 : vector<32x16x8xf32>
    %69 = vector.shape_cast %68 : vector<32x16x8xf32> to vector<4x8x16x8xf32>
    %cst_33 = arith.constant 0.000000e+00 : f32
    %70 = vector.broadcast %cst_33 : f32 to vector<64x64xf32>
    %71 = vector.extract_strided_slice %69 {offsets = [0, 0, 0, 0], sizes = [4, 1, 16, 8], strides = [1, 1, 1, 1]} : vector<4x8x16x8xf32> to vector<4x1x16x8xf32>
    %72 = vector.shape_cast %71 : vector<4x1x16x8xf32> to vector<4x16x8xf32>
    %73 = vector.shape_cast %72 : vector<4x16x8xf32> to vector<64x8xf32>
    %c0_34 = arith.constant 0 : index
    %c0_35 = arith.constant 0 : index
    %74 = vector.load %arg5[%c0_34, %c0_35] : memref<64x64xf32, #tpu.memory_space<vmem>>, vector<8x64xf32>
    %cst_36 = arith.constant dense<0.000000e+00> : vector<64x64xf32>
    %75 = tpu.matmul %73, %74, %cst_36 {dimension_numbers = #tpu.dot_dimension_numbers<[1], [0], [0], [1], [0, 0, 1, 1], [], []>} : vector<64x8xf32>, vector<8x64xf32>, vector<64x64xf32> -> vector<64x64xf32>
    %76 = arith.addf %70, %75 : vector<64x64xf32>
    %77 = vector.extract_strided_slice %69 {offsets = [0, 1, 0, 0], sizes = [4, 1, 16, 8], strides = [1, 1, 1, 1]} : vector<4x8x16x8xf32> to vector<4x1x16x8xf32>
    %78 = vector.shape_cast %77 : vector<4x1x16x8xf32> to vector<4x16x8xf32>
    %79 = vector.shape_cast %78 : vector<4x16x8xf32> to vector<64x8xf32>
    %c8_37 = arith.constant 8 : index
    %c0_38 = arith.constant 0 : index
    %80 = vector.load %arg5[%c8_37, %c0_38] : memref<64x64xf32, #tpu.memory_space<vmem>>, vector<8x64xf32>
    %cst_39 = arith.constant dense<0.000000e+00> : vector<64x64xf32>
    %81 = tpu.matmul %79, %80, %cst_39 {dimension_numbers = #tpu.dot_dimension_numbers<[1], [0], [0], [1], [0, 0, 1, 1], [], []>} : vector<64x8xf32>, vector<8x64xf32>, vector<64x64xf32> -> vector<64x64xf32>
    %82 = arith.addf %76, %81 : vector<64x64xf32>
    %83 = vector.extract_strided_slice %69 {offsets = [0, 2, 0, 0], sizes = [4, 1, 16, 8], strides = [1, 1, 1, 1]} : vector<4x8x16x8xf32> to vector<4x1x16x8xf32>
    %84 = vector.shape_cast %83 : vector<4x1x16x8xf32> to vector<4x16x8xf32>
    %85 = vector.shape_cast %84 : vector<4x16x8xf32> to vector<64x8xf32>
    %c16 = arith.constant 16 : index
    %c0_40 = arith.constant 0 : index
    %86 = vector.load %arg5[%c16, %c0_40] : memref<64x64xf32, #tpu.memory_space<vmem>>, vector<8x64xf32>
    %cst_41 = arith.constant dense<0.000000e+00> : vector<64x64xf32>
    %87 = tpu.matmul %85, %86, %cst_41 {dimension_numbers = #tpu.dot_dimension_numbers<[1], [0], [0], [1], [0, 0, 1, 1], [], []>} : vector<64x8xf32>, vector<8x64xf32>, vector<64x64xf32> -> vector<64x64xf32>
    %88 = arith.addf %82, %87 : vector<64x64xf32>
    %89 = vector.extract_strided_slice %69 {offsets = [0, 3, 0, 0], sizes = [4, 1, 16, 8], strides = [1, 1, 1, 1]} : vector<4x8x16x8xf32> to vector<4x1x16x8xf32>
    %90 = vector.shape_cast %89 : vector<4x1x16x8xf32> to vector<4x16x8xf32>
    %91 = vector.shape_cast %90 : vector<4x16x8xf32> to vector<64x8xf32>
    %c24 = arith.constant 24 : index
    %c0_42 = arith.constant 0 : index
    %92 = vector.load %arg5[%c24, %c0_42] : memref<64x64xf32, #tpu.memory_space<vmem>>, vector<8x64xf32>
    %cst_43 = arith.constant dense<0.000000e+00> : vector<64x64xf32>
    %93 = tpu.matmul %91, %92, %cst_43 {dimension_numbers = #tpu.dot_dimension_numbers<[1], [0], [0], [1], [0, 0, 1, 1], [], []>} : vector<64x8xf32>, vector<8x64xf32>, vector<64x64xf32> -> vector<64x64xf32>
    %94 = arith.addf %88, %93 : vector<64x64xf32>
    %95 = vector.extract_strided_slice %69 {offsets = [0, 4, 0, 0], sizes = [4, 1, 16, 8], strides = [1, 1, 1, 1]} : vector<4x8x16x8xf32> to vector<4x1x16x8xf32>
    %96 = vector.shape_cast %95 : vector<4x1x16x8xf32> to vector<4x16x8xf32>
    %97 = vector.shape_cast %96 : vector<4x16x8xf32> to vector<64x8xf32>
    %c32 = arith.constant 32 : index
    %c0_44 = arith.constant 0 : index
    %98 = vector.load %arg5[%c32, %c0_44] : memref<64x64xf32, #tpu.memory_space<vmem>>, vector<8x64xf32>
    %cst_45 = arith.constant dense<0.000000e+00> : vector<64x64xf32>
    %99 = tpu.matmul %97, %98, %cst_45 {dimension_numbers = #tpu.dot_dimension_numbers<[1], [0], [0], [1], [0, 0, 1, 1], [], []>} : vector<64x8xf32>, vector<8x64xf32>, vector<64x64xf32> -> vector<64x64xf32>
    %100 = arith.addf %94, %99 : vector<64x64xf32>
    %101 = vector.extract_strided_slice %69 {offsets = [0, 5, 0, 0], sizes = [4, 1, 16, 8], strides = [1, 1, 1, 1]} : vector<4x8x16x8xf32> to vector<4x1x16x8xf32>
    %102 = vector.shape_cast %101 : vector<4x1x16x8xf32> to vector<4x16x8xf32>
    %103 = vector.shape_cast %102 : vector<4x16x8xf32> to vector<64x8xf32>
    %c40 = arith.constant 40 : index
    %c0_46 = arith.constant 0 : index
    %104 = vector.load %arg5[%c40, %c0_46] : memref<64x64xf32, #tpu.memory_space<vmem>>, vector<8x64xf32>
    %cst_47 = arith.constant dense<0.000000e+00> : vector<64x64xf32>
    %105 = tpu.matmul %103, %104, %cst_47 {dimension_numbers = #tpu.dot_dimension_numbers<[1], [0], [0], [1], [0, 0, 1, 1], [], []>} : vector<64x8xf32>, vector<8x64xf32>, vector<64x64xf32> -> vector<64x64xf32>
    %106 = arith.addf %100, %105 : vector<64x64xf32>
    %107 = vector.extract_strided_slice %69 {offsets = [0, 6, 0, 0], sizes = [4, 1, 16, 8], strides = [1, 1, 1, 1]} : vector<4x8x16x8xf32> to vector<4x1x16x8xf32>
    %108 = vector.shape_cast %107 : vector<4x1x16x8xf32> to vector<4x16x8xf32>
    %109 = vector.shape_cast %108 : vector<4x16x8xf32> to vector<64x8xf32>
    %c48 = arith.constant 48 : index
    %c0_48 = arith.constant 0 : index
    %110 = vector.load %arg5[%c48, %c0_48] : memref<64x64xf32, #tpu.memory_space<vmem>>, vector<8x64xf32>
    %cst_49 = arith.constant dense<0.000000e+00> : vector<64x64xf32>
    %111 = tpu.matmul %109, %110, %cst_49 {dimension_numbers = #tpu.dot_dimension_numbers<[1], [0], [0], [1], [0, 0, 1, 1], [], []>} : vector<64x8xf32>, vector<8x64xf32>, vector<64x64xf32> -> vector<64x64xf32>
    %112 = arith.addf %106, %111 : vector<64x64xf32>
    %113 = vector.extract_strided_slice %69 {offsets = [0, 7, 0, 0], sizes = [4, 1, 16, 8], strides = [1, 1, 1, 1]} : vector<4x8x16x8xf32> to vector<4x1x16x8xf32>
    %114 = vector.shape_cast %113 : vector<4x1x16x8xf32> to vector<4x16x8xf32>
    %115 = vector.shape_cast %114 : vector<4x16x8xf32> to vector<64x8xf32>
    %c56 = arith.constant 56 : index
    %c0_50 = arith.constant 0 : index
    %116 = vector.load %arg5[%c56, %c0_50] : memref<64x64xf32, #tpu.memory_space<vmem>>, vector<8x64xf32>
    %cst_51 = arith.constant dense<0.000000e+00> : vector<64x64xf32>
    %117 = tpu.matmul %115, %116, %cst_51 {dimension_numbers = #tpu.dot_dimension_numbers<[1], [0], [0], [1], [0, 0, 1, 1], [], []>} : vector<64x8xf32>, vector<8x64xf32>, vector<64x64xf32> -> vector<64x64xf32>
    %118 = arith.addf %112, %117 : vector<64x64xf32>
    %119 = vector.shape_cast %118 : vector<64x64xf32> to vector<4x16x64xf32>
    %c0_52 = arith.constant 0 : index
    %c0_53 = arith.constant 0 : index
    %c0_54 = arith.constant 0 : index
    %120 = vector.load %arg6[%c0_52, %c0_53, %c0_54] : memref<4x16x64xf32, #tpu.memory_space<vmem>>, vector<4x16x64xf32>
    tpu.vector_store %arg6[%c0_52, %c0_53, %c0_54], %119 {strides = array<i32>} : memref<4x16x64xf32, #tpu.memory_space<vmem>>, vector<4x16x64xf32>,
    return
  }
  func.func @transform_0(%arg0: i32) -> (i32, i32, i32, i32) {
    %c0_i32 = arith.constant 0 : i32
    %c0_i32_0 = arith.constant 0 : i32
    %c0_i32_1 = arith.constant 0 : i32
    %c0_i32_2 = arith.constant 0 : i32
    return %arg0, %c0_i32, %c0_i32_0, %c0_i32_1 : i32, i32, i32, i32
  }
  func.func @transform_1(%arg0: i32) -> (i32, i32, i32, i32) {
    %c0_i32 = arith.constant 0 : i32
    %c0_i32_0 = arith.constant 0 : i32
    %c0_i32_1 = arith.constant 0 : i32
    %c0_i32_2 = arith.constant 0 : i32
    return %arg0, %c0_i32, %c0_i32_0, %c0_i32_1 : i32, i32, i32, i32
  }
  func.func @transform_2(%arg0: i32) -> (i32, i32) {
    %c0_i32 = arith.constant 0 : i32
    %c0_i32_0 = arith.constant 0 : i32
    %c0_i32_1 = arith.constant 0 : i32
    return %c0_i32, %c0_i32_0 : i32, i32
  }
  func.func @transform_3(%arg0: i32) -> (i32, i32) {
    %c0_i32 = arith.constant 0 : i32
    %c0_i32_0 = arith.constant 0 : i32
    %c0_i32_1 = arith.constant 0 : i32
    return %c0_i32, %c0_i32_0 : i32, i32
  }
  func.func @transform_4(%arg0: i32) -> (i32, i32) {
    %c0_i32 = arith.constant 0 : i32
    %c0_i32_0 = arith.constant 0 : i32
    %c0_i32_1 = arith.constant 0 : i32
    return %c0_i32, %c0_i32_0 : i32, i32
  }
  func.func @transform_5(%arg0: i32) -> (i32, i32, i32) {
    %c0_i32 = arith.constant 0 : i32
    %c0_i32_0 = arith.constant 0 : i32
    %c0_i32_1 = arith.constant 0 : i32
    return %arg0, %c0_i32, %c0_i32_0 : i32, i32, i32
  }
  func.func @transform_6(%arg0: i32) -> (i32, i32, i32, i32) {
    %c0_i32 = arith.constant 0 : i32
    %c0_i32_0 = arith.constant 0 : i32
    %c0_i32_1 = arith.constant 0 : i32
    %c0_i32_2 = arith.constant 0 : i32
    return %arg0, %c0_i32, %c0_i32_0, %c0_i32_1 : i32, i32, i32, i32
  }
}

</mosaic_0001>

<bundles_post_ra>
// kernel: tpu_custom_call.1
= control target key start
LH: loop header
LB: loop body
LE: loop exit
PB: predicated region body
PF: predicated region fallthrough
CT: control target
= control target key end

     0   :  { %12 = vsyncpa [#allocation3], 0  ;;  %s19258_s0 = inlined_call_operand.vmem [shape: f32[8,8,16,8], index: 0, kind: input, shape index: {}]   ;;  %s19259_s1 = inlined_call_operand.vmem [shape: f32[8,8,16,16], index: 1, kind: input, shape index: {}]   ;;  %s19260_s2 = inlined_call_operand.vmem [shape: f32[128,128], index: 2, kind: input, shape index: {}]   ;;  %s19261_s3 = inlined_call_operand.vmem [shape: f32[9,24], index: 3, kind: input, shape index: {}]   ;;  %s19262_s4 = inlined_call_operand.vmem [shape: f32[64,64], index: 4, kind: input, shape index: {}]   ;;  %s19263_s5 = inlined_call_operand.hbm [shape: f32[8,16,64], index: 5, kind: output, shape index: {0}]   ;;  %s19264_s6 = inlined_call_operand.hbm [shape: f32[8,8,16,16], index: 6, kind: output, shape index: {1}]  }
   0x1   :  { %14 = vsyncpa [#allocation3 + $0x1], 0 }
   0x2   :  { %15 = vsyncpa [#allocation5], 0 }
   0x3   :  { %17 = vsyncpa [#allocation5 + $0x1], 0  ;;  %s16357_s21 = smov 0   ;;  %s16359_s22 = smov 0  }
   0x4   :  { %s16361_s23 = smov 0   ;;  %s16363_s24 = smov 0  }
   0x5 LB: > { %s16378_s25 = sadd.s32 4294967295, %s16314_s24   ;;  %s12602_s26 = sadd.s32 4294967294, %s16314_s24   ;;  %s16314_s24 = sphi %s16363_s24, %s19691_s24   ;;  %s16310_s23 = sphi %s16361_s23, %s19690_s23   ;;  %s16306_s22 = sphi %s16359_s22, %s19689_s22   ;;  %s16302_s21 = sphi %s16357_s21, %s19688_s21  }
   0x6   : > { %s16382_s27 = sadd.s32 1, %s16314_s24   ;;  %s145_s28 = sadd.s32 1, %s16310_s23 }
   0x7   : > { %s142_s29 = ssub.s32 %s16314_s24, %s16382_s27  ;;  %p155_p0 = scmp.ne.s32.totalorder %s16310_s23, %s16306_s22 }
   0x8   : > { %p143_p1 = scmp.eq.s32.totalorder %s142_s29, 0  ;;  %p156_p2 = scmp.eq.s32.totalorder %s16378_s25, 1 }
   0x9   : > { %p161_p3 = scmp.ne.s32.totalorder %s16306_s22, %s16302_s21  ;;  %p162_p4 = scmp.eq.s32.totalorder %s12602_s26, 1 }
   0xa   : > { %s16393_s30 = scalar_select %p143_p1, %s16310_s23, %s145_s28  }
   0xb   : > { %p16395_p5 = por %p156_p2, %p155_p0  ;;  %p16399_p6 = por %p162_p4, %p161_p3 }
   0xc   : > { %p12605_p7 = scmp.ge.s32.totalorder %s16314_s24, 1  ;;  %p235_p8 = scmp.lt.s32.totalorder %s16314_s24, 3 }
   0xe   : > { %p236_p9 = pnand %p12605_p7, %p235_p8 }
  0x10   : > { %239 = sbr.rel (%p236_p9) target bundleno = 2100 (0x834), region = 40 }
  0x17   : > { %v293_v0 = vld [vmem:[%s19261_s3] sm:$0xff]  ;;  %s12608_s11 = sshll.u32 %s16378_s25, 2  ;;  %vm363_vm0 = vcmask 64512   ;;  %vm1005_vm1 = vcmask 130048   ;;  %s16316_s26 = smov 120  }
  0x18   : > { %13664 = vmatprep.subr.mxu0 %v293_v0  ;;  %p278_p10 = scmp.lt.s32.totalorder %s12608_s11, 7  ;;  %15346 = vmatprep.subr.mxu1 %v293_v0  ;;  %vm17233_vm2 = vmpackc.low %vm363_vm0, %vm363_vm0  ;;  %s16317_s28 = smov 112  }
  0x19   : > { %13665 = vmatpush3.msra.mxu0 %v293_v0  ;;  %15347 = vmatpush3.msra.mxu1 %v293_v0  ;;  %s13014_s19 = sshll.u32 %s16378_s25, 13 }
  0x1a   : > { %s19693_s11 = smov (!%p278_p10, %s12608_s11), 7  ;;  %s19166_s9 = scalar_lea.hbm %s19264_s6, %s13014_s19 }
  0x1b   : > { %s13009_s12 = sshll.u32 %s19693_s11, 7 }
  0x1c   : > { %s16417_s15 = scalar_lea.vmem %s19258_s0, %s13009_s12  ;;  %s16532_s18 = scalar_lea.vmem %s19259_s1, %s13009_s12 }
  0x1d   : > { %v295_v1 = vld [vmem:[%s16417_s15] sm:$0xff]  ;;  %v296_v2 = vld [vmem:[%s16417_s15 + $0x8] sm:$0xff]  ;;  %v297_v3 = vld [vmem:[%s16417_s15 + $0x10] sm:$0xff]  ;;  %s16318_s12 = smov [#allocation4]  }
  0x1e   : > { %13666 = vmatprep.mubr.msk.f32.mxu0 %vm363_vm0, %v295_v1  ;;  %v298_v4 = vld [vmem:[%s16417_s15 + $0x18] sm:$0xff]  ;;  %v299_v5 = vld [vmem:[%s16417_s15 + $0x20] sm:$0xff]  ;;  %v300_v6 = vld [vmem:[%s16417_s15 + $0x28] sm:$0xff]  ;;  %s16224_s13 = sshll.u32 %s16318_s12, 4  ;;  %s16225_s13 = int_to_ptr.vmem [resolvable:$false] %s16224_s13 }
  0x1f   : > { %13667 = vmatmul.mubr.msk.f32.vlgmr.msra.gmra.mrb[0].mxu0 %vm363_vm0, %v296_v2  ;;  %v301_v7 = vld [vmem:[%s16417_s15 + $0x30] sm:$0xff]  ;;  %v302_v8 = vld [vmem:[%s16417_s15 + $0x38] sm:$0xff]  ;;  %v303_v9 = vld [vmem:[%s16417_s15 + $0x40] sm:$0xff] }
  0x20   : > { %13669 = vmatprep.mubr.msk.f32.mxu0 %vm363_vm0, %v297_v3  ;;  %v304_v10 = vld [vmem:[%s16417_s15 + $0x48] sm:$0xff]  ;;  %v305_v11 = vld [vmem:[%s16417_s15 + $0x50] sm:$0xff]  ;;  %v351_v12 = vld [vmem:[%s16417_s15 + $0x1c0] sm:$0xff] }
  0x21   : > { %v306_v13 = vld [vmem:[%s16417_s15 + $0x58] sm:$0xff]  ;;  %13750 = vmatprep.mubr.msk.f32.mxu1 %vm363_vm0, %v351_v12  ;;  %v352_v14 = vld [vmem:[%s16417_s15 + $0x1c8] sm:$0xff]  ;;  %v353_v15 = vld [vmem:[%s16417_s15 + $0x1d0] sm:$0xff] }
  0x22   : > { %v307_v16 = vld [vmem:[%s16417_s15 + $0x60] sm:$0xff]  ;;  %13751 = vmatmul.mubr.msk.f32.vlgmr.msra.gmra.mrb[0].mxu1 %vm363_vm0, %v352_v14  ;;  %v354_v17 = vld [vmem:[%s16417_s15 + $0x1d8] sm:$0xff]  ;;  %v308_v19 = vld [vmem:[%s16417_s15 + $0x68] sm:$0xff] }
  0x23   : > { %13670 = vmatmul.mubr.msk.f32.gmra.mrb[2].mxu0 %vm363_vm0, %v298_v4  ;;  %13753 = vmatprep.mubr.msk.f32.mxu1 %vm363_vm0, %v353_v15  ;;  %v355_v18 = vld [vmem:[%s16417_s15 + $0x1e0] sm:$0xff]  ;;  %v309_v20 = vld [vmem:[%s16417_s15 + $0x70] sm:$0xff]  ;;  %v356_v21 = vld [vmem:[%s16417_s15 + $0x1e8] sm:$0xff] }
  0x24   : > { %13672 = vmatprep.mubr.msk.f32.mxu0 %vm363_vm0, %v299_v5  ;;  %v357_v22 = vld [vmem:[%s16417_s15 + $0x1f0] sm:$0xff]  ;;  %v310_v23 = vld [vmem:[%s16417_s15 + $0x78] sm:$0xff]  ;;  %v311_v24 = vld [vmem:[%s16417_s15 + $0x80] sm:$0xff] }
  0x25   : > { %v358_v25 = vld [vmem:[%s16417_s15 + $0x1f8] sm:$0xff]  ;;  %v312_v26 = vld [vmem:[%s16417_s15 + $0x88] sm:$0xff]  ;;  %v313_v27 = vld [vmem:[%s16417_s15 + $0x90] sm:$0xff] }
  0x26   : > { %13754 = vmatmul.mubr.msk.f32.gmra.mrb[2].mxu1 %vm363_vm0, %v354_v17  ;;  %v314_v28 = vld [vmem:[%s16417_s15 + $0x98] sm:$0xff]  ;;  %v315_v29 = vld [vmem:[%s16417_s15 + $0xa0] sm:$0xff]  ;;  %v316_v30 = vld [vmem:[%s16417_s15 + $0xa8] sm:$0xff] }
  0x27   : > { %13673 = vmatmul.mubr.msk.f32.gmra.mrb[4].mxu0 %vm363_vm0, %v300_v6  ;;  %13756 = vmatprep.mubr.msk.f32.mxu1 %vm363_vm0, %v355_v18  ;;  %v317_v31 = vld [vmem:[%s16417_s15 + $0xb0] sm:$0xff]  ;;  %v318_v32 = vld [vmem:[%s16417_s15 + $0xb8] sm:$0xff]  ;;  %v319_v33 = vld [vmem:[%s16417_s15 + $0xc0] sm:$0xff] }
  0x28   : > { %13675 = vmatprep.mubr.msk.f32.mxu0 %vm363_vm0, %v301_v7  ;;  %v320_v34 = vld [vmem:[%s16417_s15 + $0xc8] sm:$0xff]  ;;  %v321_v35 = vld [vmem:[%s16417_s15 + $0xd0] sm:$0xff]  ;;  %v322_v36 = vld [vmem:[%s16417_s15 + $0xd8] sm:$0xff] }
  0x29   : > { %v323_v37 = vld [vmem:[%s16417_s15 + $0xe0] sm:$0xff]  ;;  %v324_v38 = vld [vmem:[%s16417_s15 + $0xe8] sm:$0xff]  ;;  %v325_v39 = vld [vmem:[%s16417_s15 + $0xf0] sm:$0xff] }
  0x2a   : > { %13757 = vmatmul.mubr.msk.f32.gmra.mrb[4].mxu1 %vm363_vm0, %v356_v21  ;;  %v326_v40 = vld [vmem:[%s16417_s15 + $0xf8] sm:$0xff]  ;;  %v327_v41 = vld [vmem:[%s16417_s15 + $0x100] sm:$0xff]  ;;  %v328_v42 = vld [vmem:[%s16417_s15 + $0x108] sm:$0xff] }
  0x2b   : > { %13676 = vmatmul.mubr.msk.f32.gmra.mrb[6].mxu0 %vm363_vm0, %v302_v8  ;;  %13759 = vmatprep.mubr.msk.f32.mxu1 %vm363_vm0, %v357_v22  ;;  %v329_v43 = vld [vmem:[%s16417_s15 + $0x110] sm:$0xff]  ;;  %v330_v44 = vld [vmem:[%s16417_s15 + $0x118] sm:$0xff]  ;;  %v331_v45 = vld [vmem:[%s16417_s15 + $0x120] sm:$0xff] }
  0x2c   : > { %13678 = vmatprep.mubr.msk.f32.mxu0 %vm363_vm0, %v303_v9  ;;  %v332_v46 = vld [vmem:[%s16417_s15 + $0x128] sm:$0xff]  ;;  %v333_v47 = vld [vmem:[%s16417_s15 + $0x130] sm:$0xff]  ;;  %v334_v48 = vld [vmem:[%s16417_s15 + $0x138] sm:$0xff] }
  0x2d   : > { %v335_v49 = vld [vmem:[%s16417_s15 + $0x140] sm:$0xff]  ;;  %v336_v50 = vld [vmem:[%s16417_s15 + $0x148] sm:$0xff]  ;;  %v337_v51 = vld [vmem:[%s16417_s15 + $0x150] sm:$0xff] }
  0x2e   : > { %13760 = vmatmul.mubr.msk.f32.gmra.mrb[6].mxu1 %vm363_vm0, %v358_v25  ;;  %v338_v52 = vld [vmem:[%s16417_s15 + $0x158] sm:$0xff]  ;;  %v339_v53 = vld [vmem:[%s16417_s15 + $0x160] sm:$0xff]  ;;  %v340_v54 = vld [vmem:[%s16417_s15 + $0x168] sm:$0xff] }
  0x2f   : > { %13679 = vmatmul.mubr.msk.f32.gmra.mrb[8].mxu0 %vm363_vm0, %v304_v10  ;;  %v341_v55 = vld [vmem:[%s16417_s15 + $0x170] sm:$0xff]  ;;  %v342_v56 = vld [vmem:[%s16417_s15 + $0x178] sm:$0xff]  ;;  %v343_v57 = vld [vmem:[%s16417_s15 + $0x180] sm:$0xff] }
  0x30   : > { %13681 = vmatprep.mubr.msk.f32.mxu0 %vm363_vm0, %v305_v11  ;;  %v941_v58 = vld [vmem:[%s16532_s18] sm:$0xff]  ;;  %v344_v59 = vld [vmem:[%s16417_s15 + $0x188] sm:$0xff]  ;;  %v345_v60 = vld [vmem:[%s16417_s15 + $0x190] sm:$0xff] }
  0x31   : > { %13766 = vmatprep.mubr.msk.f32.mxu1 %vm1005_vm1, %v941_v58  ;;  %v346_v61 = vld [vmem:[%s16417_s15 + $0x198] sm:$0xff]  ;;  %v347_v62 = vld [vmem:[%s16417_s15 + $0x1a0] sm:$0xff]  ;;  %v348_v63 = vld [vmem:[%s16417_s15 + $0x1a8] sm:$0xff] }
  0x32   : > { %v349_v0 = vld [vmem:[%s16417_s15 + $0x1b0] sm:$0xff]  ;;  %v350_v1 = vld [vmem:[%s16417_s15 + $0x1b8] sm:$0xff]  ;;  %v16559_v2 = vld [vmem:[%s19261_s3 + $0x8] ss:$0 sm:$0xff] }
  0x33   : > { %13682 = vmatmul.mubr.msk.f32.gmra.mrb[10].mxu0 %vm363_vm0, %v306_v13  ;;  %v942_v13 = vld [vmem:[%s16532_s18 + $0x8] sm:$0xff]  ;;  %v943_v17 = vld [vmem:[%s16532_s18 + $0x10] sm:$0xff]  ;;  %v944_v21 = vld [vmem:[%s16532_s18 + $0x18] sm:$0xff] }
  0x34   : > { %13684 = vmatprep.mubr.msk.f32.mxu0 %vm363_vm0, %v307_v16  ;;  %v945_v25 = vld [vmem:[%s16532_s18 + $0x20] sm:$0xff]  ;;  %v951_v58 = vld [vmem:[%s16532_s18 + $0x50] sm:$0xff] }
  0x35   : > { %v977_v14 = vld [vmem:[%s16532_s18 + $0x120] sm:$0xff]  ;;  %v979_v7 = vld [vmem:[%s16532_s18 + $0x130] sm:$0xff] }
  0x37   : > { %13685 = vmatmul.mubr.msk.f32.gmra.mrb[12].mxu0 %vm363_vm0, %v308_v19 }
  0x38   : > { %13687 = vmatprep.mubr.msk.f32.mxu0 %vm363_vm0, %v309_v20 }
  0x3b   : > { %13688 = vmatmul.mubr.msk.f32.gmra.mrb[14].mxu0 %vm363_vm0, %v310_v23 }
  0x3c   : > { %13690 = vmatprep.mubr.msk.f32.mxu0 %vm363_vm0, %v311_v24 }
  0x3f   : > { %13691 = vmatmul.mubr.msk.f32.gmra.mrb[16].mxu0 %vm363_vm0, %v312_v26 }
  0x40   : > { %13693 = vmatprep.mubr.msk.f32.mxu0 %vm363_vm0, %v313_v27 }
  0x43   : > { %13694 = vmatmul.mubr.msk.f32.gmra.mrb[18].mxu0 %vm363_vm0, %v314_v28 }
  0x44   : > { %13696 = vmatprep.mubr.msk.f32.mxu0 %vm363_vm0, %v315_v29  ;;  %v946_v29 = vld [vmem:[%s16532_s18 + $0x28] sm:$0xff] }
  0x47   : > { %13697 = vmatmul.mubr.msk.f32.gmra.mrb[20].mxu0 %vm363_vm0, %v316_v30  ;;  %v981_v30 = vld [vmem:[%s16532_s18 + $0x140] sm:$0xff] }
  0x48   : > { %13699 = vmatprep.mubr.msk.f32.mxu0 %vm363_vm0, %v317_v31 }
  0x4b   : > { %13700 = vmatmul.mubr.msk.f32.gmra.mrb[22].mxu0 %vm363_vm0, %v318_v32 }
  0x4c   : > { %13702 = vmatprep.mubr.msk.f32.mxu0 %vm363_vm0, %v319_v33  ;;  %v947_v33 = vld [vmem:[%s16532_s18 + $0x30] sm:$0xff] }
  0x4f   : > { %13703 = vmatmul.mubr.msk.f32.gmra.mrb[24].mxu0 %vm363_vm0, %v320_v34 }
  0x50   : > { %13705 = vmatprep.mubr.msk.f32.mxu0 %vm363_vm0, %v321_v35 }
  0x53   : > { %13706 = vmatmul.mubr.msk.f32.gmra.mrb[26].mxu0 %vm363_vm0, %v322_v36 }
  0x54   : > { %13708 = vmatprep.mubr.msk.f32.mxu0 %vm363_vm0, %v323_v37 }
  0x57   : > { %13709 = vmatmul.mubr.msk.f32.gmra.mrb[28].mxu0 %vm363_vm0, %v324_v38  ;;  %v948_v38 = vld [vmem:[%s16532_s18 + $0x38] sm:$0xff] }
  0x58   : > { %13711 = vmatprep.mubr.msk.f32.mxu0 %vm363_vm0, %v325_v39 }
  0x5b   : > { %13712 = vmatmul.mubr.msk.f32.gmra.mrb[30].mxu0 %vm363_vm0, %v326_v40 }
  0x5c   : > { %13714 = vmatprep.mubr.msk.f32.mxu0 %vm363_vm0, %v327_v41 }
  0x5f   : > { %13715 = vmatmul.mubr.msk.f32.gmra.mrb[32].mxu0 %vm363_vm0, %v328_v42 }
  0x60   : > { %13717 = vmatprep.mubr.msk.f32.mxu0 %vm363_vm0, %v329_v43 }
  0x63   : > { %13718 = vmatmul.mubr.msk.f32.gmra.mrb[34].mxu0 %vm363_vm0, %v330_v44  ;;  %v949_v44 = vld [vmem:[%s16532_s18 + $0x40] sm:$0xff] }
  0x64   : > { %13720 = vmatprep.mubr.msk.f32.mxu0 %vm363_vm0, %v331_v45 }
  0x67   : > { %13721 = vmatmul.mubr.msk.f32.gmra.mrb[36].mxu0 %vm363_vm0, %v332_v46 }
  0x68   : > { %13723 = vmatprep.mubr.msk.f32.mxu0 %vm363_vm0, %v333_v47 }
  0x6b   : > { %13724 = vmatmul.mubr.msk.f32.gmra.mrb[38].mxu0 %vm363_vm0, %v334_v48 }
  0x6c   : > { %13726 = vmatprep.mubr.msk.f32.mxu0 %vm363_vm0, %v335_v49  ;;  %v967_v49 = vld [vmem:[%s16532_s18 + $0xd0] sm:$0xff] }
  0x6f   : > { %13727 = vmatmul.mubr.msk.f32.gmra.mrb[40].mxu0 %vm363_vm0, %v336_v50 }
  0x70   : > { %13729 = vmatprep.mubr.msk.f32.mxu0 %vm363_vm0, %v337_v51 }
  0x73   : > { %13730 = vmatmul.mubr.msk.f32.gmra.mrb[42].mxu0 %vm363_vm0, %v338_v52  ;;  %v950_v52 = vld [vmem:[%s16532_s18 + $0x48] sm:$0xff] }
  0x74   : > { %13732 = vmatprep.mubr.msk.f32.mxu0 %vm363_vm0, %v339_v53 }
  0x77   : > { %13733 = vmatmul.mubr.msk.f32.gmra.mrb[44].mxu0 %vm363_vm0, %v340_v54 }
  0x78   : > { %13735 = vmatprep.mubr.msk.f32.mxu0 %vm363_vm0, %v341_v55  ;;  %v975_v55 = vld [vmem:[%s16532_s18 + $0x110] sm:$0xff] }
  0x7b   : > { %13736 = vmatmul.mubr.msk.f32.gmra.mrb[46].mxu0 %vm363_vm0, %v342_v56 }
  0x7c   : > { %13738 = vmatprep.mubr.msk.f32.mxu0 %vm363_vm0, %v343_v57 }
  0x7f   : > { %13739 = vmatmul.mubr.msk.f32.gmra.mrb[48].mxu0 %vm363_vm0, %v344_v59 }
  0x80   : > { %13741 = vmatprep.mubr.msk.f32.mxu0 %vm363_vm0, %v345_v60 }
  0x83   : > { %13742 = vmatmul.mubr.msk.f32.gmra.mrb[50].mxu0 %vm363_vm0, %v346_v61 }
  0x84   : > { %13744 = vmatprep.mubr.msk.f32.mxu0 %vm363_vm0, %v347_v62 }
  0x87   : > { %13745 = vmatmul.mubr.msk.f32.gmra.mrb[52].mxu0 %vm363_vm0, %v348_v63 }
  0x88   : > { %13747 = vmatprep.mubr.msk.f32.mxu0 %vm363_vm0, %v349_v0 }
  0x8b   : > { %13748 = vmatmul.mubr.msk.f32.gmra.mrb[54].mxu0 %vm363_vm0, %v350_v1 }
  0xf2   : > { %v13668_v3 = vpop.f32.mrb[0].mxu0 }
  0xf3   : > { %v16562_v4 = vadd.f32 %v13668_v3, %v16559_v2  ;;  %v622_v5 = vpop.f32.mrb[1].mxu0  ;;  %v952_v3 = vld [vmem:[%s16532_s18 + $0x58] sm:$0xff] }
  0xf4   : > { %v16565_v6 = vadd.f32 %v16559_v2, %v622_v5 }
  0xf5   : > { %v13752_v37 = vpop.f32.mrb[0].mxu1 }
  0xf6   : > { %v14770_v8 = vpack.c.bf16 %v16562_v4, %v16565_v6  ;;  %v13671_v9 = vpop.f32.mrb[2].mxu0  ;;  %v16621_v39 = vadd.f32 %v13752_v37, %v16559_v2  ;;  %v902_v40 = vpop.f32.mrb[1].mxu1  ;;  %v955_v37 = vld [vmem:[%s16532_s18 + $0x70] sm:$0xff] }
  0xf7   : > { %v16572_v10 = vadd.f32 %v13671_v9, %v16559_v2  ;;  %v632_v11 = vpop.f32.mrb[3].mxu0  ;;  %v16629_v45 = vadd.f32 %v16559_v2, %v902_v40 }
  0xf8   : > { %v16575_v12 = vadd.f32 %v16559_v2, %v632_v11  ;;  %14771 = vmatprep.subr.bf16.mxu1 %v14770_v8  ;;  %19396 = vst [vmem:[#allocation8_spill] sm:$0xff] %v16621_v39 }
  0xf9   : > { %14773 = vmatpush3.bf16.msra.mxu1 %v14770_v8  ;;  %19397 = vst [vmem:[#allocation9_spill] sm:$0xff] %v16629_v45  ;;  %v16642_v50 = vpack.c.bf16 %v16621_v39, %v16629_v45  ;;  %v13755_v51 = vpop.f32.mrb[2].mxu1  ;;  %v987_v39 = vld [vmem:[%s16532_s18 + $0x170] sm:$0xff] }
  0xfa   : > { %v14774_v15 = vpack.c.bf16 %v16572_v10, %v16575_v12  ;;  %v13674_v16 = vpop.f32.mrb[4].mxu0  ;;  %v16647_v53 = vadd.f32 %v13755_v51, %v16559_v2  ;;  %v912_v54 = vpop.f32.mrb[3].mxu1  ;;  %v956_v51 = vld [vmem:[%s16532_s18 + $0x78] sm:$0xff] }
  0xfb   : > { %v16584_v18 = vadd.f32 %v13674_v16, %v16559_v2  ;;  %v642_v19 = vpop.f32.mrb[5].mxu0  ;;  %v16655_v59 = vadd.f32 %v16559_v2, %v912_v54 }
  0xfc   : > { %v16587_v20 = vadd.f32 %v16559_v2, %v642_v19  ;;  %13767 = vmatmul.mubr.msk.f32.vlgmr.msra.gmra.mrb[8].mxu1 %vm1005_vm1, %v942_v13  ;;  %14775 = vmatprep.subr.bf16.mxu1 %v14774_v15  ;;  %19398 = vst [vmem:[#allocation10_spill] sm:$0xff] %v16647_v53 }
  0xfd   : > { %14777 = vmatpush3.bf16.msra.mxu1 %v14774_v15  ;;  %13773 = vmatprep.mubr.msk.f32.mxu1 %vm1005_vm1, %v943_v17  ;;  %19399 = vst [vmem:[#allocation11_spill] sm:$0xff] %v16655_v59  ;;  %v16668_v0 = vpack.c.bf16 %v16647_v53, %v16655_v59  ;;  %v13758_v1 = vpop.f32.mrb[4].mxu1  ;;  %v953_v15 = vld [vmem:[%s16532_s18 + $0x60] sm:$0xff] }
  0xfe   : > { %v14778_v23 = vpack.c.bf16 %v16584_v18, %v16587_v20  ;;  %v13677_v24 = vpop.f32.mrb[6].mxu0  ;;  %v16673_v5 = vadd.f32 %v13758_v1, %v16559_v2  ;;  %v922_v8 = vpop.f32.mrb[5].mxu1  ;;  %v989_v53 = vld [vmem:[%s16532_s18 + $0x180] sm:$0xff] }
  0xff   : > { %v16598_v26 = vadd.f32 %v13677_v24, %v16559_v2  ;;  %v652_v27 = vpop.f32.mrb[7].mxu0  ;;  %v16681_v16 = vadd.f32 %v16559_v2, %v922_v8  ;;  %v973_v8 = vld [vmem:[%s16532_s18 + $0x100] sm:$0xff] }
 0x100   : > { %v16601_v28 = vadd.f32 %v16559_v2, %v652_v27  ;;  %13774 = vmatmul.mubr.msk.f32.vlgmr.msra.gmra.mrb[10].mxu1 %vm1005_vm1, %v944_v21  ;;  %14779 = vmatprep.subr.bf16.mxu1 %v14778_v23  ;;  %19400 = vst [vmem:[#allocation12_spill] sm:$0xff] %v16673_v5  ;;  %v954_v27 = vld [vmem:[%s16532_s18 + $0x68] sm:$0xff] }
 0x101   : > { %14781 = vmatpush3.bf16.msra.mxu1 %v14778_v23  ;;  %13780 = vmatprep.mubr.msk.f32.mxu1 %vm1005_vm1, %v945_v25  ;;  %19401 = vst [vmem:[#allocation13_spill] sm:$0xff] %v16681_v16  ;;  %v16694_v24 = vpack.c.bf16 %v16673_v5, %v16681_v16  ;;  %v13761_v25 = vpop.f32.mrb[6].mxu1  ;;  %v983_v5 = vld [vmem:[%s16532_s18 + $0x150] sm:$0xff] }
 0x102   : > { %v14782_v31 = vpack.c.bf16 %v16598_v26, %v16601_v28  ;;  %v13680_v32 = vpop.f32.mrb[8].mxu0 }
 0x103   : > { %v16612_v34 = vadd.f32 %v13680_v32, %v16559_v2  ;;  %v662_v35 = vpop.f32.mrb[9].mxu0 }
 0x104   : > { %v16615_v36 = vadd.f32 %v16559_v2, %v662_v35  ;;  %13781 = vmatmul.mubr.msk.f32.vlgmr.msra.gmra.mrb[12].mxu1 %vm1005_vm1, %v946_v29  ;;  %14783 = vmatprep.subr.bf16.mxu1 %v14782_v31  ;;  %v16699_v29 = vadd.f32 %v13761_v25, %v16559_v2 }
 0x105   : > { %14785 = vmatpush3.bf16.msra.mxu1 %v14782_v31  ;;  %13787 = vmatprep.mubr.msk.f32.mxu1 %vm1005_vm1, %v947_v33  ;;  %v932_v31 = vpop.f32.mrb[7].mxu1 }
 0x106   : > { %v14786_v42 = vpack.c.bf16 %v16612_v34, %v16615_v36  ;;  %v13683_v43 = vpop.f32.mrb[10].mxu0  ;;  %19402 = vst [vmem:[#allocation14_spill] sm:$0xff] %v16699_v29 }
 0x107   : > { %v16632_v46 = vadd.f32 %v13683_v43, %v16559_v2  ;;  %v672_v47 = vpop.f32.mrb[11].mxu0 }
 0x108   : > { %v16635_v48 = vadd.f32 %v16559_v2, %v672_v47  ;;  %13788 = vmatmul.mubr.msk.f32.vlgmr.msra.gmra.mrb[14].mxu1 %vm1005_vm1, %v948_v38  ;;  %14787 = vmatprep.subr.bf16.mxu1 %v14786_v42  ;;  %v16707_v38 = vadd.f32 %v16559_v2, %v932_v31  ;;  %v960_v31 = vld [vmem:[%s16532_s18 + $0x98] sm:$0xff] }
 0x109   : > { %14789 = vmatpush3.bf16.msra.mxu1 %v14786_v42  ;;  %13794 = vmatprep.mubr.msk.f32.mxu1 %vm1005_vm1, %v949_v44 }
 0x10a   : > { %v14790_v56 = vpack.c.bf16 %v16632_v46, %v16635_v48  ;;  %v13686_v57 = vpop.f32.mrb[12].mxu0  ;;  %19403 = vst [vmem:[#allocation15_spill] sm:$0xff] %v16707_v38  ;;  %v16720_v47 = vpack.c.bf16 %v16699_v29, %v16707_v38  ;;  %v985_v29 = vld [vmem:[%s16532_s18 + $0x160] sm:$0xff] }
 0x10b   : > { %v16658_v60 = vadd.f32 %v13686_v57, %v16559_v2  ;;  %v682_v61 = vpop.f32.mrb[13].mxu0  ;;  %v957_v57 = vld [vmem:[%s16532_s18 + $0x80] sm:$0xff] }
 0x10c   : > { %v16661_v62 = vadd.f32 %v16559_v2, %v682_v61  ;;  %13795 = vmatmul.mubr.msk.f32.vlgmr.msra.gmra.mrb[16].mxu1 %vm1005_vm1, %v950_v52  ;;  %14791 = vmatprep.subr.bf16.mxu1 %v14790_v56 }
 0x10d   : > { %14793 = vmatpush3.bf16.msra.mxu1 %v14790_v56  ;;  %13801 = vmatprep.mubr.msk.f32.mxu1 %vm1005_vm1, %v951_v58 }
 0x10e   : > { %v14794_v11 = vpack.c.bf16 %v16658_v60, %v16661_v62  ;;  %v13689_v13 = vpop.f32.mrb[14].mxu0 }
 0x10f   : > { %v16684_v17 = vadd.f32 %v13689_v13, %v16559_v2  ;;  %v692_v19 = vpop.f32.mrb[15].mxu0 }
 0x110   : > { %v16687_v21 = vadd.f32 %v16559_v2, %v692_v19  ;;  %13802 = vmatmul.mubr.msk.f32.vlgmr.msra.gmra.mrb[18].mxu1 %vm1005_vm1, %v952_v3  ;;  %14795 = vmatprep.subr.bf16.mxu1 %v14794_v11  ;;  %v958_v3 = vld [vmem:[%s16532_s18 + $0x88] sm:$0xff] }
 0x111   : > { %14797 = vmatpush3.bf16.msra.mxu1 %v14794_v11  ;;  %13808 = vmatprep.mubr.msk.f32.mxu1 %vm1005_vm1, %v953_v15  ;;  %v959_v15 = vld [vmem:[%s16532_s18 + $0x90] sm:$0xff] }
 0x112   : > { %v14798_v33 = vpack.c.bf16 %v16684_v17, %v16687_v21  ;;  %v13692_v35 = vpop.f32.mrb[16].mxu0 }
 0x113   : > { %v16710_v40 = vadd.f32 %v13692_v35, %v16559_v2  ;;  %v702_v42 = vpop.f32.mrb[17].mxu0 }
 0x114   : > { %v16713_v43 = vadd.f32 %v16559_v2, %v702_v42  ;;  %13809 = vmatmul.mubr.msk.f32.vlgmr.msra.gmra.mrb[20].mxu1 %vm1005_vm1, %v954_v27  ;;  %14799 = vmatprep.subr.bf16.mxu1 %v14798_v33  ;;  %v961_v42 = vld [vmem:[%s16532_s18 + $0xa0] sm:$0xff] }
 0x115   : > { %14801 = vmatpush3.bf16.msra.mxu1 %v14798_v33  ;;  %13815 = vmatprep.mubr.msk.f32.mxu1 %vm1005_vm1, %v955_v37 }
 0x116   : > { %v14802_v54 = vpack.c.bf16 %v16710_v40, %v16713_v43  ;;  %v13695_v56 = vpop.f32.mrb[18].mxu0 }
 0x117   : > { %v16730_v58 = vadd.f32 %v13695_v56, %v16559_v2  ;;  %v712_v61 = vpop.f32.mrb[19].mxu0 }
 0x118   : > { %v16733_v1 = vadd.f32 %v16559_v2, %v712_v61  ;;  %13816 = vmatmul.mubr.msk.f32.vlgmr.msra.gmra.mrb[22].mxu1 %vm1005_vm1, %v956_v51  ;;  %14803 = vmatprep.subr.bf16.mxu1 %v14802_v54  ;;  %v971_v61 = vld [vmem:[%s16532_s18 + $0xf0] sm:$0xff] }
 0x119   : > { %14805 = vmatpush3.bf16.msra.mxu1 %v14802_v54  ;;  %13822 = vmatprep.mubr.msk.f32.mxu1 %vm1005_vm1, %v957_v57  ;;  %v962_v57 = vld [vmem:[%s16532_s18 + $0xa8] sm:$0xff] }
 0x11a   : > { %v14806_v11 = vpack.c.bf16 %v16730_v58, %v16733_v1  ;;  %v13698_v13 = vpop.f32.mrb[20].mxu0 }
 0x11b   : > { %v16744_v19 = vadd.f32 %v13698_v13, %v16559_v2  ;;  %v722_v25 = vpop.f32.mrb[21].mxu0  ;;  %v963_v13 = vld [vmem:[%s16532_s18 + $0xb0] sm:$0xff] }
 0x11c   : > { %v16747_v27 = vadd.f32 %v16559_v2, %v722_v25  ;;  %13823 = vmatmul.mubr.msk.f32.vlgmr.msra.gmra.mrb[24].mxu1 %vm1005_vm1, %v958_v3  ;;  %14807 = vmatprep.subr.bf16.mxu1 %v14806_v11 }
 0x11d   : > { %14809 = vmatpush3.bf16.msra.mxu1 %v14806_v11  ;;  %13829 = vmatprep.mubr.msk.f32.mxu1 %vm1005_vm1, %v959_v15 }
 0x11e   : > { %v14810_v35 = vpack.c.bf16 %v16744_v19, %v16747_v27  ;;  %v13701_v37 = vpop.f32.mrb[22].mxu0 }
 0x11f   : > { %v16758_v51 = vadd.f32 %v13701_v37, %v16559_v2  ;;  %v732_v54 = vpop.f32.mrb[23].mxu0 }
 0x120   : > { %v16761_v56 = vadd.f32 %v16559_v2, %v732_v54  ;;  %13830 = vmatmul.mubr.msk.f32.vlgmr.msra.gmra.mrb[26].mxu1 %vm1005_vm1, %v960_v31  ;;  %14811 = vmatprep.subr.bf16.mxu1 %v14810_v35 }
 0x121   : > { %14813 = vmatpush3.bf16.msra.mxu1 %v14810_v35  ;;  %13836 = vmatprep.mubr.msk.f32.mxu1 %vm1005_vm1, %v961_v42  ;;  %v964_v35 = vld [vmem:[%s16532_s18 + $0xb8] sm:$0xff] }
 0x122   : > { %v14814_v3 = vpack.c.bf16 %v16758_v51, %v16761_v56  ;;  %v13704_v11 = vpop.f32.mrb[24].mxu0 }
 0x123   : > { %v16772_v15 = vadd.f32 %v13704_v11, %v16559_v2  ;;  %v742_v25 = vpop.f32.mrb[25].mxu0  ;;  %v965_v11 = vld [vmem:[%s16532_s18 + $0xc0] sm:$0xff] }
 0x124   : > { %v16775_v31 = vadd.f32 %v16559_v2, %v742_v25  ;;  %13837 = vmatmul.mubr.msk.f32.vlgmr.msra.gmra.mrb[28].mxu1 %vm1005_vm1, %v962_v57  ;;  %14815 = vmatprep.subr.bf16.mxu1 %v14814_v3 }
 0x125   : > { %14817 = vmatpush3.bf16.msra.mxu1 %v14814_v3  ;;  %13843 = vmatprep.mubr.msk.f32.mxu1 %vm1005_vm1, %v963_v13  ;;  %v966_v3 = vld [vmem:[%s16532_s18 + $0xc8] sm:$0xff]  ;;  %v969_v13 = vld [vmem:[%s16532_s18 + $0xe0] sm:$0xff] }
 0x126   : > { %v14818_v42 = vpack.c.bf16 %v16772_v15, %v16775_v31  ;;  %v13707_v54 = vpop.f32.mrb[26].mxu0 }
 0x127   : > { %v16786_v25 = vadd.f32 %v13707_v54, %v16559_v2  ;;  %v752_v23 = vpop.f32.mrb[27].mxu0 }
 0x128   : > { %v16789_v57 = vadd.f32 %v16559_v2, %v752_v23  ;;  %13844 = vmatmul.mubr.msk.f32.vlgmr.msra.gmra.mrb[30].mxu1 %vm1005_vm1, %v964_v35  ;;  %14819 = vmatprep.subr.bf16.mxu1 %v14818_v42 }
 0x129   : > { %14821 = vmatpush3.bf16.msra.mxu1 %v14818_v42  ;;  %13850 = vmatprep.mubr.msk.f32.mxu1 %vm1005_vm1, %v965_v11  ;;  %v968_v42 = vld [vmem:[%s16532_s18 + $0xd8] sm:$0xff] }
 0x12a   : > { %v14822_v54 = vpack.c.bf16 %v16786_v25, %v16789_v57  ;;  %v13710_v44 = vpop.f32.mrb[28].mxu0 }
 0x12b   : > { %v16800_v23 = vadd.f32 %v13710_v44, %v16559_v2  ;;  %v762_v63 = vpop.f32.mrb[29].mxu0 }
 0x12c   : > { %v16803_v35 = vadd.f32 %v16559_v2, %v762_v63  ;;  %13851 = vmatmul.mubr.msk.f32.vlgmr.msra.gmra.mrb[32].mxu1 %vm1005_vm1, %v966_v3  ;;  %14823 = vmatprep.subr.bf16.mxu1 %v14822_v54 }
 0x12d   : > { %14825 = vmatpush3.bf16.msra.mxu1 %v14822_v54  ;;  %13857 = vmatprep.mubr.msk.f32.mxu1 %vm1005_vm1, %v967_v49  ;;  %v970_v49 = vld [vmem:[%s16532_s18 + $0xe8] sm:$0xff] }
 0x12e   : > { %v14826_v44 = vpack.c.bf16 %v16800_v23, %v16803_v35  ;;  %v13713_v37 = vpop.f32.mrb[30].mxu0 }
 0x12f   : > { %v16814_v63 = vadd.f32 %v13713_v37, %v16559_v2  ;;  %v772_v33 = vpop.f32.mrb[31].mxu0 }
 0x130   : > { %v16817_v3 = vadd.f32 %v16559_v2, %v772_v33  ;;  %13858 = vmatmul.mubr.msk.f32.vlgmr.msra.gmra.mrb[34].mxu1 %vm1005_vm1, %v968_v42  ;;  %14827 = vmatprep.subr.bf16.mxu1 %v14826_v44 }
 0x131   : > { %14829 = vmatpush3.bf16.msra.mxu1 %v14826_v44  ;;  %13864 = vmatprep.mubr.msk.f32.mxu1 %vm1005_vm1, %v969_v13  ;;  %v972_v13 = vld [vmem:[%s16532_s18 + $0xf8] sm:$0xff] }
 0x132   : > { %v14830_v37 = vpack.c.bf16 %v16814_v63, %v16817_v3  ;;  %v13716_v11 = vpop.f32.mrb[32].mxu0 }
 0x133   : > { %v16828_v33 = vadd.f32 %v13716_v11, %v16559_v2  ;;  %v782_v52 = vpop.f32.mrb[33].mxu0 }
 0x134   : > { %v16831_v42 = vadd.f32 %v16559_v2, %v782_v52  ;;  %13865 = vmatmul.mubr.msk.f32.vlgmr.msra.gmra.mrb[36].mxu1 %vm1005_vm1, %v970_v49  ;;  %14831 = vmatprep.subr.bf16.mxu1 %v14830_v37 }
 0x135   : > { %19404 = vst [vmem:[#allocation16_spill] sm:$0xff] %v16828_v33  ;;  %14833 = vmatpush3.bf16.msra.mxu1 %v14830_v37  ;;  %13871 = vmatprep.mubr.msk.f32.mxu1 %vm1005_vm1, %v971_v61  ;;  %v974_v61 = vld [vmem:[%s16532_s18 + $0x108] sm:$0xff] }
 0x136   : > { %19405 = vst [vmem:[#allocation17_spill] sm:$0xff] %v16831_v42  ;;  %v14834_v11 = vpack.c.bf16 %v16828_v33, %v16831_v42  ;;  %v13719_v54 = vpop.f32.mrb[34].mxu0 }
 0x137   : > { %v16842_v52 = vadd.f32 %v13719_v54, %v16559_v2  ;;  %v792_v9 = vpop.f32.mrb[35].mxu0 }
 0x138   : > { %v16845_v49 = vadd.f32 %v16559_v2, %v792_v9  ;;  %13872 = vmatmul.mubr.msk.f32.vlgmr.msra.gmra.mrb[38].mxu1 %vm1005_vm1, %v972_v13  ;;  %14835 = vmatprep.subr.bf16.mxu1 %v14834_v11 }
 0x139   : > { %14837 = vmatpush3.bf16.msra.mxu1 %v14834_v11  ;;  %13878 = vmatprep.mubr.msk.f32.mxu1 %vm1005_vm1, %v973_v8  ;;  %v976_v8 = vld [vmem:[%s16532_s18 + $0x118] sm:$0xff] }
 0x13a   : > { %v14838_v54 = vpack.c.bf16 %v16842_v52, %v16845_v49  ;;  %v13722_v44 = vpop.f32.mrb[36].mxu0 }
 0x13b   : > { %v16856_v9 = vadd.f32 %v13722_v44, %v16559_v2  ;;  %v802_v41 = vpop.f32.mrb[37].mxu0 }
 0x13c   : > { %v16859_v13 = vadd.f32 %v16559_v2, %v802_v41  ;;  %13879 = vmatmul.mubr.msk.f32.vlgmr.msra.gmra.mrb[40].mxu1 %vm1005_vm1, %v974_v61  ;;  %14839 = vmatprep.subr.bf16.mxu1 %v14838_v54 }
 0x13d   : > { %19406 = vst [vmem:[#allocation18_spill] sm:$0xff] %v16856_v9  ;;  %14841 = vmatpush3.bf16.msra.mxu1 %v14838_v54  ;;  %13885 = vmatprep.mubr.msk.f32.mxu1 %vm1005_vm1, %v975_v55  ;;  %v978_v55 = vld [vmem:[%s16532_s18 + $0x128] sm:$0xff] }
 0x13e   : > { %19407 = vst [vmem:[#allocation19_spill] sm:$0xff] %v16859_v13  ;;  %v14842_v44 = vpack.c.bf16 %v16856_v9, %v16859_v13  ;;  %v13725_v37 = vpop.f32.mrb[38].mxu0 }
 0x13f   : > { %v16870_v41 = vadd.f32 %v13725_v37, %v16559_v2  ;;  %v812_v22 = vpop.f32.mrb[39].mxu0 }
 0x140   : > { %v16873_v61 = vadd.f32 %v16559_v2, %v812_v22  ;;  %13886 = vmatmul.mubr.msk.f32.vlgmr.msra.gmra.mrb[42].mxu1 %vm1005_vm1, %v976_v8  ;;  %14843 = vmatprep.subr.bf16.mxu1 %v14842_v44 }
 0x141   : > { %19408 = vst [vmem:[#allocation20_spill] sm:$0xff] %v16870_v41  ;;  %14845 = vmatpush3.bf16.msra.mxu1 %v14842_v44  ;;  %13892 = vmatprep.mubr.msk.f32.mxu1 %vm1005_vm1, %v977_v14  ;;  %v980_v14 = vld [vmem:[%s16532_s18 + $0x138] sm:$0xff] }
 0x142   : > { %19409 = vst [vmem:[#allocation21_spill] sm:$0xff] %v16873_v61  ;;  %v14846_v37 = vpack.c.bf16 %v16870_v41, %v16873_v61  ;;  %v13728_v11 = vpop.f32.mrb[40].mxu0 }
 0x143   : > { %v16884_v22 = vadd.f32 %v13728_v11, %v16559_v2  ;;  %v822_v32 = vpop.f32.mrb[41].mxu0 }
 0x144   : > { %v16887_v8 = vadd.f32 %v16559_v2, %v822_v32  ;;  %13893 = vmatmul.mubr.msk.f32.vlgmr.msra.gmra.mrb[44].mxu1 %vm1005_vm1, %v978_v55  ;;  %14847 = vmatprep.subr.bf16.mxu1 %v14846_v37 }
 0x145   : > { %19410 = vst [vmem:[#allocation22_spill] sm:$0xff] %v16884_v22  ;;  %14849 = vmatpush3.bf16.msra.mxu1 %v14846_v37  ;;  %13899 = vmatprep.mubr.msk.f32.mxu1 %vm1005_vm1, %v979_v7  ;;  %v982_v7 = vld [vmem:[%s16532_s18 + $0x148] sm:$0xff] }
 0x146   : > { %19411 = vst [vmem:[#allocation23_spill] sm:$0xff] %v16887_v8  ;;  %v14850_v11 = vpack.c.bf16 %v16884_v22, %v16887_v8  ;;  %v13731_v54 = vpop.f32.mrb[42].mxu0  ;;  %v993_v22 = vld [vmem:[%s16532_s18 + $0x1a0] sm:$0xff] }
 0x147   : > { %v16898_v32 = vadd.f32 %v13731_v54, %v16559_v2  ;;  %v832_v16 = vpop.f32.mrb[43].mxu0 }
 0x148   : > { %v16901_v55 = vadd.f32 %v16559_v2, %v832_v16  ;;  %13900 = vmatmul.mubr.msk.f32.vlgmr.msra.gmra.mrb[46].mxu1 %vm1005_vm1, %v980_v14  ;;  %14851 = vmatprep.subr.bf16.mxu1 %v14850_v11 }
 0x149   : > { %19412 = vst [vmem:[#allocation24_spill] sm:$0xff] %v16898_v32  ;;  %14853 = vmatpush3.bf16.msra.mxu1 %v14850_v11  ;;  %13906 = vmatprep.mubr.msk.f32.mxu1 %vm1005_vm1, %v981_v30  ;;  %v984_v30 = vld [vmem:[%s16532_s18 + $0x158] sm:$0xff] }
 0x14a   : > { %19413 = vst [vmem:[#allocation25_spill] sm:$0xff] %v16901_v55  ;;  %v14854_v54 = vpack.c.bf16 %v16898_v32, %v16901_v55  ;;  %v13734_v44 = vpop.f32.mrb[44].mxu0 }
 0x14b   : > { %v16912_v16 = vadd.f32 %v13734_v44, %v16559_v2  ;;  %v842_v38 = vpop.f32.mrb[45].mxu0 }
 0x14c   : > { %v16915_v14 = vadd.f32 %v16559_v2, %v842_v38  ;;  %13907 = vmatmul.mubr.msk.f32.vlgmr.msra.gmra.mrb[48].mxu1 %vm1005_vm1, %v982_v7  ;;  %14855 = vmatprep.subr.bf16.mxu1 %v14854_v54 }
 0x14d   : > { %19414 = vst [vmem:[#allocation26_spill] sm:$0xff] %v16912_v16  ;;  %14857 = vmatpush3.bf16.msra.mxu1 %v14854_v54  ;;  %13913 = vmatprep.mubr.msk.f32.mxu1 %vm1005_vm1, %v983_v5  ;;  %v986_v5 = vld [vmem:[%s16532_s18 + $0x168] sm:$0xff] }
 0x14e   : > { %19415 = vst [vmem:[#allocation27_spill] sm:$0xff] %v16915_v14  ;;  %v14858_v44 = vpack.c.bf16 %v16912_v16, %v16915_v14  ;;  %v13737_v37 = vpop.f32.mrb[46].mxu0 }
 0x14f   : > { %v16926_v38 = vadd.f32 %v13737_v37, %v16559_v2  ;;  %v852_v45 = vpop.f32.mrb[47].mxu0 }
 0x150   : > { %v16929_v7 = vadd.f32 %v16559_v2, %v852_v45  ;;  %13914 = vmatmul.mubr.msk.f32.vlgmr.msra.gmra.mrb[50].mxu1 %vm1005_vm1, %v984_v30  ;;  %14859 = vmatprep.subr.bf16.mxu1 %v14858_v44 }
 0x151   : > { %19416 = vst [vmem:[#allocation28_spill] sm:$0xff] %v16926_v38  ;;  %14861 = vmatpush3.bf16.msra.mxu1 %v14858_v44  ;;  %13920 = vmatprep.mubr.msk.f32.mxu1 %vm1005_vm1, %v985_v29  ;;  %v988_v29 = vld [vmem:[%s16532_s18 + $0x178] sm:$0xff] }
 0x152   : > { %19417 = vst [vmem:[#allocation29_spill] sm:$0xff] %v16929_v7  ;;  %v14862_v37 = vpack.c.bf16 %v16926_v38, %v16929_v7  ;;  %v13740_v11 = vpop.f32.mrb[48].mxu0 }
 0x153   : > { %v16940_v45 = vadd.f32 %v13740_v11, %v16559_v2  ;;  %v862_v59 = vpop.f32.mrb[49].mxu0 }
 0x154   : > { %v16943_v30 = vadd.f32 %v16559_v2, %v862_v59  ;;  %13921 = vmatmul.mubr.msk.f32.vlgmr.msra.gmra.mrb[52].mxu1 %vm1005_vm1, %v986_v5  ;;  %14863 = vmatprep.subr.bf16.mxu1 %v14862_v37 }
 0x155   : > { %19418 = vst [vmem:[#allocation30_spill] sm:$0xff] %v16940_v45  ;;  %14865 = vmatpush3.bf16.msra.mxu1 %v14862_v37  ;;  %13927 = vmatprep.mubr.msk.f32.mxu1 %vm1005_vm1, %v987_v39  ;;  %v990_v39 = vld [vmem:[%s16532_s18 + $0x188] sm:$0xff] }
 0x156   : > { %19419 = vst [vmem:[#allocation31_spill] sm:$0xff] %v16943_v30  ;;  %v14866_v11 = vpack.c.bf16 %v16940_v45, %v16943_v30  ;;  %v13743_v54 = vpop.f32.mrb[50].mxu0  ;;  %v991_v30 = vld [vmem:[%s16532_s18 + $0x190] sm:$0xff] }
 0x157   : > { %v16954_v59 = vadd.f32 %v13743_v54, %v16559_v2  ;;  %v872_v8 = vpop.f32.mrb[51].mxu0 }
 0x158   : > { %v16957_v5 = vadd.f32 %v16559_v2, %v872_v8  ;;  %13928 = vmatmul.mubr.msk.f32.vlgmr.msra.gmra.mrb[54].mxu1 %vm1005_vm1, %v988_v29  ;;  %14867 = vmatprep.subr.bf16.mxu1 %v14866_v11 }
 0x159   : > { %19420 = vst [vmem:[#allocation32_spill] sm:$0xff] %v16954_v59  ;;  %14869 = vmatpush3.bf16.msra.mxu1 %v14866_v11  ;;  %13934 = vmatprep.mubr.msk.f32.mxu1 %vm1005_vm1, %v989_v53  ;;  %v992_v53 = vld [vmem:[%s16532_s18 + $0x198] sm:$0xff] }
 0x15a   : > { %19421 = vst [vmem:[#allocation33_spill] sm:$0xff] %v16957_v5  ;;  %v14870_v54 = vpack.c.bf16 %v16954_v59, %v16957_v5  ;;  %v13746_v44 = vpop.f32.mrb[52].mxu0 }
 0x15b   : > { %v16968_v8 = vadd.f32 %v13746_v44, %v16559_v2  ;;  %v882_v45 = vpop.f32.mrb[53].mxu0 }
 0x15c   : > { %v16971_v29 = vadd.f32 %v16559_v2, %v882_v45  ;;  %13935 = vmatmul.mubr.msk.f32.vlgmr.msra.gmra.mrb[56].mxu1 %vm1005_vm1, %v990_v39  ;;  %14871 = vmatprep.subr.bf16.mxu1 %v14870_v54 }
 0x15d   : > { %19422 = vst [vmem:[#allocation34_spill] sm:$0xff] %v16968_v8  ;;  %14873 = vmatpush3.bf16.msra.mxu1 %v14870_v54  ;;  %13941 = vmatprep.mubr.msk.f32.mxu1 %vm1005_vm1, %v991_v30  ;;  %v994_v30 = vld [vmem:[%s16532_s18 + $0x1a8] sm:$0xff] }
 0x15e   : > { %19423 = vst [vmem:[#allocation35_spill] sm:$0xff] %v16971_v29  ;;  %v14874_v44 = vpack.c.bf16 %v16968_v8, %v16971_v29  ;;  %v13749_v37 = vpop.f32.mrb[54].mxu0  ;;  %v995_v29 = vld [vmem:[%s16532_s18 + $0x1b0] sm:$0xff] }
 0x15f   : > { %v16982_v45 = vadd.f32 %v13749_v37, %v16559_v2  ;;  %v892_v39 = vpop.f32.mrb[55].mxu0 }
 0x160   : > { %v16985_v54 = vadd.f32 %v16559_v2, %v892_v39  ;;  %13942 = vmatmul.mubr.msk.f32.vlgmr.msra.gmra.mrb[58].mxu1 %vm1005_vm1, %v992_v53  ;;  %14875 = vmatprep.subr.bf16.mxu1 %v14874_v44  ;;  %v996_v2 = vld [vmem:[%s16532_s18 + $0x1b8] sm:$0xff]  ;;  %v998_v53 = vld [vmem:[%s16532_s18 + $0x1c8] sm:$0xff]  ;;  %v1001_v39 = vld [vmem:[%s16532_s18 + $0x1e0] sm:$0xff] }
 0x161   : > { %19424 = vst [vmem:[#allocation36_spill] sm:$0xff] %v16982_v45  ;;  %14877 = vmatpush3.bf16.msra.mxu1 %v14874_v44  ;;  %13948 = vmatprep.mubr.msk.f32.mxu1 %vm1005_vm1, %v993_v22  ;;  %v997_v22 = vld [vmem:[%s16532_s18 + $0x1c0] sm:$0xff]  ;;  %v999_v44 = vld [vmem:[%s16532_s18 + $0x1d0] sm:$0xff] }
 0x162   : > { %19425 = vst [vmem:[#allocation37_spill] sm:$0xff] %v16985_v54  ;;  %v14878_v37 = vpack.c.bf16 %v16982_v45, %v16985_v54 }
 0x164   : > { %13949 = vmatmul.mubr.msk.f32.vlgmr.msra.gmra.mrb[60].mxu1 %vm1005_vm1, %v994_v30  ;;  %14879 = vmatprep.subr.bf16.mxu1 %v14878_v37  ;;  %v1003_v30 = vld [vmem:[%s16532_s18 + $0x1f0] sm:$0xff] }
 0x165   : > { %14881 = vmatpush3.bf16.msra.mxu1 %v14878_v37  ;;  %13955 = vmatprep.mubr.msk.f32.mxu1 %vm1005_vm1, %v995_v29  ;;  %v1000_v29 = vld [vmem:[%s16532_s18 + $0x1d8] sm:$0xff] }
 0x166   : > { %14883 = vmatprep.subr.bf16.mxu1 %v16642_v50 }
 0x168   : > { %13956 = vmatmul.mubr.msk.f32.vlgmr.msra.gmra.mrb[62].mxu1 %vm1005_vm1, %v996_v2 }
 0x169   : > { %14885 = vmatpush3.bf16.msra.mxu1 %v16642_v50  ;;  %13962 = vmatprep.mubr.msk.f32.mxu1 %vm1005_vm1, %v997_v22  ;;  %v1002_v50 = vld [vmem:[%s16532_s18 + $0x1e8] sm:$0xff] }
 0x16a   : > { %14887 = vmatprep.subr.bf16.mxu1 %v16668_v0 }
 0x16c   : > { %13963 = vmatmul.mubr.msk.f32.vlgmr.msra.gmra.mrb[64].mxu1 %vm1005_vm1, %v998_v53 }
 0x16d   : > { %14889 = vmatpush3.bf16.msra.mxu1 %v16668_v0  ;;  %13969 = vmatprep.mubr.msk.f32.mxu1 %vm1005_vm1, %v999_v44  ;;  %v1004_v0 = vld [vmem:[%s16532_s18 + $0x1f8] sm:$0xff] }
 0x16e   : > { %14891 = vmatprep.subr.bf16.mxu1 %v16694_v24 }
 0x170   : > { %13970 = vmatmul.mubr.msk.f32.vlgmr.msra.gmra.mrb[66].mxu1 %vm1005_vm1, %v1000_v29 }
 0x171   : > { %14893 = vmatpush3.bf16.msra.mxu1 %v16694_v24  ;;  %13976 = vmatprep.mubr.msk.f32.mxu1 %vm1005_vm1, %v1001_v39 }
 0x172   : > { %14895 = vmatprep.subr.bf16.mxu1 %v16720_v47 }
 0x174   : > { %13977 = vmatmul.mubr.msk.f32.vlgmr.msra.gmra.mrb[68].mxu1 %vm1005_vm1, %v1002_v50 }
 0x175   : > { %14897 = vmatpush3.bf16.msra.mxu1 %v16720_v47  ;;  %13983 = vmatprep.mubr.msk.f32.mxu1 %vm1005_vm1, %v1003_v30 }
 0x178   : > { %13984 = vmatmul.mubr.msk.f32.vlgmr.msra.gmra.mrb[70].mxu1 %vm1005_vm1, %v1004_v0 }
 0x1cf   : > { %v17023_v37 = vpop.f32.mrb[8].mxu1 }
 0x1d0   : > { %v1078_v2 = vpop.f32.mrb[9].mxu1 }
 0x1d1   : > { %13990 = vmatprep.mubr.msk.f32.mxu0 %vm363_vm0, %v1078_v2  ;;  %v15452_v24 = vpack.i.bf16 %v17023_v37, %v1078_v2 }
 0x1d3   : > { %15453 = vrot.lane.b32.xlu0 %v15452_v24, %s16316_s26  ;;  %v17028_v22 = vpop.f32.mrb[10].mxu1 }
 0x1d4   : > { %v1159_v53 = vpop.f32.mrb[11].mxu1 }
 0x1d5   : > { %v15457_v47 = vpack.i.bf16 %v17028_v22, %v1159_v53  ;;  %13997 = vmatprep.mubr.msk.f32.mxu1 %vm363_vm0, %v1159_v53 }
 0x1d7   : > { %15458 = vrot.lane.b32.xlu0 %v15457_v47, %s16316_s26  ;;  %v17033_v44 = vpop.f32.mrb[12].mxu1 }
 0x1d8   : > { %v17035_v29 = vpop.f32.mrb[13].mxu1 }
 0x1d9   : > { %v15462_v39 = vpack.i.bf16 %v17033_v44, %v17035_v29 }
 0x1db   : > { %15463 = vrot.lane.b32.xlu1 %v15462_v39, %s16316_s26  ;;  %v17040_v50 = vpop.f32.mrb[14].mxu1 }
 0x1dc   : > { %v17042_v30 = vpop.f32.mrb[15].mxu1 }
 0x1dd   : > { %v15467_v0 = vpack.i.bf16 %v17040_v50, %v17042_v30 }
 0x1df   : > { %15468 = vrot.lane.b32.xlu1 %v15467_v0, %s16316_s26  ;;  %v17047_v2 = vpop.f32.mrb[16].mxu1 }
 0x1e0   : > { %v17049_v24 = vpop.f32.mrb[17].mxu1 }
 0x1e1   : > { %v15472_v53 = vpack.i.bf16 %v17047_v2, %v17049_v24 }
 0x1e3   : > { %15473 = vrot.lane.b32.xlu0 %v15472_v53, %s16316_s26  ;;  %v17054_v47 = vpop.f32.mrb[18].mxu1 }
 0x1e4   : > { %v17056_v39 = vpop.f32.mrb[19].mxu1 }
 0x1e5   : > { %v15477_v11 = vpack.i.bf16 %v17054_v47, %v17056_v39 }
 0x1e7   : > { %15478 = vrot.lane.b32.xlu1 %v15477_v11, %s16316_s26  ;;  %v17061_v8 = vpop.f32.mrb[20].mxu1 }
 0x1e8   : > { %v17063_v0 = vpop.f32.mrb[21].mxu1 }
 0x1e9   : > { %v15482_v54 = vpack.i.bf16 %v17061_v8, %v17063_v0 }
 0x1eb   : > { %15483 = vrot.lane.b32.xlu0 %v15482_v54, %s16316_s26  ;;  %v17068_v45 = vpop.f32.mrb[22].mxu1 }
 0x1ec   : > { %v17070_v53 = vpop.f32.mrb[23].mxu1 }
 0x1ed   : > { %v15487_v42 = vpack.i.bf16 %v17068_v45, %v17070_v53 }
 0x1ef   : > { %15488 = vrot.lane.b32.xlu1 %v15487_v42, %s16316_s26  ;;  %v17075_v33 = vpop.f32.mrb[24].mxu1 }
 0x1f0   : > { %v17077_v11 = vpop.f32.mrb[25].mxu1 }
 0x1f1   : > { %v15492_v7 = vpack.i.bf16 %v17075_v33, %v17077_v11 }
 0x1f3   : > { %15493 = vrot.lane.b32.xlu0 %v15492_v7, %s16316_s26  ;;  %v17082_v38 = vpop.f32.mrb[26].mxu1 }
 0x1f4   : > { %19426 = vst [vmem:[#allocation38_spill] sm:$0xff] %v17082_v38  ;;  %v17084_v54 = vpop.f32.mrb[27].mxu1 }
 0x1f5   : > { %v15497_v14 = vpack.i.bf16 %v17082_v38, %v17084_v54 }
 0x1f7   : > { %15498 = vrot.lane.b32.xlu1 %v15497_v14, %s16316_s26  ;;  %v17089_v16 = vpop.f32.mrb[28].mxu1 }
 0x1f8   : > { %19427 = vst [vmem:[#allocation39_spill] sm:$0xff] %v17089_v16  ;;  %v17091_v42 = vpop.f32.mrb[29].mxu1 }
 0x1f9   : > { %19428 = vst [vmem:[#allocation40_spill] sm:$0xff] %v17091_v42  ;;  %v15502_v55 = vpack.i.bf16 %v17089_v16, %v17091_v42 }
 0x1fb   : > { %15503 = vrot.lane.b32.xlu0 %v15502_v55, %s16316_s26  ;;  %v17096_v32 = vpop.f32.mrb[30].mxu1 }
 0x1fc   : > { %19429 = vst [vmem:[#allocation41_spill] sm:$0xff] %v17096_v32  ;;  %v17098_v7 = vpop.f32.mrb[31].mxu1 }
 0x1fd   : > { %19430 = vst [vmem:[#allocation42_spill] sm:$0xff] %v17098_v7  ;;  %v15507_v13 = vpack.i.bf16 %v17096_v32, %v17098_v7 }
 0x1ff   : > { %15508 = vrot.lane.b32.xlu1 %v15507_v13, %s16316_s26  ;;  %v17103_v9 = vpop.f32.mrb[32].mxu1 }
 0x200   : > { %19431 = vst [vmem:[#allocation43_spill] sm:$0xff] %v17103_v9  ;;  %v17105_v14 = vpop.f32.mrb[33].mxu1 }
 0x201   : > { %19432 = vst [vmem:[#allocation44_spill] sm:$0xff] %v17105_v14  ;;  %v15512_v38 = vpack.i.bf16 %v17103_v9, %v17105_v14 }
 0x203   : > { %15513 = vrot.lane.b32.xlu0 %v15512_v38, %s16316_s26  ;;  %v17110_v16 = vpop.f32.mrb[34].mxu1 }
 0x204   : > { %19433 = vst [vmem:[#allocation45_spill] sm:$0xff] %v17110_v16  ;;  %v17112_v55 = vpop.f32.mrb[35].mxu1 }
 0x205   : > { %19434 = vst [vmem:[#allocation46_spill] sm:$0xff] %v17112_v55  ;;  %v15517_v61 = vpack.i.bf16 %v17110_v16, %v17112_v55 }
 0x207   : > { %15518 = vrot.lane.b32.xlu1 %v15517_v61, %s16316_s26  ;;  %v17117_v32 = vpop.f32.mrb[36].mxu1 }
 0x208   : > { %19435 = vst [vmem:[#allocation47_spill] sm:$0xff] %v17117_v32  ;;  %v17119_v13 = vpop.f32.mrb[37].mxu1 }
 0x209   : > { %19436 = vst [vmem:[#allocation48_spill] sm:$0xff] %v17119_v13  ;;  %v15522_v7 = vpack.i.bf16 %v17117_v32, %v17119_v13 }
 0x20b   : > { %15523 = vrot.lane.b32.xlu0 %v15522_v7, %s16316_s26  ;;  %v17124_v9 = vpop.f32.mrb[38].mxu1 }
 0x20c   : > { %19437 = vst [vmem:[#allocation49_spill] sm:$0xff] %v17124_v9  ;;  %v17126_v38 = vpop.f32.mrb[39].mxu1 }
 0x20d   : > { %19438 = vst [vmem:[#allocation50_spill] sm:$0xff] %v17126_v38  ;;  %v15527_v14 = vpack.i.bf16 %v17124_v9, %v17126_v38 }
 0x20f   : > { %15528 = vrot.lane.b32.xlu1 %v15527_v14, %s16316_s26  ;;  %v17131_v16 = vpop.f32.mrb[40].mxu1 }
 0x210   : > { %19439 = vst [vmem:[#allocation51_spill] sm:$0xff] %v17131_v16  ;;  %v17133_v61 = vpop.f32.mrb[41].mxu1 }
 0x211   : > { %19440 = vst [vmem:[#allocation52_spill] sm:$0xff] %v17133_v61  ;;  %v15532_v55 = vpack.i.bf16 %v17131_v16, %v17133_v61 }
 0x213   : > { %15533 = vrot.lane.b32.xlu0 %v15532_v55, %s16316_s26  ;;  %v17138_v32 = vpop.f32.mrb[42].mxu1 }
 0x214   : > { %19441 = vst [vmem:[#allocation53_spill] sm:$0xff] %v17138_v32  ;;  %v17140_v7 = vpop.f32.mrb[43].mxu1 }
 0x215   : > { %19442 = vst [vmem:[#allocation54_spill] sm:$0xff] %v17140_v7  ;;  %v15537_v13 = vpack.i.bf16 %v17138_v32, %v17140_v7 }
 0x217   : > { %15538 = vrot.lane.b32.xlu1 %v15537_v13, %s16316_s26  ;;  %v17145_v9 = vpop.f32.mrb[44].mxu1 }
 0x218   : > { %19443 = vst [vmem:[#allocation55_spill] sm:$0xff] %v17145_v9  ;;  %v17147_v14 = vpop.f32.mrb[45].mxu1 }
 0x219   : > { %19444 = vst [vmem:[#allocation56_spill] sm:$0xff] %v17147_v14  ;;  %v15542_v38 = vpack.i.bf16 %v17145_v9, %v17147_v14 }
 0x21b   : > { %15543 = vrot.lane.b32.xlu0 %v15542_v38, %s16316_s26  ;;  %v17152_v16 = vpop.f32.mrb[46].mxu1 }
 0x21c   : > { %19445 = vst [vmem:[#allocation57_spill] sm:$0xff] %v17152_v16  ;;  %v17154_v55 = vpop.f32.mrb[47].mxu1 }
 0x21d   : > { %19446 = vst [vmem:[#allocation58_spill] sm:$0xff] %v17154_v55  ;;  %v15547_v61 = vpack.i.bf16 %v17152_v16, %v17154_v55 }
 0x21f   : > { %15548 = vrot.lane.b32.xlu1 %v15547_v61, %s16316_s26  ;;  %v17159_v32 = vpop.f32.mrb[48].mxu1 }
 0x220   : > { %19447 = vst [vmem:[#allocation59_spill] sm:$0xff] %v17159_v32  ;;  %v17161_v13 = vpop.f32.mrb[49].mxu1 }
 0x221   : > { %19448 = vst [vmem:[#allocation60_spill] sm:$0xff] %v17161_v13  ;;  %v15552_v7 = vpack.i.bf16 %v17159_v32, %v17161_v13 }
 0x223   : > { %15553 = vrot.lane.b32.xlu0 %v15552_v7, %s16316_s26  ;;  %v17166_v9 = vpop.f32.mrb[50].mxu1 }
 0x224   : > { %19449 = vst [vmem:[#allocation61_spill] sm:$0xff] %v17166_v9  ;;  %v17168_v38 = vpop.f32.mrb[51].mxu1 }
 0x225   : > { %19450 = vst [vmem:[#allocation62_spill] sm:$0xff] %v17168_v38  ;;  %v15557_v14 = vpack.i.bf16 %v17166_v9, %v17168_v38 }
 0x227   : > { %15558 = vrot.lane.b32.xlu1 %v15557_v14, %s16316_s26  ;;  %v17173_v16 = vpop.f32.mrb[52].mxu1 }
 0x228   : > { %19451 = vst [vmem:[#allocation63_spill] sm:$0xff] %v17173_v16  ;;  %v17175_v61 = vpop.f32.mrb[53].mxu1 }
 0x229   : > { %19452 = vst [vmem:[#allocation64_spill] sm:$0xff] %v17175_v61  ;;  %v15562_v55 = vpack.i.bf16 %v17173_v16, %v17175_v61 }
 0x22b   : > { %15563 = vrot.lane.b32.xlu0 %v15562_v55, %s16316_s26  ;;  %v17180_v32 = vpop.f32.mrb[54].mxu1 }
 0x22c   : > { %19453 = vst [vmem:[#allocation65_spill] sm:$0xff] %v17180_v32  ;;  %v17182_v7 = vpop.f32.mrb[55].mxu1 }
 0x22d   : > { %19454 = vst [vmem:[#allocation66_spill] sm:$0xff] %v17182_v7  ;;  %v15567_v13 = vpack.i.bf16 %v17180_v32, %v17182_v7 }
 0x22f   : > { %15568 = vrot.lane.b32.xlu1 %v15567_v13, %s16316_s26  ;;  %v17187_v9 = vpop.f32.mrb[56].mxu1 }
 0x230   : > { %19455 = vst [vmem:[#allocation67_spill] sm:$0xff] %v17187_v9  ;;  %v17189_v14 = vpop.f32.mrb[57].mxu1 }
 0x231   : > { %19456 = vst [vmem:[#allocation68_spill] sm:$0xff] %v17189_v14  ;;  %v15572_v38 = vpack.i.bf16 %v17187_v9, %v17189_v14 }
 0x233   : > { %15573 = vrot.lane.b32.xlu0 %v15572_v38, %s16316_s26  ;;  %v17194_v16 = vpop.f32.mrb[58].mxu1 }
 0x234   : > { %19457 = vst [vmem:[#allocation69_spill] sm:$0xff] %v17194_v16  ;;  %v17196_v55 = vpop.f32.mrb[59].mxu1 }
 0x235   : > { %19458 = vst [vmem:[#allocation70_spill] sm:$0xff] %v17196_v55  ;;  %v15577_v61 = vpack.i.bf16 %v17194_v16, %v17196_v55 }
 0x237   : > { %15578 = vrot.lane.b32.xlu1 %v15577_v61, %s16316_s26  ;;  %v17201_v32 = vpop.f32.mrb[60].mxu1 }
 0x238   : > { %19459 = vst [vmem:[#allocation71_spill] sm:$0xff] %v17201_v32  ;;  %v17203_v13 = vpop.f32.mrb[61].mxu1 }
 0x239   : > { %19460 = vst [vmem:[#allocation72_spill] sm:$0xff] %v17203_v13  ;;  %v15582_v7 = vpack.i.bf16 %v17201_v32, %v17203_v13 }
 0x23b   : > { %15583 = vrot.lane.b32.xlu0 %v15582_v7, %s16316_s26  ;;  %v17208_v9 = vpop.f32.mrb[62].mxu1 }
 0x23c   : > { %19461 = vst [vmem:[#allocation73_spill] sm:$0xff] %v17208_v9  ;;  %v17210_v38 = vpop.f32.mrb[63].mxu1 }
 0x23d   : > { %19462 = vst [vmem:[#allocation74_spill] sm:$0xff] %v17210_v38  ;;  %v15587_v14 = vpack.i.bf16 %v17208_v9, %v17210_v38 }
 0x23f   : > { %15588 = vrot.lane.b32.xlu1 %v15587_v14, %s16316_s26  ;;  %v17215_v16 = vpop.f32.mrb[64].mxu1 }
 0x240   : > { %19463 = vst [vmem:[#allocation75_spill] sm:$0xff] %v17215_v16  ;;  %v17217_v61 = vpop.f32.mrb[65].mxu1 }
 0x241   : > { %19464 = vst [vmem:[#allocation76_spill] sm:$0xff] %v17217_v61  ;;  %v15592_v55 = vpack.i.bf16 %v17215_v16, %v17217_v61 }
 0x243   : > { %15593 = vrot.lane.b32.xlu0 %v15592_v55, %s16316_s26  ;;  %v17222_v32 = vpop.f32.mrb[66].mxu1 }
 0x244   : > { %19465 = vst [vmem:[#allocation77_spill] sm:$0xff] %v17222_v32  ;;  %v17224_v7 = vpop.f32.mrb[67].mxu1 }
 0x245   : > { %19466 = vst [vmem:[#allocation78_spill] sm:$0xff] %v17224_v7  ;;  %v15597_v13 = vpack.i.bf16 %v17222_v32, %v17224_v7  ;;  %v15454_v41 = vpop.permute.xlu0 %15453 }
 0x246   : > { %v15456_v9 = vunpack.i.h.bf16 %v15454_v41  ;;  %v15455_v38 = vunpack.i.l.bf16 %v15454_v41 }
 0x247   : > { %15598 = vrot.lane.b32.xlu1 %v15597_v13, %s16316_s26  ;;  %v17229_v14 = vpop.f32.mrb[68].mxu1 }
 0x248   : > { %19467 = vst [vmem:[#allocation79_spill] sm:$0xff] %v17229_v14  ;;  %v14898_v55 = vpack.c.bf16 %v15456_v9, %v15455_v38  ;;  %v17237_v61 = vpop.f32.mrb[69].mxu1 }
 0x249   : > { %19470 = vst [vmem:[#allocation80_spill] sm:$0xff] %v17237_v61  ;;  %v15602_v5 = vpack.i.bf16 %v17229_v14, %v17237_v61  ;;  %v15459_v32 = vpop.permute.xlu0 %15458 }
 0x24a   : > { %v15461_v7 = vunpack.i.h.bf16 %v15459_v32  ;;  %v15460_v59 = vunpack.i.l.bf16 %v15459_v32  ;;  %14900 = vmatprep.subr.msk.bf16.mxu0 %vm17233_vm2, %v14898_v55  ;;  %v19471_v32 = vpack.i.bf16 %v16598_v26, %v16601_v28  ;;  %v19472_v28 = vpack.i.bf16 %v16684_v17, %v16687_v21 }
 0x24b   : > { %14903 = vmatpush3.bf16.xpose.msk.msra.mxu0 %vm17233_vm2, %v14898_v55  ;;  %15603 = vrot.lane.b32.xlu0 %v15602_v5, %s16316_s26  ;;  %v17246_v41 = vpop.f32.mrb[70].mxu1 }
 0x24c   : > { %v14904_v13 = vpack.c.bf16 %v15461_v7, %v15460_v59  ;;  %v17248_v9 = vpop.f32.mrb[71].mxu1 }
 0x24d   : > { %v15607_v38 = vpack.i.bf16 %v17246_v41, %v17248_v9  ;;  %v15464_v14 = vpop.permute.xlu1 %15463 }
 0x24e   : > { %v15466_v61 = vunpack.i.h.bf16 %v15464_v14  ;;  %v15465_v42 = vunpack.i.l.bf16 %v15464_v14  ;;  %14906 = vmatprep.subr.msk.bf16.mxu1 %vm17233_vm2, %v14904_v13 }
 0x24f   : > { %14909 = vmatpush3.bf16.xpose.msk.msra.mxu1 %vm17233_vm2, %v14904_v13  ;;  %15623 = vrot.lane.b32.xlu0 %v19471_v32, %s16317_s28  ;;  %v19492_v13 = vld [vmem:[#allocation20_spill] sm:$0xff] }
 0x250   : > { %v14910_v59 = vpack.c.bf16 %v15466_v61, %v15465_v42  ;;  %15608 = vrot.lane.b32.xlu1 %v15607_v38, %s16316_s26  ;;  %v19473_v42 = vpack.i.bf16 %v16562_v4, %v16565_v6  ;;  %v19474_v4 = vpack.i.bf16 %v16584_v18, %v16587_v20  ;;  %v19475_v6 = vpack.i.bf16 %v16572_v10, %v16575_v12  ;;  %v19493_v38 = vld [vmem:[#allocation21_spill] sm:$0xff] }
 0x251   : > { %v15469_v5 = vpop.permute.xlu1 %15468  ;;  %v19476_v10 = vpack.i.bf16 %v16612_v34, %v16615_v36  ;;  %v19477_v12 = vpack.i.bf16 %v16632_v46, %v16635_v48  ;;  %v19478_v36 = vpack.i.bf16 %v16658_v60, %v16661_v62  ;;  %v19479_v46 = vpack.i.bf16 %v16730_v58, %v16733_v1 }
 0x252   : > { %v15471_v7 = vunpack.i.h.bf16 %v15469_v5  ;;  %v15470_v55 = vunpack.i.l.bf16 %v15469_v5  ;;  %13991 = vmatmul.mubr.msk.f32.vlgmr.msra.gmra.mrb[56].mxu0 %vm363_vm0, %v17023_v37  ;;  %14912 = vmatprep.subr.msk.bf16.mxu0 %vm17233_vm2, %v14910_v59  ;;  %v19480_v62 = vpack.i.bf16 %v16710_v40, %v16713_v43  ;;  %v19481_v58 = vpack.i.bf16 %v16758_v51, %v16761_v56 }
 0x253   : > { %14915 = vmatpush3.bf16.xpose.msk.msra.mxu0 %vm17233_vm2, %v14910_v59  ;;  %14004 = vmatprep.mubr.msk.f32.mxu0 %vm363_vm0, %v17035_v29  ;;  %v19482_v43 = vpack.i.bf16 %v16744_v19, %v16747_v27  ;;  %v19483_v51 = vpack.i.bf16 %v16786_v25, %v16789_v57  ;;  %v19484_v27 = vpack.i.bf16 %v16772_v15, %v16775_v31 }
 0x254   : > { %v14916_v26 = vpack.c.bf16 %v15471_v7, %v15470_v55  ;;  %15633 = vrot.lane.b32.xlu0 %v19472_v28, %s16317_s28  ;;  %15613 = vrot.lane.b32.xlu1 %v19473_v42, %s16317_s28  ;;  %v19485_v25 = vpack.i.bf16 %v16814_v63, %v16817_v3  ;;  %v19486_v31 = vpack.i.bf16 %v16800_v23, %v16803_v35  ;;  %v19489_v35 = vld [vmem:[#allocation32_spill] sm:$0xff]  ;;  %v19495_v7 = vld [vmem:[#allocation38_spill] sm:$0xff]  ;;  %v19498_v42 = vld [vmem:[#allocation19_spill] sm:$0xff] }
 0x255   : > { %v15474_v37 = vpop.permute.xlu0 %15473  ;;  %v19487_v63 = vpack.i.bf16 %v16842_v52, %v16845_v49  ;;  %v19490_v52 = vld [vmem:[#allocation33_spill] sm:$0xff]  ;;  %v19494_v32 = vpack.i.bf16 %v19492_v13, %v19493_v38  ;;  %v19496_v55 = vld [vmem:[#allocation42_spill] sm:$0xff] }
 0x256   : > { %v15476_v61 = vunpack.i.h.bf16 %v15474_v37  ;;  %v15475_v14 = vunpack.i.l.bf16 %v15474_v37  ;;  %13998 = vmatmul.mubr.msk.f32.vlgmr.msra.gmra.mrb[72].mxu1 %vm363_vm0, %v17028_v22  ;;  %14918 = vmatprep.subr.msk.bf16.mxu1 %vm17233_vm2, %v14916_v26  ;;  %v19491_v49 = vpack.i.bf16 %v19489_v35, %v19490_v52  ;;  %v19497_v28 = vld [vmem:[#allocation18_spill] sm:$0xff]  ;;  %v19527_v35 = vld [vmem:[#allocation52_spill] sm:$0xff] }
 0x257   : > { %14921 = vmatpush3.bf16.xpose.msk.msra.mxu1 %vm17233_vm2, %v14916_v26  ;;  %14011 = vmatprep.mubr.msk.f32.mxu1 %vm363_vm0, %v17042_v30  ;;  %v19499_v37 = vpack.i.bf16 %v19497_v28, %v19498_v42  ;;  %v19531_v28 = vld [vmem:[#allocation56_spill] sm:$0xff] }
 0x258   : > { %v14922_v17 = vpack.c.bf16 %v15476_v61, %v15475_v14  ;;  %15643 = vrot.lane.b32.xlu0 %v19474_v4, %s16317_s28  ;;  %15618 = vrot.lane.b32.xlu1 %v19475_v6, %s16317_s28  ;;  %v19500_v61 = vld [vmem:[#allocation24_spill] sm:$0xff]  ;;  %v19501_v14 = vld [vmem:[#allocation25_spill] sm:$0xff] }
 0x259   : > { %v15479_v21 = vpop.permute.xlu1 %15478 }
 0x25a   : > { %v15481_v22 = vunpack.i.h.bf16 %v15479_v21  ;;  %v15480_v29 = vunpack.i.l.bf16 %v15479_v21  ;;  %14005 = vmatmul.mubr.msk.f32.vlgmr.msra.gmra.mrb[58].mxu0 %vm363_vm0, %v17033_v44  ;;  %14924 = vmatprep.subr.msk.bf16.mxu0 %vm17233_vm2, %v14922_v17 }
 0x25b   : > { %14927 = vmatpush3.bf16.xpose.msk.msra.mxu0 %vm17233_vm2, %v14922_v17  ;;  %14018 = vmatprep.mubr.msk.f32.mxu0 %vm363_vm0, %v17049_v24  ;;  %v19502_v17 = vpack.i.bf16 %v19500_v61, %v19501_v14 }
 0x25c   : > { %v14928_v18 = vpack.c.bf16 %v15481_v22, %v15480_v29  ;;  %15653 = vrot.lane.b32.xlu0 %v19476_v10, %s16317_s28  ;;  %15628 = vrot.lane.b32.xlu1 %v19477_v12, %s16317_s28  ;;  %v19503_v22 = vld [vmem:[#allocation39_spill] sm:$0xff]  ;;  %v19504_v29 = vld [vmem:[#allocation44_spill] sm:$0xff]  ;;  %v19505_v10 = vld [vmem:[#allocation26_spill] sm:$0xff] }
 0x25d   : > { %v15484_v20 = vpop.permute.xlu0 %15483  ;;  %v19506_v12 = vld [vmem:[#allocation27_spill] sm:$0xff] }
 0x25e   : > { %v15486_v44 = vunpack.i.h.bf16 %v15484_v20  ;;  %v15485_v30 = vunpack.i.l.bf16 %v15484_v20  ;;  %14012 = vmatmul.mubr.msk.f32.vlgmr.msra.gmra.mrb[74].mxu1 %vm363_vm0, %v17040_v50  ;;  %14930 = vmatprep.subr.msk.bf16.mxu1 %vm17233_vm2, %v14928_v18  ;;  %v19507_v20 = vpack.i.bf16 %v19505_v10, %v19506_v12  ;;  %v19535_v10 = vld [vmem:[#allocation60_spill] sm:$0xff] }
 0x25f   : > { %14933 = vmatpush3.bf16.xpose.msk.msra.mxu1 %vm17233_vm2, %v14928_v18  ;;  %14025 = vmatprep.mubr.msk.f32.mxu1 %vm363_vm0, %v17056_v39 }
 0x260   : > { %v14934_v34 = vpack.c.bf16 %v15486_v44, %v15485_v30  ;;  %15663 = vrot.lane.b32.xlu0 %v19478_v36, %s16317_s28  ;;  %15638 = vrot.lane.b32.xlu1 %v19479_v46, %s16317_s28  ;;  %v19508_v44 = vld [vmem:[#allocation28_spill] sm:$0xff]  ;;  %v19509_v30 = vld [vmem:[#allocation29_spill] sm:$0xff] }
 0x261   : > { %v15489_v48 = vpop.permute.xlu1 %15488 }
 0x262   : > { %v15491_v50 = vunpack.i.h.bf16 %v15489_v48  ;;  %v15490_v24 = vunpack.i.l.bf16 %v15489_v48  ;;  %14019 = vmatmul.mubr.msk.f32.vlgmr.msra.gmra.mrb[60].mxu0 %vm363_vm0, %v17047_v2  ;;  %14936 = vmatprep.subr.msk.bf16.mxu0 %vm17233_vm2, %v14934_v34 }
 0x263   : > { %14939 = vmatpush3.bf16.xpose.msk.msra.mxu0 %vm17233_vm2, %v14934_v34  ;;  %14032 = vmatprep.mubr.msk.f32.mxu0 %vm363_vm0, %v17063_v0  ;;  %v19510_v34 = vpack.i.bf16 %v19508_v44, %v19509_v30 }
 0x264   : > { %v14940_v60 = vpack.c.bf16 %v15491_v50, %v15490_v24  ;;  %15673 = vrot.lane.b32.xlu0 %v19480_v62, %s16317_s28  ;;  %15648 = vrot.lane.b32.xlu1 %v19481_v58, %s16317_s28  ;;  %v19511_v50 = vld [vmem:[#allocation41_spill] sm:$0xff]  ;;  %v19512_v24 = vld [vmem:[#allocation46_spill] sm:$0xff]  ;;  %v19513_v62 = vld [vmem:[#allocation16_spill] sm:$0xff] }
 0x265   : > { %v15494_v1 = vpop.permute.xlu0 %15493  ;;  %v19514_v58 = vld [vmem:[#allocation17_spill] sm:$0xff] }
 0x266   : > { %v15496_v2 = vunpack.i.h.bf16 %v15494_v1  ;;  %v15495_v39 = vunpack.i.l.bf16 %v15494_v1  ;;  %14026 = vmatmul.mubr.msk.f32.vlgmr.msra.gmra.mrb[76].mxu1 %vm363_vm0, %v17054_v47  ;;  %14942 = vmatprep.subr.msk.bf16.mxu1 %vm17233_vm2, %v14940_v60  ;;  %v19515_v1 = vpack.i.bf16 %v19513_v62, %v19514_v58  ;;  %v19539_v62 = vld [vmem:[#allocation64_spill] sm:$0xff] }
 0x267   : > { %14945 = vmatpush3.bf16.xpose.msk.msra.mxu1 %vm17233_vm2, %v14940_v60  ;;  %14039 = vmatprep.mubr.msk.f32.mxu1 %vm363_vm0, %v17070_v53 }
 0x268   : > { %v14946_v40 = vpack.c.bf16 %v15496_v2, %v15495_v39  ;;  %15683 = vrot.lane.b32.xlu0 %v19482_v43, %s16317_s28  ;;  %15658 = vrot.lane.b32.xlu1 %v19483_v51, %s16317_s28  ;;  %v19516_v43 = vld [vmem:[#allocation43_spill] sm:$0xff]  ;;  %v19517_v51 = vld [vmem:[#allocation48_spill] sm:$0xff] }
 0x269   : > { %v15499_v56 = vpop.permute.xlu1 %15498 }
 0x26a   : > { %v15501_v47 = vunpack.i.h.bf16 %v15499_v56  ;;  %v15500_v0 = vunpack.i.l.bf16 %v15499_v56  ;;  %14033 = vmatmul.mubr.msk.f32.vlgmr.msra.gmra.mrb[62].mxu0 %vm363_vm0, %v17061_v8  ;;  %14948 = vmatprep.subr.msk.bf16.mxu0 %vm17233_vm2, %v14946_v40 }
 0x26b   : > { %14951 = vmatpush3.bf16.xpose.msk.msra.mxu0 %vm17233_vm2, %v14946_v40  ;;  %14046 = vmatprep.mubr.msk.f32.mxu0 %vm363_vm0, %v17077_v11 }
 0x26c   : > { %v14952_v19 = vpack.c.bf16 %v15501_v47, %v15500_v0  ;;  %15693 = vrot.lane.b32.xlu0 %v19484_v27, %s16317_s28  ;;  %15668 = vrot.lane.b32.xlu1 %v19485_v25, %s16317_s28  ;;  %v19518_v47 = vld [vmem:[#allocation22_spill] sm:$0xff]  ;;  %v19519_v0 = vld [vmem:[#allocation23_spill] sm:$0xff] }
 0x26d   : > { %v15504_v57 = vpop.permute.xlu0 %15503 }
 0x26e   : > { %v15506_v8 = vunpack.i.h.bf16 %v15504_v57  ;;  %v15505_v53 = vunpack.i.l.bf16 %v15504_v57  ;;  %14040 = vmatmul.mubr.msk.f32.vlgmr.msra.gmra.mrb[78].mxu1 %vm363_vm0, %v17068_v45  ;;  %14954 = vmatprep.subr.msk.bf16.mxu1 %vm17233_vm2, %v14952_v19 }
 0x26f   : > { %14957 = vmatpush3.bf16.xpose.msk.msra.mxu1 %vm17233_vm2, %v14952_v19  ;;  %14053 = vmatprep.mubr.msk.f32.mxu1 %vm363_vm0, %v17084_v54  ;;  %v19488_v54 = vld [vmem:[#allocation40_spill] sm:$0xff]  ;;  %v19520_v19 = vpack.i.bf16 %v19518_v47, %v19519_v0 }
 0x270   : > { %v14958_v15 = vpack.c.bf16 %v15506_v8, %v15505_v53  ;;  %15703 = vrot.lane.b32.xlu0 %v19486_v31, %s16317_s28  ;;  %15678 = vrot.lane.b32.xlu1 %v19487_v63, %s16317_s28  ;;  %v19521_v8 = vld [vmem:[#allocation45_spill] sm:$0xff]  ;;  %v19522_v53 = vld [vmem:[#allocation50_spill] sm:$0xff]  ;;  %v19524_v63 = vld [vmem:[#allocation31_spill] sm:$0xff] }
 0x271   : > { %v15509_v3 = vpop.permute.xlu1 %15508  ;;  %v19523_v31 = vld [vmem:[#allocation30_spill] sm:$0xff] }
 0x272   : > { %v15511_v45 = vunpack.i.h.bf16 %v15509_v3  ;;  %v15510_v11 = vunpack.i.l.bf16 %v15509_v3  ;;  %14047 = vmatmul.mubr.msk.f32.vlgmr.msra.gmra.mrb[64].mxu0 %vm363_vm0, %v17075_v33  ;;  %14960 = vmatprep.subr.msk.bf16.mxu0 %vm17233_vm2, %v14958_v15  ;;  %v19525_v3 = vpack.i.bf16 %v19523_v31, %v19524_v63  ;;  %v19545_v31 = vld [vmem:[#allocation70_spill] sm:$0xff] }
 0x273   : > { %14963 = vmatpush3.bf16.xpose.msk.msra.mxu0 %vm17233_vm2, %v14958_v15  ;;  %14060 = vmatprep.mubr.msk.f32.mxu0 %vm363_vm0, %v19488_v54 }
 0x274   : > { %v14964_v23 = vpack.c.bf16 %v15511_v45, %v15510_v11  ;;  %15718 = vrot.lane.b32.xlu0 %v19491_v49, %s16317_s28  ;;  %15688 = vrot.lane.b32.xlu1 %v19494_v32, %s16317_s28  ;;  %v19528_v32 = vld [vmem:[#allocation49_spill] sm:$0xff] }
 0x275   : > { %v15514_v33 = vpop.permute.xlu0 %15513 }
 0x276   : > { %v15516_v59 = vunpack.i.h.bf16 %v15514_v33  ;;  %v15515_v5 = vunpack.i.l.bf16 %v15514_v33  ;;  %14054 = vmatmul.mubr.msk.f32.vlgmr.msra.gmra.mrb[80].mxu1 %vm363_vm0, %v19495_v7  ;;  %14966 = vmatprep.subr.msk.bf16.mxu1 %vm17233_vm2, %v14964_v23  ;;  %v19529_v33 = vld [vmem:[#allocation54_spill] sm:$0xff] }
 0x277   : > { %14969 = vmatpush3.bf16.xpose.msk.msra.mxu1 %vm17233_vm2, %v14964_v23  ;;  %14067 = vmatprep.mubr.msk.f32.mxu1 %vm363_vm0, %v19496_v55  ;;  %v19526_v23 = vld [vmem:[#allocation47_spill] sm:$0xff] }
 0x278   : > { %v14970_v26 = vpack.c.bf16 %v15516_v59, %v15515_v5  ;;  %15723 = vrot.lane.b32.xlu0 %v19499_v37, %s16317_s28  ;;  %15698 = vrot.lane.b32.xlu1 %v19502_v17, %s16317_s28  ;;  %v19532_v17 = vld [vmem:[#allocation53_spill] sm:$0xff] }
 0x279   : > { %v15519_v4 = vpop.permute.xlu1 %15518 }
 0x27a   : > { %v15521_v6 = vunpack.i.h.bf16 %v15519_v4  ;;  %v15520_v21 = vunpack.i.l.bf16 %v15519_v4  ;;  %14061 = vmatmul.mubr.msk.f32.vlgmr.msra.gmra.mrb[66].mxu0 %vm363_vm0, %v19503_v22  ;;  %14972 = vmatprep.subr.msk.bf16.mxu0 %vm17233_vm2, %v14970_v26  ;;  %v19533_v4 = vld [vmem:[#allocation58_spill] sm:$0xff] }
 0x27b   : > { %14975 = vmatpush3.bf16.xpose.msk.msra.mxu0 %vm17233_vm2, %v14970_v26  ;;  %14074 = vmatprep.mubr.msk.f32.mxu0 %vm363_vm0, %v19504_v29  ;;  %v19530_v26 = vld [vmem:[#allocation51_spill] sm:$0xff] }
 0x27c   : > { %v14976_v18 = vpack.c.bf16 %v15521_v6, %v15520_v21  ;;  %15733 = vrot.lane.b32.xlu0 %v19507_v20, %s16317_s28  ;;  %15708 = vrot.lane.b32.xlu1 %v19510_v34, %s16317_s28  ;;  %v19536_v34 = vld [vmem:[#allocation57_spill] sm:$0xff] }
 0x27d   : > { %v15524_v36 = vpop.permute.xlu0 %15523 }
 0x27e   : > { %v15526_v46 = vunpack.i.h.bf16 %v15524_v36  ;;  %v15525_v48 = vunpack.i.l.bf16 %v15524_v36  ;;  %14068 = vmatmul.mubr.msk.f32.vlgmr.msra.gmra.mrb[82].mxu1 %vm363_vm0, %v19511_v50  ;;  %14978 = vmatprep.subr.msk.bf16.mxu1 %vm17233_vm2, %v14976_v18  ;;  %v19537_v36 = vld [vmem:[#allocation62_spill] sm:$0xff] }
 0x27f   : > { %14981 = vmatpush3.bf16.xpose.msk.msra.mxu1 %vm17233_vm2, %v14976_v18  ;;  %14081 = vmatprep.mubr.msk.f32.mxu1 %vm363_vm0, %v19512_v24  ;;  %v19534_v18 = vld [vmem:[#allocation55_spill] sm:$0xff] }
 0x280   : > { %v14982_v60 = vpack.c.bf16 %v15526_v46, %v15525_v48  ;;  %15713 = vrot.lane.b32.xlu1 %v19515_v1, %s16317_s28 }
 0x281   : > { %v15529_v2 = vpop.permute.xlu1 %15528 }
 0x282   : > { %v15531_v39 = vunpack.i.h.bf16 %v15529_v2  ;;  %v15530_v40 = vunpack.i.l.bf16 %v15529_v2  ;;  %14075 = vmatmul.mubr.msk.f32.vlgmr.msra.gmra.mrb[68].mxu0 %vm363_vm0, %v19516_v43  ;;  %14984 = vmatprep.subr.msk.bf16.mxu0 %vm17233_vm2, %v14982_v60  ;;  %v19541_v43 = vld [vmem:[#allocation66_spill] sm:$0xff] }
 0x283   : > { %14987 = vmatpush3.bf16.xpose.msk.msra.mxu0 %vm17233_vm2, %v14982_v60  ;;  %14088 = vmatprep.mubr.msk.f32.mxu0 %vm363_vm0, %v19517_v51  ;;  %v19538_v60 = vld [vmem:[#allocation59_spill] sm:$0xff] }
 0x284   : > { %v14988_v56 = vpack.c.bf16 %v15531_v39, %v15530_v40  ;;  %15728 = vrot.lane.b32.xlu1 %v19520_v19, %s16317_s28  ;;  %v19540_v40 = vld [vmem:[#allocation61_spill] sm:$0xff]  ;;  %v19542_v19 = vld [vmem:[#allocation63_spill] sm:$0xff] }
 0x285   : > { %v15534_v27 = vpop.permute.xlu0 %15533 }
 0x286   : > { %v15536_v25 = vunpack.i.h.bf16 %v15534_v27  ;;  %v15535_v57 = vunpack.i.l.bf16 %v15534_v27  ;;  %14082 = vmatmul.mubr.msk.f32.vlgmr.msra.gmra.mrb[84].mxu1 %vm363_vm0, %v19521_v8  ;;  %14990 = vmatprep.subr.msk.bf16.mxu1 %vm17233_vm2, %v14988_v56  ;;  %v19543_v27 = vld [vmem:[#allocation68_spill] sm:$0xff] }
 0x287   : > { %14993 = vmatpush3.bf16.xpose.msk.msra.mxu1 %vm17233_vm2, %v14988_v56  ;;  %14095 = vmatprep.mubr.msk.f32.mxu1 %vm363_vm0, %v19522_v53 }
 0x288   : > { %v14994_v15 = vpack.c.bf16 %v15536_v25, %v15535_v57  ;;  %15738 = vrot.lane.b32.xlu1 %v19525_v3, %s16317_s28 }
 0x289   : > { %v15539_v45 = vpop.permute.xlu1 %15538 }
 0x28a   : > { %v15541_v11 = vunpack.i.h.bf16 %v15539_v45  ;;  %v15540_v54 = vunpack.i.l.bf16 %v15539_v45  ;;  %14089 = vmatmul.mubr.msk.f32.vlgmr.msra.gmra.mrb[70].mxu0 %vm363_vm0, %v19526_v23  ;;  %14996 = vmatprep.subr.msk.bf16.mxu0 %vm17233_vm2, %v14994_v15  ;;  %v19547_v23 = vld [vmem:[#allocation72_spill] sm:$0xff] }
 0x28b   : > { %14999 = vmatpush3.bf16.xpose.msk.msra.mxu0 %vm17233_vm2, %v14994_v15  ;;  %14102 = vmatprep.mubr.msk.f32.mxu0 %vm363_vm0, %v19527_v35  ;;  %v19544_v15 = vld [vmem:[#allocation65_spill] sm:$0xff] }
 0x28c   : > { %v15000_v52 = vpack.c.bf16 %v15541_v11, %v15540_v54  ;;  %v19546_v54 = vld [vmem:[#allocation67_spill] sm:$0xff] }
 0x28d   : > { %v15544_v49 = vpop.permute.xlu0 %15543 }
 0x28e   : > { %v15546_v13 = vunpack.i.h.bf16 %v15544_v49  ;;  %v15545_v38 = vunpack.i.l.bf16 %v15544_v49  ;;  %14096 = vmatmul.mubr.msk.f32.vlgmr.msra.gmra.mrb[86].mxu1 %vm363_vm0, %v19528_v32  ;;  %15002 = vmatprep.subr.msk.bf16.mxu1 %vm17233_vm2, %v15000_v52  ;;  %v19549_v32 = vld [vmem:[#allocation74_spill] sm:$0xff] }
 0x28f   : > { %15005 = vmatpush3.bf16.xpose.msk.msra.mxu1 %vm17233_vm2, %v15000_v52  ;;  %14109 = vmatprep.mubr.msk.f32.mxu1 %vm363_vm0, %v19529_v33 }
 0x290   : > { %v15006_v59 = vpack.c.bf16 %v15546_v13, %v15545_v38  ;;  %v19548_v38 = vld [vmem:[#allocation69_spill] sm:$0xff] }
 0x291   : > { %v15549_v5 = vpop.permute.xlu1 %15548 }
 0x292   : > { %v15551_v7 = vunpack.i.h.bf16 %v15549_v5  ;;  %v15550_v55 = vunpack.i.l.bf16 %v15549_v5  ;;  %14103 = vmatmul.mubr.msk.f32.vlgmr.msra.gmra.mrb[72].mxu0 %vm363_vm0, %v19530_v26  ;;  %15008 = vmatprep.subr.msk.bf16.mxu0 %vm17233_vm2, %v15006_v59  ;;  %v19551_v26 = vld [vmem:[#allocation76_spill] sm:$0xff] }
 0x293   : > { %15011 = vmatpush3.bf16.xpose.msk.msra.mxu0 %vm17233_vm2, %v15006_v59  ;;  %14116 = vmatprep.mubr.msk.f32.mxu0 %vm363_vm0, %v19531_v28 }
 0x294   : > { %v15012_v42 = vpack.c.bf16 %v15551_v7, %v15550_v55  ;;  %v19550_v55 = vld [vmem:[#allocation71_spill] sm:$0xff] }
 0x295   : > { %v15554_v37 = vpop.permute.xlu0 %15553 }
 0x296   : > { %v15556_v61 = vunpack.i.h.bf16 %v15554_v37  ;;  %v15555_v14 = vunpack.i.l.bf16 %v15554_v37  ;;  %14110 = vmatmul.mubr.msk.f32.vlgmr.msra.gmra.mrb[88].mxu1 %vm363_vm0, %v19532_v17  ;;  %15014 = vmatprep.subr.msk.bf16.mxu1 %vm17233_vm2, %v15012_v42  ;;  %v19553_v17 = vld [vmem:[#allocation78_spill] sm:$0xff] }
 0x297   : > { %15017 = vmatpush3.bf16.xpose.msk.msra.mxu1 %vm17233_vm2, %v15012_v42  ;;  %14123 = vmatprep.mubr.msk.f32.mxu1 %vm363_vm0, %v19533_v4 }
 0x298   : > { %v15018_v6 = vpack.c.bf16 %v15556_v61, %v15555_v14  ;;  %v19552_v14 = vld [vmem:[#allocation73_spill] sm:$0xff] }
 0x299   : > { %v15559_v21 = vpop.permute.xlu1 %15558 }
 0x29a   : > { %v15561_v22 = vunpack.i.h.bf16 %v15559_v21  ;;  %v15560_v29 = vunpack.i.l.bf16 %v15559_v21  ;;  %14117 = vmatmul.mubr.msk.f32.vlgmr.msra.gmra.mrb[74].mxu0 %vm363_vm0, %v19534_v18  ;;  %15020 = vmatprep.subr.msk.bf16.mxu0 %vm17233_vm2, %v15018_v6 }
 0x29b   : > { %15023 = vmatpush3.bf16.xpose.msk.msra.mxu0 %vm17233_vm2, %v15018_v6  ;;  %14130 = vmatprep.mubr.msk.f32.mxu0 %vm363_vm0, %v19535_v10  ;;  %v19556_v10 = vld [vmem:[#allocation80_spill] sm:$0xff] }
 0x29c   : > { %v15024_v12 = vpack.c.bf16 %v15561_v22, %v15560_v29  ;;  %v19555_v22 = vld [vmem:[#allocation75_spill] sm:$0xff] }
 0x29d   : > { %v15564_v20 = vpop.permute.xlu0 %15563 }
 0x29e   : > { %v15566_v44 = vunpack.i.h.bf16 %v15564_v20  ;;  %v15565_v30 = vunpack.i.l.bf16 %v15564_v20  ;;  %14124 = vmatmul.mubr.msk.f32.vlgmr.msra.gmra.mrb[90].mxu1 %vm363_vm0, %v19536_v34  ;;  %15026 = vmatprep.subr.msk.bf16.mxu1 %vm17233_vm2, %v15024_v12  ;;  %v19559_v34 = vld [vmem:[#allocation79_spill] sm:$0xff] }
 0x29f   : > { %15029 = vmatpush3.bf16.xpose.msk.msra.mxu1 %vm17233_vm2, %v15024_v12  ;;  %14137 = vmatprep.mubr.msk.f32.mxu1 %vm363_vm0, %v19537_v36 }
 0x2a0   : > { %v15030_v46 = vpack.c.bf16 %v15566_v44, %v15565_v30  ;;  %v19558_v44 = vld [vmem:[#allocation77_spill] sm:$0xff] }
 0x2a1   : > { %v15569_v48 = vpop.permute.xlu1 %15568 }
 0x2a2   : > { %v15571_v50 = vunpack.i.h.bf16 %v15569_v48  ;;  %v15570_v24 = vunpack.i.l.bf16 %v15569_v48  ;;  %14131 = vmatmul.mubr.msk.f32.vlgmr.msra.gmra.mrb[76].mxu0 %vm363_vm0, %v19538_v60  ;;  %15032 = vmatprep.subr.msk.bf16.mxu0 %vm17233_vm2, %v15030_v46 }
 0x2a3   : > { %15035 = vmatpush3.bf16.xpose.msk.msra.mxu0 %vm17233_vm2, %v15030_v46  ;;  %14144 = vmatprep.mubr.msk.f32.mxu0 %vm363_vm0, %v19539_v62 }
 0x2a4   : > { %v15036_v58 = vpack.c.bf16 %v15571_v50, %v15570_v24  ;;  %v17610_v50 = vld [vmem:[%s19260_s2] sm:$0xff] }
 0x2a5   : > { %v15574_v1 = vpop.permute.xlu0 %15573 }
 0x2a6   : > { %v15576_v2 = vunpack.i.h.bf16 %v15574_v1  ;;  %v15575_v39 = vunpack.i.l.bf16 %v15574_v1  ;;  %14138 = vmatmul.mubr.msk.f32.vlgmr.msra.gmra.mrb[92].mxu1 %vm363_vm0, %v19540_v40  ;;  %15038 = vmatprep.subr.msk.bf16.mxu1 %vm17233_vm2, %v15036_v58 }
 0x2a7   : > { %15041 = vmatpush3.bf16.xpose.msk.msra.mxu1 %vm17233_vm2, %v15036_v58  ;;  %14151 = vmatprep.mubr.msk.f32.mxu1 %vm363_vm0, %v19541_v43 }
 0x2a8   : > { %v15042_v51 = vpack.c.bf16 %v15576_v2, %v15575_v39 }
 0x2a9   : > { %v15579_v56 = vpop.permute.xlu1 %15578 }
 0x2aa   : > { %v15581_v47 = vunpack.i.h.bf16 %v15579_v56  ;;  %v15580_v0 = vunpack.i.l.bf16 %v15579_v56  ;;  %14145 = vmatmul.mubr.msk.f32.vlgmr.msra.gmra.mrb[78].mxu0 %vm363_vm0, %v19542_v19  ;;  %15044 = vmatprep.subr.msk.bf16.mxu0 %vm17233_vm2, %v15042_v51 }
 0x2ab   : > { %15047 = vmatpush3.bf16.xpose.msk.msra.mxu0 %vm17233_vm2, %v15042_v51  ;;  %14158 = vmatprep.mubr.msk.f32.mxu0 %vm363_vm0, %v19543_v27 }
 0x2ac   : > { %v15048_v25 = vpack.c.bf16 %v15581_v47, %v15580_v0 }
 0x2ad   : > { %v15584_v57 = vpop.permute.xlu0 %15583 }
 0x2ae   : > { %v15586_v8 = vunpack.i.h.bf16 %v15584_v57  ;;  %v15585_v53 = vunpack.i.l.bf16 %v15584_v57  ;;  %14152 = vmatmul.mubr.msk.f32.vlgmr.msra.gmra.mrb[94].mxu1 %vm363_vm0, %v19544_v15  ;;  %15050 = vmatprep.subr.msk.bf16.mxu1 %vm17233_vm2, %v15048_v25 }
 0x2af   : > { %15053 = vmatpush3.bf16.xpose.msk.msra.mxu1 %vm17233_vm2, %v15048_v25  ;;  %14165 = vmatprep.mubr.msk.f32.mxu1 %vm363_vm0, %v19545_v31 }
 0x2b0   : > { %v15054_v63 = vpack.c.bf16 %v15586_v8, %v15585_v53 }
 0x2b1   : > { %v15589_v3 = vpop.permute.xlu1 %15588 }
 0x2b2   : > { %v15591_v45 = vunpack.i.h.bf16 %v15589_v3  ;;  %v15590_v11 = vunpack.i.l.bf16 %v15589_v3  ;;  %14159 = vmatmul.mubr.msk.f32.vlgmr.msra.gmra.mrb[80].mxu0 %vm363_vm0, %v19546_v54  ;;  %15056 = vmatprep.subr.msk.bf16.mxu0 %vm17233_vm2, %v15054_v63 }
 0x2b3   : > { %15059 = vmatpush3.bf16.xpose.msk.msra.mxu0 %vm17233_vm2, %v15054_v63  ;;  %14172 = vmatprep.mubr.msk.f32.mxu0 %vm363_vm0, %v19547_v23 }
 0x2b4   : > { %v15060_v35 = vpack.c.bf16 %v15591_v45, %v15590_v11 }
 0x2b5   : > { %v15594_v52 = vpop.permute.xlu0 %15593 }
 0x2b6   : > { %v15596_v49 = vunpack.i.h.bf16 %v15594_v52  ;;  %v15595_v13 = vunpack.i.l.bf16 %v15594_v52  ;;  %14166 = vmatmul.mubr.msk.f32.vlgmr.msra.gmra.mrb[96].mxu1 %vm363_vm0, %v19548_v38  ;;  %15062 = vmatprep.subr.msk.bf16.mxu1 %vm17233_vm2, %v15060_v35 }
 0x2b7   : > { %15065 = vmatpush3.bf16.xpose.msk.msra.mxu1 %vm17233_vm2, %v15060_v35  ;;  %14179 = vmatprep.mubr.msk.f32.mxu1 %vm363_vm0, %v19549_v32 }
 0x2b8   : > { %v15066_v33 = vpack.c.bf16 %v15596_v49, %v15595_v13 }
 0x2b9   : > { %v15599_v59 = vpop.permute.xlu1 %15598 }
 0x2ba   : > { %v15601_v5 = vunpack.i.h.bf16 %v15599_v59  ;;  %v15600_v7 = vunpack.i.l.bf16 %v15599_v59  ;;  %14173 = vmatmul.mubr.msk.f32.vlgmr.msra.gmra.mrb[82].mxu0 %vm363_vm0, %v19550_v55  ;;  %15068 = vmatprep.subr.msk.bf16.mxu0 %vm17233_vm2, %v15066_v33 }
 0x2bb   : > { %15071 = vmatpush3.bf16.xpose.msk.msra.mxu0 %vm17233_vm2, %v15066_v33  ;;  %14186 = vmatprep.mubr.msk.f32.mxu0 %vm363_vm0, %v19551_v26 }
 0x2bc   : > { %v15072_v28 = vpack.c.bf16 %v15601_v5, %v15600_v7 }
 0x2bd   : > { %v15604_v42 = vpop.permute.xlu0 %15603 }
 0x2be   : > { %v15606_v37 = vunpack.i.h.bf16 %v15604_v42  ;;  %v15605_v61 = vunpack.i.l.bf16 %v15604_v42  ;;  %14180 = vmatmul.mubr.msk.f32.vlgmr.msra.gmra.mrb[98].mxu1 %vm363_vm0, %v19552_v14  ;;  %15074 = vmatprep.subr.msk.bf16.mxu1 %vm17233_vm2, %v15072_v28 }
 0x2bf   : > { %15077 = vmatpush3.bf16.xpose.msk.msra.mxu1 %vm17233_vm2, %v15072_v28  ;;  %14193 = vmatprep.mubr.msk.f32.mxu1 %vm363_vm0, %v19553_v17 }
 0x2c0   : > { %v15078_v4 = vpack.c.bf16 %v15606_v37, %v15605_v61 }
 0x2c1   : > { %v17585_v6 = vpop.permute.xlu0 %15623 }
 0x2c2   : > { %19554 = vst [vmem:[#allocation40_spill] sm:$0xff] %v17585_v6  ;;  %v15609_v21 = vpop.permute.xlu1 %15608  ;;  %14187 = vmatmul.mubr.msk.f32.vlgmr.msra.gmra.mrb[84].mxu0 %vm363_vm0, %v19555_v22  ;;  %15080 = vmatprep.subr.msk.bf16.mxu0 %vm17233_vm2, %v15078_v4 }
 0x2c3   : > { %v15611_v29 = vunpack.i.h.bf16 %v15609_v21  ;;  %v15610_v18 = vunpack.i.l.bf16 %v15609_v21  ;;  %15083 = vmatpush3.bf16.xpose.msk.msra.mxu0 %vm17233_vm2, %v15078_v4  ;;  %14200 = vmatprep.mubr.msk.f32.mxu0 %vm363_vm0, %v19556_v10 }
 0x2c5   : > { %v15084_v12 = vpack.c.bf16 %v15611_v29, %v15610_v18 }
 0x2c6   : > { %v17595_v20 = vpop.permute.xlu0 %15633  ;;  %14194 = vmatmul.mubr.msk.f32.vlgmr.msra.gmra.mrb[100].mxu1 %vm363_vm0, %v19558_v44 }
 0x2c7   : > { %19557 = vst [vmem:[#allocation32_spill] sm:$0xff] %v17595_v20  ;;  %15086 = vmatprep.subr.msk.bf16.mxu1 %vm17233_vm2, %v15084_v12  ;;  %14207 = vmatprep.mubr.msk.f32.mxu1 %vm363_vm0, %v17248_v9 }
 0x2c8   : > { %15089 = vmatpush3.bf16.xpose.msk.msra.mxu1 %vm17233_vm2, %v15084_v12 }
 0x2ca   : > { %v15644_v30 = vpop.permute.xlu0 %15643  ;;  %14201 = vmatmul.mubr.msk.f32.vlgmr.msra.gmra.mrb[86].mxu0 %vm363_vm0, %v19559_v34 }
 0x2cb   : > { %v15646_v36 = vunpack.i.h.bf16 %v15644_v30  ;;  %v15645_v46 = vunpack.i.l.bf16 %v15644_v30  ;;  %14242 = vmatprep.mubr.f32.mxu0 %v17610_v50 }
 0x2cd   : > { %v15226_v48 = vpack.c.bf16 %v15646_v36, %v15645_v46 }
 0x2ce   : > { %v15654_v24 = vpop.permute.xlu0 %15653 }
 0x2cf   : > { %v15656_v60 = vunpack.i.h.bf16 %v15654_v24  ;;  %v15655_v9 = vunpack.i.l.bf16 %v15654_v24  ;;  %14208 = vmatmul.mubr.msk.f32.vlgmr.msra.gmra.mrb[102].mxu1 %vm363_vm0, %v17246_v41  ;;  %15227 = vmatprep.subr.bf16.mxu1 %v15226_v48 }
 0x2d0   : > { %15229 = vmatpush3.bf16.msra.mxu1 %v15226_v48 }
 0x2d1   : > { %v17615_v16 = vpack.c.bf16 %v15656_v60, %v15655_v9 }
 0x2d3   : > { %19560 = vst [vmem:[#allocation33_spill] sm:$0xff] %v17615_v16  ;;  %15235 = vmatprep.subr.bf16.mxu1 %v17615_v16  ;;  %v16204_v16 = vld [vmem:[%s16532_s18 + $0x170] sm:$0xff] }
 0x325   : > { %v13992_v62 = vpop.f32.mrb[56].mxu0 }
 0x326   : > { %v6447_v58 = vmul.f32 0.125, %v13992_v62  ;;  %v3678_v1 = vpop.f32.mrb[57].mxu0 }
 0x327   : > { %v6446_v2 = vmul.f32 0.125, %v3678_v1 }
 0x328   : > { %vm6511_vm3 = vcmp.gt.f32.partialorder %v6447_v58, 0.0  ;;  %v6575_v39 = vmul.f32 0.01, %v6447_v58 }
 0x329   : > { %vm6510_vm4 = vcmp.gt.f32.partialorder %v6446_v2, 0.0  ;;  %v6574_v40 = vmul.f32 0.01, %v6446_v2  ;;  %v13999_v43 = vpop.f32.mrb[72].mxu1 }
 0x32a   : > { %v6449_v51 = vmul.f32 0.125, %v13999_v43  ;;  %v3767_v56 = vpop.f32.mrb[73].mxu1  ;;  %v6639_v47 = vsel %vm6511_vm3, %v6447_v58, %v6575_v39 }
 0x32b   : > { %v6448_v0 = vmul.f32 0.125, %v3767_v56  ;;  %v6638_v41 = vsel %vm6510_vm4, %v6446_v2, %v6574_v40 }
 0x32c   : > { %vm6513_vm5 = vcmp.gt.f32.partialorder %v6449_v51, 0.0  ;;  %v6577_v19 = vmul.f32 0.01, %v6449_v51  ;;  %v15090_v27 = vpack.c.bf16 %v6639_v47, %v6638_v41 }
 0x32d   : > { %vm6512_vm6 = vcmp.gt.f32.partialorder %v6448_v0, 0.0  ;;  %v6576_v25 = vmul.f32 0.01, %v6448_v0  ;;  %v14006_v57 = vpop.f32.mrb[58].mxu0 }
 0x32e   : > { %v6451_v8 = vmul.f32 0.125, %v14006_v57  ;;  %v3856_v53 = vpop.f32.mrb[59].mxu0  ;;  %15091 = vmatprep.subr.bf16.mxu0 %v15090_v27  ;;  %v6641_v15 = vsel %vm6513_vm5, %v6449_v51, %v6577_v19 }
 0x32f   : > { %v6450_v31 = vmul.f32 0.125, %v3856_v53  ;;  %15093 = vmatpush3.bf16.msra.mxu0 %v15090_v27  ;;  %v6640_v63 = vsel %vm6512_vm6, %v6448_v0, %v6576_v25 }
 0x330   : > { %vm6515_vm7 = vcmp.gt.f32.partialorder %v6451_v8, 0.0  ;;  %v6579_v3 = vmul.f32 0.01, %v6451_v8  ;;  %v15094_v45 = vpack.c.bf16 %v6641_v15, %v6640_v63 }
 0x331   : > { %vm6514_vm8 = vcmp.gt.f32.partialorder %v6450_v31, 0.0  ;;  %v6578_v11 = vmul.f32 0.01, %v6450_v31  ;;  %v14013_v54 = vpop.f32.mrb[74].mxu1 }
 0x332   : > { %v6453_v23 = vmul.f32 0.125, %v14013_v54  ;;  %v3945_v35 = vpop.f32.mrb[75].mxu1  ;;  %15095 = vmatprep.subr.bf16.mxu0 %v15094_v45  ;;  %v6643_v52 = vsel %vm6515_vm7, %v6451_v8, %v6579_v3 }
 0x333   : > { %v6452_v49 = vmul.f32 0.125, %v3945_v35  ;;  %15097 = vmatpush3.bf16.msra.mxu0 %v15094_v45  ;;  %v6642_v13 = vsel %vm6514_vm8, %v6450_v31, %v6578_v11  ;;  %v17621_v11 = vld [vmem:[%s19260_s2 + $0x8] sm:$0xff] }
 0x334   : > { %vm6517_vm9 = vcmp.gt.f32.partialorder %v6453_v23, 0.0  ;;  %v6581_v38 = vmul.f32 0.01, %v6453_v23  ;;  %v15098_v32 = vpack.c.bf16 %v6643_v52, %v6642_v13  ;;  %v17626_v52 = vld [vmem:[%s19260_s2 + $0x10] sm:$0xff] }
 0x335   : > { %vm6516_vm10 = vcmp.gt.f32.partialorder %v6452_v49, 0.0  ;;  %v6580_v33 = vmul.f32 0.01, %v6452_v49  ;;  %v14020_v59 = vpop.f32.mrb[60].mxu0 }
 0x336   : > { %v6455_v5 = vmul.f32 0.125, %v14020_v59  ;;  %v4034_v7 = vpop.f32.mrb[61].mxu0  ;;  %15099 = vmatprep.subr.bf16.mxu0 %v15098_v32  ;;  %v6645_v55 = vsel %vm6517_vm9, %v6453_v23, %v6581_v38 }
 0x337   : > { %v6454_v26 = vmul.f32 0.125, %v4034_v7  ;;  %15101 = vmatpush3.bf16.msra.mxu0 %v15098_v32  ;;  %v6644_v28 = vsel %vm6516_vm10, %v6452_v49, %v6580_v33 }
 0x338   : > { %vm6519_vm11 = vcmp.gt.f32.partialorder %v6455_v5, 0.0  ;;  %v6583_v42 = vmul.f32 0.01, %v6455_v5  ;;  %v15102_v37 = vpack.c.bf16 %v6645_v55, %v6644_v28  ;;  %v17638_v28 = vld [vmem:[%s19260_s2 + $0x20] sm:$0xff] }
 0x339   : > { %vm6518_vm12 = vcmp.gt.f32.partialorder %v6454_v26, 0.0  ;;  %v6582_v61 = vmul.f32 0.01, %v6454_v26  ;;  %v14027_v14 = vpop.f32.mrb[76].mxu1 }
 0x33a   : > { %v6457_v17 = vmul.f32 0.125, %v14027_v14  ;;  %v4123_v4 = vpop.f32.mrb[77].mxu1  ;;  %15103 = vmatprep.subr.bf16.mxu0 %v15102_v37  ;;  %v6647_v21 = vsel %vm6519_vm11, %v6455_v5, %v6583_v42  ;;  %v17633_v5 = vld [vmem:[%s19260_s2 + $0x18] sm:$0xff] }
 0x33b   : > { %v6456_v22 = vmul.f32 0.125, %v4123_v4  ;;  %15105 = vmatpush3.bf16.msra.mxu0 %v15102_v37  ;;  %v6646_v29 = vsel %vm6518_vm12, %v6454_v26, %v6582_v61 }
 0x33c   : > { %vm6521_vm13 = vcmp.gt.f32.partialorder %v6457_v17, 0.0  ;;  %v6585_v18 = vmul.f32 0.01, %v6457_v17  ;;  %v15106_v10 = vpack.c.bf16 %v6647_v21, %v6646_v29  ;;  %v17645_v21 = vld [vmem:[%s19260_s2 + $0x28] sm:$0xff] }
 0x33d   : > { %vm6520_vm14 = vcmp.gt.f32.partialorder %v6456_v22, 0.0  ;;  %v6584_v12 = vmul.f32 0.01, %v6456_v22  ;;  %v14034_v44 = vpop.f32.mrb[62].mxu0 }
 0x33e   : > { %v6459_v30 = vmul.f32 0.125, %v14034_v44  ;;  %v4212_v34 = vpop.f32.mrb[63].mxu0  ;;  %15107 = vmatprep.subr.bf16.mxu0 %v15106_v10  ;;  %v6649_v36 = vsel %vm6521_vm13, %v6457_v17, %v6585_v18 }
 0x33f   : > { %v6458_v46 = vmul.f32 0.125, %v4212_v34  ;;  %15109 = vmatpush3.bf16.msra.mxu0 %v15106_v10  ;;  %v6648_v48 = vsel %vm6520_vm14, %v6456_v22, %v6584_v12  ;;  %v17650_v10 = vld [vmem:[%s19260_s2 + $0x30] sm:$0xff] }
 0x340   : > { %vm6523_vm15 = vcmp.gt.f32.partialorder %v6459_v30, 0.0  ;;  %v6587_v24 = vmul.f32 0.01, %v6459_v30  ;;  %v15110_v60 = vpack.c.bf16 %v6649_v36, %v6648_v48  ;;  %v17657_v48 = vld [vmem:[%s19260_s2 + $0x38] sm:$0xff] }
 0x341   : > { %vm6522_vm2 = vcmp.gt.f32.partialorder %v6458_v46, 0.0  ;;  %v6586_v9 = vmul.f32 0.01, %v6458_v46  ;;  %v14041_v62 = vpop.f32.mrb[78].mxu1 }
 0x342   : > { %v6461_v58 = vmul.f32 0.125, %v14041_v62  ;;  %v4301_v1 = vpop.f32.mrb[79].mxu1  ;;  %15111 = vmatprep.subr.bf16.mxu0 %v15110_v60  ;;  %v6651_v2 = vsel %vm6523_vm15, %v6459_v30, %v6587_v24  ;;  %v17662_v62 = vld [vmem:[%s19260_s2 + $0x40] sm:$0xff] }
 0x343   : > { %v6460_v39 = vmul.f32 0.125, %v4301_v1  ;;  %15113 = vmatpush3.bf16.msra.mxu0 %v15110_v60  ;;  %v6650_v40 = vsel %vm6522_vm2, %v6458_v46, %v6586_v9 }
 0x344   : > { %vm6525_vm3 = vcmp.gt.f32.partialorder %v6461_v58, 0.0  ;;  %v6589_v43 = vmul.f32 0.01, %v6461_v58  ;;  %v15114_v51 = vpack.c.bf16 %v6651_v2, %v6650_v40 }
 0x345   : > { %vm6524_vm4 = vcmp.gt.f32.partialorder %v6460_v39, 0.0  ;;  %v6588_v56 = vmul.f32 0.01, %v6460_v39  ;;  %v14048_v47 = vpop.f32.mrb[64].mxu0 }
 0x346   : > { %v6463_v0 = vmul.f32 0.125, %v14048_v47  ;;  %v4390_v41 = vpop.f32.mrb[65].mxu0  ;;  %15115 = vmatprep.subr.bf16.mxu0 %v15114_v51  ;;  %v6653_v19 = vsel %vm6525_vm3, %v6461_v58, %v6589_v43 }
 0x347   : > { %v6462_v27 = vmul.f32 0.125, %v4390_v41  ;;  %15117 = vmatpush3.bf16.msra.mxu0 %v15114_v51  ;;  %v6652_v25 = vsel %vm6524_vm4, %v6460_v39, %v6588_v56  ;;  %v17669_v51 = vld [vmem:[%s19260_s2 + $0x48] sm:$0xff]  ;;  %v17674_v41 = vld [vmem:[%s19260_s2 + $0x50] sm:$0xff] }
 0x348   : > { %vm6527_vm5 = vcmp.gt.f32.partialorder %v6463_v0, 0.0  ;;  %v6591_v57 = vmul.f32 0.01, %v6463_v0  ;;  %v15118_v8 = vpack.c.bf16 %v6653_v19, %v6652_v25 }
 0x349   : > { %vm6526_vm6 = vcmp.gt.f32.partialorder %v6462_v27, 0.0  ;;  %v6590_v53 = vmul.f32 0.01, %v6462_v27  ;;  %v14055_v15 = vpop.f32.mrb[80].mxu1 }
 0x34a   : > { %v6465_v31 = vmul.f32 0.125, %v14055_v15  ;;  %v4479_v63 = vpop.f32.mrb[81].mxu1  ;;  %15119 = vmatprep.subr.bf16.mxu0 %v15118_v8  ;;  %v6655_v3 = vsel %vm6527_vm5, %v6463_v0, %v6591_v57  ;;  %v17681_v15 = vld [vmem:[%s19260_s2 + $0x58] sm:$0xff] }
 0x34b   : > { %v6464_v45 = vmul.f32 0.125, %v4479_v63  ;;  %15121 = vmatpush3.bf16.msra.mxu0 %v15118_v8  ;;  %v6654_v54 = vsel %vm6526_vm6, %v6462_v27, %v6590_v53 }
 0x34c   : > { %vm6529_vm7 = vcmp.gt.f32.partialorder %v6465_v31, 0.0  ;;  %v6593_v23 = vmul.f32 0.01, %v6465_v31  ;;  %v15122_v35 = vpack.c.bf16 %v6655_v3, %v6654_v54 }
 0x34d   : > { %vm6528_vm8 = vcmp.gt.f32.partialorder %v6464_v45, 0.0  ;;  %v6592_v49 = vmul.f32 0.01, %v6464_v45  ;;  %v14062_v13 = vpop.f32.mrb[66].mxu0 }
 0x34e   : > { %v6467_v38 = vmul.f32 0.125, %v14062_v13  ;;  %v4568_v32 = vpop.f32.mrb[67].mxu0  ;;  %14243 = vmatmul.mubr.f32.vlgmr.msra.gmra.mrb[88].mxu0 %v17621_v11  ;;  %15123 = vmatprep.subr.bf16.mxu0 %v15122_v35  ;;  %v6657_v33 = vsel %vm6529_vm7, %v6465_v31, %v6593_v23 }
 0x34f   : > { %v6466_v59 = vmul.f32 0.125, %v4568_v32  ;;  %15125 = vmatpush3.bf16.msra.mxu0 %v15122_v35  ;;  %14245 = vmatprep.mubr.f32.mxu0 %v17626_v52  ;;  %v6656_v7 = vsel %vm6528_vm8, %v6464_v45, %v6592_v49  ;;  %v17686_v45 = vld [vmem:[%s19260_s2 + $0x60] sm:$0xff]  ;;  %v17693_v32 = vld [vmem:[%s19260_s2 + $0x68] sm:$0xff] }
 0x350   : > { %vm6531_vm9 = vcmp.gt.f32.partialorder %v6467_v38, 0.0  ;;  %v6595_v55 = vmul.f32 0.01, %v6467_v38  ;;  %v15126_v26 = vpack.c.bf16 %v6657_v33, %v6656_v7 }
 0x351   : > { %vm6530_vm10 = vcmp.gt.f32.partialorder %v6466_v59, 0.0  ;;  %v6594_v42 = vmul.f32 0.01, %v6466_v59  ;;  %v14069_v37 = vpop.f32.mrb[82].mxu1 }
 0x352   : > { %v6469_v61 = vmul.f32 0.125, %v14069_v37  ;;  %v4657_v14 = vpop.f32.mrb[83].mxu1  ;;  %14246 = vmatmul.mubr.f32.gmra.mrb[90].mxu0 %v17633_v5  ;;  %15127 = vmatprep.subr.bf16.mxu0 %v15126_v26  ;;  %v6659_v17 = vsel %vm6531_vm9, %v6467_v38, %v6595_v55  ;;  %v17698_v55 = vld [vmem:[%s19260_s2 + $0x70] sm:$0xff] }
 0x353   : > { %v6468_v4 = vmul.f32 0.125, %v4657_v14  ;;  %15129 = vmatpush3.bf16.msra.mxu0 %v15126_v26  ;;  %14248 = vmatprep.mubr.f32.mxu0 %v17638_v28  ;;  %v6658_v22 = vsel %vm6530_vm10, %v6466_v59, %v6594_v42 }
 0x354   : > { %vm6533_vm11 = vcmp.gt.f32.partialorder %v6469_v61, 0.0  ;;  %v6597_v29 = vmul.f32 0.01, %v6469_v61  ;;  %v15130_v18 = vpack.c.bf16 %v6659_v17, %v6658_v22 }
 0x355   : > { %vm6532_vm12 = vcmp.gt.f32.partialorder %v6468_v4, 0.0  ;;  %v6596_v12 = vmul.f32 0.01, %v6468_v4  ;;  %v14076_v44 = vpop.f32.mrb[68].mxu0 }
 0x356   : > { %v6471_v30 = vmul.f32 0.125, %v14076_v44  ;;  %v4746_v34 = vpop.f32.mrb[69].mxu0  ;;  %14249 = vmatmul.mubr.f32.gmra.mrb[92].mxu0 %v17645_v21  ;;  %15131 = vmatprep.subr.bf16.mxu0 %v15130_v18  ;;  %v6661_v36 = vsel %vm6533_vm11, %v6469_v61, %v6597_v29 }
 0x357   : > { %v6470_v46 = vmul.f32 0.125, %v4746_v34  ;;  %15133 = vmatpush3.bf16.msra.mxu0 %v15130_v18  ;;  %14251 = vmatprep.mubr.f32.mxu0 %v17650_v10  ;;  %v6660_v24 = vsel %vm6532_vm12, %v6468_v4, %v6596_v12  ;;  %v17705_v4 = vld [vmem:[%s19260_s2 + $0x78] sm:$0xff] }
 0x358   : > { %vm6535_vm13 = vcmp.gt.f32.partialorder %v6471_v30, 0.0  ;;  %v6599_v60 = vmul.f32 0.01, %v6471_v30  ;;  %v15134_v9 = vpack.c.bf16 %v6661_v36, %v6660_v24 }
 0x359   : > { %vm6534_vm14 = vcmp.gt.f32.partialorder %v6470_v46, 0.0  ;;  %v6598_v58 = vmul.f32 0.01, %v6470_v46  ;;  %v14083_v1 = vpop.f32.mrb[84].mxu1 }
 0x35a   : > { %v6473_v2 = vmul.f32 0.125, %v14083_v1  ;;  %v4835_v39 = vpop.f32.mrb[85].mxu1  ;;  %14252 = vmatmul.mubr.f32.gmra.mrb[94].mxu0 %v17657_v48  ;;  %15135 = vmatprep.subr.bf16.mxu0 %v15134_v9  ;;  %v6663_v40 = vsel %vm6535_vm13, %v6471_v30, %v6599_v60 }
 0x35b   : > { %v6472_v43 = vmul.f32 0.125, %v4835_v39  ;;  %15137 = vmatpush3.bf16.msra.mxu0 %v15134_v9  ;;  %14254 = vmatprep.mubr.f32.mxu0 %v17662_v62  ;;  %v6662_v56 = vsel %vm6534_vm14, %v6470_v46, %v6598_v58 }
 0x35c   : > { %vm6537_vm15 = vcmp.gt.f32.partialorder %v6473_v2, 0.0  ;;  %v6601_v47 = vmul.f32 0.01, %v6473_v2  ;;  %v15138_v0 = vpack.c.bf16 %v6663_v40, %v6662_v56 }
 0x35d   : > { %vm6536_vm2 = vcmp.gt.f32.partialorder %v6472_v43, 0.0  ;;  %v6600_v19 = vmul.f32 0.01, %v6472_v43  ;;  %v14090_v27 = vpop.f32.mrb[70].mxu0 }
 0x35e   : > { %v6475_v25 = vmul.f32 0.125, %v14090_v27  ;;  %v4924_v57 = vpop.f32.mrb[71].mxu0  ;;  %14255 = vmatmul.mubr.f32.gmra.mrb[96].mxu0 %v17669_v51  ;;  %15139 = vmatprep.subr.bf16.mxu0 %v15138_v0  ;;  %v6665_v8 = vsel %vm6537_vm15, %v6473_v2, %v6601_v47 }
 0x35f   : > { %v6474_v53 = vmul.f32 0.125, %v4924_v57  ;;  %15141 = vmatpush3.bf16.msra.mxu0 %v15138_v0  ;;  %14257 = vmatprep.mubr.f32.mxu0 %v17674_v41  ;;  %v6664_v31 = vsel %vm6536_vm2, %v6472_v43, %v6600_v19 }
 0x360   : > { %vm6539_vm3 = vcmp.gt.f32.partialorder %v6475_v25, 0.0  ;;  %v6603_v63 = vmul.f32 0.01, %v6475_v25  ;;  %v15142_v3 = vpack.c.bf16 %v6665_v8, %v6664_v31 }
 0x361   : > { %vm6538_vm4 = vcmp.gt.f32.partialorder %v6474_v53, 0.0  ;;  %v6602_v54 = vmul.f32 0.01, %v6474_v53  ;;  %v14097_v23 = vpop.f32.mrb[86].mxu1 }
 0x362   : > { %v6477_v35 = vmul.f32 0.125, %v14097_v23  ;;  %v5013_v49 = vpop.f32.mrb[87].mxu1  ;;  %14258 = vmatmul.mubr.f32.gmra.mrb[98].mxu0 %v17681_v15  ;;  %15143 = vmatprep.subr.bf16.mxu0 %v15142_v3  ;;  %v6667_v13 = vsel %vm6539_vm3, %v6475_v25, %v6603_v63 }
 0x363   : > { %v6476_v38 = vmul.f32 0.125, %v5013_v49  ;;  %15145 = vmatpush3.bf16.msra.mxu0 %v15142_v3  ;;  %14260 = vmatprep.mubr.f32.mxu0 %v17686_v45  ;;  %v6666_v33 = vsel %vm6538_vm4, %v6474_v53, %v6602_v54 }
 0x364   : > { %vm6541_vm5 = vcmp.gt.f32.partialorder %v6477_v35, 0.0  ;;  %v6605_v59 = vmul.f32 0.01, %v6477_v35  ;;  %v15146_v7 = vpack.c.bf16 %v6667_v13, %v6666_v33 }
 0x365   : > { %vm6540_vm6 = vcmp.gt.f32.partialorder %v6476_v38, 0.0  ;;  %v6604_v26 = vmul.f32 0.01, %v6476_v38  ;;  %v14104_v42 = vpop.f32.mrb[72].mxu0 }
 0x366   : > { %v6479_v37 = vmul.f32 0.125, %v14104_v42  ;;  %v5102_v61 = vpop.f32.mrb[73].mxu0  ;;  %14261 = vmatmul.mubr.f32.gmra.mrb[100].mxu0 %v17693_v32  ;;  %15147 = vmatprep.subr.bf16.mxu0 %v15146_v7  ;;  %v6669_v14 = vsel %vm6541_vm5, %v6477_v35, %v6605_v59 }
 0x367   : > { %v6478_v17 = vmul.f32 0.125, %v5102_v61  ;;  %15149 = vmatpush3.bf16.msra.mxu0 %v15146_v7  ;;  %14263 = vmatprep.mubr.f32.mxu0 %v17698_v55  ;;  %v6668_v22 = vsel %vm6540_vm6, %v6476_v38, %v6604_v26 }
 0x368   : > { %vm6543_vm7 = vcmp.gt.f32.partialorder %v6479_v37, 0.0  ;;  %v6607_v29 = vmul.f32 0.01, %v6479_v37  ;;  %v15150_v18 = vpack.c.bf16 %v6669_v14, %v6668_v22 }
 0x369   : > { %vm6542_vm8 = vcmp.gt.f32.partialorder %v6478_v17, 0.0  ;;  %v6606_v12 = vmul.f32 0.01, %v6478_v17  ;;  %v14111_v44 = vpop.f32.mrb[88].mxu1 }
 0x36a   : > { %v6481_v30 = vmul.f32 0.125, %v14111_v44  ;;  %v5191_v34 = vpop.f32.mrb[89].mxu1  ;;  %14264 = vmatmul.mubr.f32.gmra.mrb[102].mxu0 %v17705_v4  ;;  %15151 = vmatprep.subr.bf16.mxu0 %v15150_v18  ;;  %v6671_v36 = vsel %vm6543_vm7, %v6479_v37, %v6607_v29 }
 0x36b   : > { %v6480_v46 = vmul.f32 0.125, %v5191_v34  ;;  %15153 = vmatpush3.bf16.msra.mxu0 %v15150_v18  ;;  %14298 = vmatprep.mubr.f32.mxu0 %v17610_v50  ;;  %v6670_v24 = vsel %vm6542_vm8, %v6478_v17, %v6606_v12 }
 0x36c   : > { %vm6545_vm9 = vcmp.gt.f32.partialorder %v6481_v30, 0.0  ;;  %v6609_v60 = vmul.f32 0.01, %v6481_v30  ;;  %v15154_v9 = vpack.c.bf16 %v6671_v36, %v6670_v24 }
 0x36d   : > { %vm6544_vm10 = vcmp.gt.f32.partialorder %v6480_v46, 0.0  ;;  %v6608_v58 = vmul.f32 0.01, %v6480_v46  ;;  %v14118_v1 = vpop.f32.mrb[74].mxu0 }
 0x36e   : > { %v6483_v2 = vmul.f32 0.125, %v14118_v1  ;;  %v5280_v39 = vpop.f32.mrb[75].mxu0  ;;  %14299 = vmatmul.mubr.f32.vlgmr.msra.gmra.mrb[104].mxu0 %v17621_v11  ;;  %15155 = vmatprep.subr.bf16.mxu0 %v15154_v9  ;;  %v6673_v40 = vsel %vm6545_vm9, %v6481_v30, %v6609_v60 }
 0x36f   : > { %v6482_v43 = vmul.f32 0.125, %v5280_v39  ;;  %15157 = vmatpush3.bf16.msra.mxu0 %v15154_v9  ;;  %14301 = vmatprep.mubr.f32.mxu0 %v17626_v52  ;;  %v6672_v56 = vsel %vm6544_vm10, %v6480_v46, %v6608_v58 }
 0x370   : > { %vm6547_vm11 = vcmp.gt.f32.partialorder %v6483_v2, 0.0  ;;  %v6611_v47 = vmul.f32 0.01, %v6483_v2  ;;  %v15158_v0 = vpack.c.bf16 %v6673_v40, %v6672_v56 }
 0x371   : > { %vm6546_vm12 = vcmp.gt.f32.partialorder %v6482_v43, 0.0  ;;  %v6610_v19 = vmul.f32 0.01, %v6482_v43  ;;  %v14125_v27 = vpop.f32.mrb[90].mxu1 }
 0x372   : > { %v6485_v25 = vmul.f32 0.125, %v14125_v27  ;;  %v5369_v57 = vpop.f32.mrb[91].mxu1  ;;  %14302 = vmatmul.mubr.f32.gmra.mrb[106].mxu0 %v17633_v5  ;;  %15159 = vmatprep.subr.bf16.mxu0 %v15158_v0  ;;  %v6675_v8 = vsel %vm6547_vm11, %v6483_v2, %v6611_v47 }
 0x373   : > { %v6484_v53 = vmul.f32 0.125, %v5369_v57  ;;  %15161 = vmatpush3.bf16.msra.mxu0 %v15158_v0  ;;  %14304 = vmatprep.mubr.f32.mxu0 %v17638_v28  ;;  %v6674_v31 = vsel %vm6546_vm12, %v6482_v43, %v6610_v19 }
 0x374   : > { %vm6549_vm13 = vcmp.gt.f32.partialorder %v6485_v25, 0.0  ;;  %v6613_v63 = vmul.f32 0.01, %v6485_v25  ;;  %v15162_v3 = vpack.c.bf16 %v6675_v8, %v6674_v31 }
 0x375   : > { %vm6548_vm14 = vcmp.gt.f32.partialorder %v6484_v53, 0.0  ;;  %v6612_v54 = vmul.f32 0.01, %v6484_v53  ;;  %v14132_v23 = vpop.f32.mrb[76].mxu0 }
 0x376   : > { %v6487_v35 = vmul.f32 0.125, %v14132_v23  ;;  %v5458_v49 = vpop.f32.mrb[77].mxu0  ;;  %14305 = vmatmul.mubr.f32.gmra.mrb[108].mxu0 %v17645_v21  ;;  %15163 = vmatprep.subr.bf16.mxu0 %v15162_v3  ;;  %v6677_v13 = vsel %vm6549_vm13, %v6485_v25, %v6613_v63 }
 0x377   : > { %v6486_v38 = vmul.f32 0.125, %v5458_v49  ;;  %15165 = vmatpush3.bf16.msra.mxu0 %v15162_v3  ;;  %14307 = vmatprep.mubr.f32.mxu0 %v17650_v10  ;;  %v6676_v33 = vsel %vm6548_vm14, %v6484_v53, %v6612_v54 }
 0x378   : > { %vm6551_vm15 = vcmp.gt.f32.partialorder %v6487_v35, 0.0  ;;  %v6615_v59 = vmul.f32 0.01, %v6487_v35  ;;  %v15166_v7 = vpack.c.bf16 %v6677_v13, %v6676_v33 }
 0x379   : > { %vm6550_vm2 = vcmp.gt.f32.partialorder %v6486_v38, 0.0  ;;  %v6614_v26 = vmul.f32 0.01, %v6486_v38  ;;  %v14139_v42 = vpop.f32.mrb[92].mxu1 }
 0x37a   : > { %v6489_v37 = vmul.f32 0.125, %v14139_v42  ;;  %v5547_v61 = vpop.f32.mrb[93].mxu1  ;;  %14308 = vmatmul.mubr.f32.gmra.mrb[110].mxu0 %v17657_v48  ;;  %15167 = vmatprep.subr.bf16.mxu0 %v15166_v7  ;;  %v6679_v14 = vsel %vm6551_vm15, %v6487_v35, %v6615_v59 }
 0x37b   : > { %v6488_v17 = vmul.f32 0.125, %v5547_v61  ;;  %15169 = vmatpush3.bf16.msra.mxu0 %v15166_v7  ;;  %14310 = vmatprep.mubr.f32.mxu0 %v17662_v62  ;;  %v6678_v22 = vsel %vm6550_vm2, %v6486_v38, %v6614_v26 }
 0x37c   : > { %vm6553_vm3 = vcmp.gt.f32.partialorder %v6489_v37, 0.0  ;;  %v6617_v29 = vmul.f32 0.01, %v6489_v37  ;;  %v15170_v18 = vpack.c.bf16 %v6679_v14, %v6678_v22 }
 0x37d   : > { %vm6552_vm4 = vcmp.gt.f32.partialorder %v6488_v17, 0.0  ;;  %v6616_v12 = vmul.f32 0.01, %v6488_v17  ;;  %v14146_v44 = vpop.f32.mrb[78].mxu0 }
 0x37e   : > { %v6491_v30 = vmul.f32 0.125, %v14146_v44  ;;  %v5636_v34 = vpop.f32.mrb[79].mxu0  ;;  %14311 = vmatmul.mubr.f32.gmra.mrb[112].mxu0 %v17669_v51  ;;  %15171 = vmatprep.subr.bf16.mxu0 %v15170_v18  ;;  %v6681_v36 = vsel %vm6553_vm3, %v6489_v37, %v6617_v29 }
 0x37f   : > { %v6490_v46 = vmul.f32 0.125, %v5636_v34  ;;  %15173 = vmatpush3.bf16.msra.mxu0 %v15170_v18  ;;  %14313 = vmatprep.mubr.f32.mxu0 %v17674_v41  ;;  %v6680_v24 = vsel %vm6552_vm4, %v6488_v17, %v6616_v12 }
 0x380   : > { %vm6555_vm5 = vcmp.gt.f32.partialorder %v6491_v30, 0.0  ;;  %v6619_v60 = vmul.f32 0.01, %v6491_v30  ;;  %v15174_v9 = vpack.c.bf16 %v6681_v36, %v6680_v24 }
 0x381   : > { %vm6554_vm6 = vcmp.gt.f32.partialorder %v6490_v46, 0.0  ;;  %v6618_v58 = vmul.f32 0.01, %v6490_v46  ;;  %v14153_v1 = vpop.f32.mrb[94].mxu1 }
 0x382   : > { %v6493_v2 = vmul.f32 0.125, %v14153_v1  ;;  %v5725_v39 = vpop.f32.mrb[95].mxu1  ;;  %14314 = vmatmul.mubr.f32.gmra.mrb[114].mxu0 %v17681_v15  ;;  %15175 = vmatprep.subr.bf16.mxu0 %v15174_v9  ;;  %v6683_v40 = vsel %vm6555_vm5, %v6491_v30, %v6619_v60 }
 0x383   : > { %v6492_v43 = vmul.f32 0.125, %v5725_v39  ;;  %15177 = vmatpush3.bf16.msra.mxu0 %v15174_v9  ;;  %14316 = vmatprep.mubr.f32.mxu0 %v17686_v45  ;;  %v6682_v56 = vsel %vm6554_vm6, %v6490_v46, %v6618_v58 }
 0x384   : > { %vm6557_vm7 = vcmp.gt.f32.partialorder %v6493_v2, 0.0  ;;  %v6621_v47 = vmul.f32 0.01, %v6493_v2  ;;  %v15178_v0 = vpack.c.bf16 %v6683_v40, %v6682_v56 }
 0x385   : > { %vm6556_vm8 = vcmp.gt.f32.partialorder %v6492_v43, 0.0  ;;  %v6620_v19 = vmul.f32 0.01, %v6492_v43  ;;  %v14160_v27 = vpop.f32.mrb[80].mxu0 }
 0x386   : > { %v6495_v25 = vmul.f32 0.125, %v14160_v27  ;;  %v5814_v57 = vpop.f32.mrb[81].mxu0  ;;  %14317 = vmatmul.mubr.f32.gmra.mrb[116].mxu0 %v17693_v32  ;;  %15179 = vmatprep.subr.bf16.mxu0 %v15178_v0  ;;  %v6685_v8 = vsel %vm6557_vm7, %v6493_v2, %v6621_v47 }
 0x387   : > { %v6494_v53 = vmul.f32 0.125, %v5814_v57  ;;  %15181 = vmatpush3.bf16.msra.mxu0 %v15178_v0  ;;  %14319 = vmatprep.mubr.f32.mxu0 %v17698_v55  ;;  %v6684_v31 = vsel %vm6556_vm8, %v6492_v43, %v6620_v19 }
 0x388   : > { %vm6559_vm9 = vcmp.gt.f32.partialorder %v6495_v25, 0.0  ;;  %v6623_v63 = vmul.f32 0.01, %v6495_v25  ;;  %v15182_v3 = vpack.c.bf16 %v6685_v8, %v6684_v31 }
 0x389   : > { %vm6558_vm10 = vcmp.gt.f32.partialorder %v6494_v53, 0.0  ;;  %v6622_v54 = vmul.f32 0.01, %v6494_v53  ;;  %v14167_v23 = vpop.f32.mrb[96].mxu1 }
 0x38a   : > { %v6497_v35 = vmul.f32 0.125, %v14167_v23  ;;  %v5903_v49 = vpop.f32.mrb[97].mxu1  ;;  %14320 = vmatmul.mubr.f32.gmra.mrb[118].mxu0 %v17705_v4  ;;  %15183 = vmatprep.subr.bf16.mxu0 %v15182_v3  ;;  %v6687_v13 = vsel %vm6559_vm9, %v6495_v25, %v6623_v63 }
 0x38b   : > { %v6496_v38 = vmul.f32 0.125, %v5903_v49  ;;  %15185 = vmatpush3.bf16.msra.mxu0 %v15182_v3  ;;  %14354 = vmatprep.mubr.f32.mxu0 %v17610_v50  ;;  %v6686_v33 = vsel %vm6558_vm10, %v6494_v53, %v6622_v54 }
 0x38c   : > { %vm6561_vm11 = vcmp.gt.f32.partialorder %v6497_v35, 0.0  ;;  %v6625_v59 = vmul.f32 0.01, %v6497_v35  ;;  %v15186_v7 = vpack.c.bf16 %v6687_v13, %v6686_v33 }
 0x38d   : > { %vm6560_vm12 = vcmp.gt.f32.partialorder %v6496_v38, 0.0  ;;  %v6624_v26 = vmul.f32 0.01, %v6496_v38  ;;  %v14174_v42 = vpop.f32.mrb[82].mxu0 }
 0x38e   : > { %v6499_v37 = vmul.f32 0.125, %v14174_v42  ;;  %v5992_v61 = vpop.f32.mrb[83].mxu0  ;;  %14355 = vmatmul.mubr.f32.vlgmr.msra.gmra.mrb[120].mxu0 %v17621_v11  ;;  %15187 = vmatprep.subr.bf16.mxu0 %v15186_v7  ;;  %v6689_v14 = vsel %vm6561_vm11, %v6497_v35, %v6625_v59  ;;  %v15614_v42 = vpop.permute.xlu1 %15613 }
 0x38f   : > { %v6498_v17 = vmul.f32 0.125, %v5992_v61  ;;  %15189 = vmatpush3.bf16.msra.mxu0 %v15186_v7  ;;  %14357 = vmatprep.mubr.f32.mxu0 %v17626_v52  ;;  %v6688_v22 = vsel %vm6560_vm12, %v6496_v38, %v6624_v26 }
 0x390   : > { %vm6563_vm13 = vcmp.gt.f32.partialorder %v6499_v37, 0.0  ;;  %v6627_v29 = vmul.f32 0.01, %v6499_v37  ;;  %v15190_v18 = vpack.c.bf16 %v6689_v14, %v6688_v22 }
 0x391   : > { %vm6562_vm14 = vcmp.gt.f32.partialorder %v6498_v17, 0.0  ;;  %v6626_v12 = vmul.f32 0.01, %v6498_v17  ;;  %v14181_v44 = vpop.f32.mrb[98].mxu1 }
 0x392   : > { %v6501_v30 = vmul.f32 0.125, %v14181_v44  ;;  %v6081_v34 = vpop.f32.mrb[99].mxu1  ;;  %14358 = vmatmul.mubr.f32.gmra.mrb[122].mxu0 %v17633_v5  ;;  %15191 = vmatprep.subr.bf16.mxu0 %v15190_v18  ;;  %v6691_v36 = vsel %vm6563_vm13, %v6499_v37, %v6627_v29 }
 0x393   : > { %v6500_v46 = vmul.f32 0.125, %v6081_v34  ;;  %15193 = vmatpush3.bf16.msra.mxu0 %v15190_v18  ;;  %14360 = vmatprep.mubr.f32.mxu0 %v17638_v28  ;;  %v6690_v24 = vsel %vm6562_vm14, %v6498_v17, %v6626_v12  ;;  %v15615_v34 = vunpack.i.l.bf16 %v15614_v42 }
 0x394   : > { %vm6565_vm15 = vcmp.gt.f32.partialorder %v6501_v30, 0.0  ;;  %v6629_v60 = vmul.f32 0.01, %v6501_v30  ;;  %v15194_v9 = vpack.c.bf16 %v6691_v36, %v6690_v24 }
 0x395   : > { %vm6564_vm2 = vcmp.gt.f32.partialorder %v6500_v46, 0.0  ;;  %v6628_v58 = vmul.f32 0.01, %v6500_v46  ;;  %v14188_v1 = vpop.f32.mrb[84].mxu0 }
 0x396   : > { %v6503_v2 = vmul.f32 0.125, %v14188_v1  ;;  %v6170_v39 = vpop.f32.mrb[85].mxu0  ;;  %14361 = vmatmul.mubr.f32.gmra.mrb[124].mxu0 %v17645_v21  ;;  %15195 = vmatprep.subr.bf16.mxu0 %v15194_v9  ;;  %v6693_v40 = vsel %vm6565_vm15, %v6501_v30, %v6629_v60  ;;  %v15616_v30 = vunpack.i.h.bf16 %v15614_v42 }
 0x397   : > { %v6502_v43 = vmul.f32 0.125, %v6170_v39  ;;  %15197 = vmatpush3.bf16.msra.mxu0 %v15194_v9  ;;  %14363 = vmatprep.mubr.f32.mxu0 %v17650_v10  ;;  %v6692_v56 = vsel %vm6564_vm2, %v6500_v46, %v6628_v58  ;;  %v15619_v46 = vpop.permute.xlu1 %15618 }
 0x398   : > { %vm6567_vm3 = vcmp.gt.f32.partialorder %v6503_v2, 0.0  ;;  %v6631_v47 = vmul.f32 0.01, %v6503_v2  ;;  %v15198_v0 = vpack.c.bf16 %v6693_v40, %v6692_v56  ;;  %v15621_v9 = vunpack.i.h.bf16 %v15619_v46  ;;  %v16161_v40 = vld [vmem:[%s16532_s18 + $0x20] sm:$0xff] }
 0x399   : > { %vm6566_vm4 = vcmp.gt.f32.partialorder %v6502_v43, 0.0  ;;  %v6630_v19 = vmul.f32 0.01, %v6502_v43  ;;  %v14195_v27 = vpop.f32.mrb[100].mxu1  ;;  %v15620_v58 = vunpack.i.l.bf16 %v15619_v46  ;;  %v15218_v1 = vpack.c.bf16 %v15616_v30, %v15615_v34 }
 0x39a   : > { %v6505_v25 = vmul.f32 0.125, %v14195_v27  ;;  %v6259_v57 = vpop.f32.mrb[101].mxu1  ;;  %14364 = vmatmul.mubr.f32.gmra.mrb[126].mxu0 %v17657_v48  ;;  %15199 = vmatprep.subr.bf16.mxu0 %v15198_v0  ;;  %v6695_v8 = vsel %vm6567_vm3, %v6503_v2, %v6631_v47  ;;  %vm7302_vm2 = vcmp.gt.f32.partialorder %v16161_v40, 0.0 }
 0x39b   : > { %v6504_v53 = vmul.f32 0.125, %v6259_v57  ;;  %15201 = vmatpush3.bf16.msra.mxu0 %v15198_v0  ;;  %14366 = vmatprep.mubr.f32.mxu0 %v17662_v62  ;;  %v6694_v31 = vsel %vm6566_vm4, %v6502_v43, %v6630_v19  ;;  %v17742_v2 = vpack.c.bf16 %v15621_v9, %v15620_v58  ;;  %v16162_v0 = vld [vmem:[%s16532_s18 + $0x38] sm:$0xff]  ;;  %v16170_v9 = vld [vmem:[%s16532_s18 + $0x60] sm:$0xff] }
 0x39c   : > { %vm6569_vm5 = vcmp.gt.f32.partialorder %v6505_v25, 0.0  ;;  %v6633_v63 = vmul.f32 0.01, %v6505_v25  ;;  %v15202_v3 = vpack.c.bf16 %v6695_v8, %v6694_v31  ;;  %vm7305_vm3 = vcmp.gt.f32.partialorder %v16162_v0, 0.0  ;;  %v16175_v0 = vld [vmem:[%s16532_s18 + $0xb0] sm:$0xff] }
 0x39d   : > { %vm6568_vm6 = vcmp.gt.f32.partialorder %v6504_v53, 0.0  ;;  %v6632_v54 = vmul.f32 0.01, %v6504_v53  ;;  %v14202_v23 = vpop.f32.mrb[86].mxu0  ;;  %19561 = vst [vmem:[#allocation20_spill] sm:$0xff] %v17742_v2 }
 0x39e   : > { %v6507_v35 = vmul.f32 0.125, %v14202_v23  ;;  %v6348_v49 = vpop.f32.mrb[87].mxu0  ;;  %14367 = vmatmul.mubr.f32.gmra.mrb[128].mxu0 %v17669_v51  ;;  %15203 = vmatprep.subr.bf16.mxu0 %v15202_v3  ;;  %v6697_v13 = vsel %vm6569_vm5, %v6505_v25, %v6633_v63  ;;  %v16163_v25 = vld [vmem:[%s16532_s18 + $0x30] sm:$0xff] }
 0x39f   : > { %v6506_v38 = vmul.f32 0.125, %v6348_v49  ;;  %15205 = vmatpush3.bf16.msra.mxu0 %v15202_v3  ;;  %14369 = vmatprep.mubr.f32.mxu0 %v17674_v41  ;;  %v6696_v33 = vsel %vm6568_vm6, %v6504_v53, %v6632_v54  ;;  %vm7304_vm4 = vcmp.gt.f32.partialorder %v16163_v25, 0.0  ;;  %v16164_v54 = vld [vmem:[%s16532_s18 + $0x48] sm:$0xff] }
 0x3a0   : > { %vm6571_vm7 = vcmp.gt.f32.partialorder %v6507_v35, 0.0  ;;  %v6635_v59 = vmul.f32 0.01, %v6507_v35  ;;  %v15206_v7 = vpack.c.bf16 %v6697_v13, %v6696_v33  ;;  %vm7307_vm5 = vcmp.gt.f32.partialorder %v16164_v54, 0.0  ;;  %v16166_v33 = vld [vmem:[%s16532_s18 + $0x40] sm:$0xff] }
 0x3a1   : > { %vm6570_vm8 = vcmp.gt.f32.partialorder %v6506_v38, 0.0  ;;  %v6634_v26 = vmul.f32 0.01, %v6506_v38 }
 0x3a2   : > { %v14209_v37 = vpop.f32.mrb[102].mxu1  ;;  %14370 = vmatmul.mubr.f32.gmra.mrb[130].mxu0 %v17681_v15  ;;  %15207 = vmatprep.subr.bf16.mxu0 %v15206_v7  ;;  %v6699_v61 = vsel %vm6571_vm7, %v6507_v35, %v6635_v59  ;;  %vm7306_vm7 = vcmp.gt.f32.partialorder %v16166_v33, 0.0 }
 0x3a3   : > { %v6509_v14 = vmul.f32 0.125, %v14209_v37  ;;  %v6437_v17 = vpop.f32.mrb[103].mxu1  ;;  %15209 = vmatpush3.bf16.msra.mxu0 %v15206_v7  ;;  %14372 = vmatprep.mubr.f32.mxu0 %v17686_v45  ;;  %v6698_v22 = vsel %vm6570_vm8, %v6506_v38, %v6634_v26  ;;  %v16165_v38 = vld [vmem:[%s16532_s18 + $0x58] sm:$0xff] }
 0x3a4   : > { %v6508_v29 = vmul.f32 0.125, %v6437_v17  ;;  %v15210_v18 = vpack.c.bf16 %v6699_v61, %v6698_v22  ;;  %vm7309_vm6 = vcmp.gt.f32.partialorder %v16165_v38, 0.0  ;;  %v16167_v61 = vld [vmem:[%s16532_s18 + $0x50] sm:$0xff] }
 0x3a5   : > { %vm6573_vm9 = vcmp.gt.f32.partialorder %v6509_v14, 0.0  ;;  %v6637_v12 = vmul.f32 0.01, %v6509_v14  ;;  %vm7308_vm8 = vcmp.gt.f32.partialorder %v16167_v61, 0.0  ;;  %v16180_v61 = vld [vmem:[%s16532_s18 + $0xa8] sm:$0xff] }
 0x3a6   : > { %vm6572_vm10 = vcmp.gt.f32.partialorder %v6508_v29, 0.0  ;;  %v6636_v44 = vmul.f32 0.01, %v6508_v29  ;;  %14373 = vmatmul.mubr.f32.gmra.mrb[132].mxu0 %v17693_v32  ;;  %15211 = vmatprep.subr.bf16.mxu0 %v15210_v18 }
 0x3a7   : > { %15213 = vmatpush3.bf16.msra.mxu0 %v15210_v18  ;;  %14375 = vmatprep.mubr.f32.mxu0 %v17698_v55  ;;  %v6701_v36 = vsel %vm6573_vm9, %v6509_v14, %v6637_v12  ;;  %v16168_v18 = vld [vmem:[%s16532_s18 + $0x68] sm:$0xff] }
 0x3a8   : > { %v6700_v24 = vsel %vm6572_vm10, %v6508_v29, %v6636_v44  ;;  %vm7311_vm9 = vcmp.gt.f32.partialorder %v16168_v18, 0.0  ;;  %v16169_v44 = vld [vmem:[%s16532_s18 + $0x78] sm:$0xff] }
 0x3a9   : > { %v15214_v60 = vpack.c.bf16 %v6701_v36, %v6700_v24  ;;  %vm7313_vm10 = vcmp.gt.f32.partialorder %v16169_v44, 0.0 }
 0x3aa   : > { %14376 = vmatmul.mubr.f32.gmra.mrb[134].mxu0 %v17705_v4 }
 0x3ab   : > { %15215 = vmatprep.subr.bf16.mxu0 %v15214_v60  ;;  %14410 = vmatprep.mubr.f32.mxu0 %v17610_v50  ;;  %v16156_v50 = vld [vmem:[%s16532_s18 + $0x8] sm:$0xff] }
 0x3ac   : > { %15217 = vmatpush3.bf16.msra.mxu0 %v15214_v60  ;;  %vm7299_vm11 = vcmp.gt.f32.partialorder %v16156_v50, 0.0 }
 0x3ad   : > { %15219 = vmatprep.subr.bf16.mxu0 %v15218_v1 }
 0x3af   : > { %14411 = vmatmul.mubr.f32.vlgmr.msra.gmra.mrb[136].mxu0 %v17621_v11  ;;  %v16157_v11 = vld [vmem:[%s16532_s18] sm:$0xff] }
 0x3b0   : > { %15221 = vmatpush3.bf16.msra.mxu0 %v15218_v1  ;;  %14413 = vmatprep.mubr.f32.mxu0 %v17626_v52  ;;  %vm7298_vm12 = vcmp.gt.f32.partialorder %v16157_v11, 0.0  ;;  %v16171_v11 = vld [vmem:[%s16532_s18 + $0x98] sm:$0xff] }
 0x3b1   : > { %15223 = vmatprep.subr.bf16.mxu0 %v17742_v2 }
 0x3b3   : > { %14414 = vmatmul.mubr.f32.gmra.mrb[138].mxu0 %v17633_v5 }
 0x3b4   : > { %14416 = vmatprep.mubr.f32.mxu0 %v17638_v28 }
 0x3b7   : > { %14417 = vmatmul.mubr.f32.gmra.mrb[140].mxu0 %v17645_v21 }
 0x3b8   : > { %14419 = vmatprep.mubr.f32.mxu0 %v17650_v10 }
 0x3bb   : > { %14420 = vmatmul.mubr.f32.gmra.mrb[142].mxu0 %v17657_v48  ;;  %v16158_v48 = vld [vmem:[%s16532_s18 + $0x18] sm:$0xff] }
 0x3bc   : > { %14422 = vmatprep.mubr.f32.mxu0 %v17662_v62  ;;  %vm7301_vm13 = vcmp.gt.f32.partialorder %v16158_v48, 0.0 }
 0x3bf   : > { %14423 = vmatmul.mubr.f32.gmra.mrb[144].mxu0 %v17669_v51 }
 0x3c0   : > { %14425 = vmatprep.mubr.f32.mxu0 %v17674_v41 }
 0x3c3   : > { %14426 = vmatmul.mubr.f32.gmra.mrb[146].mxu0 %v17681_v15 }
 0x3c4   : > { %14428 = vmatprep.mubr.f32.mxu0 %v17686_v45  ;;  %v16159_v45 = vld [vmem:[%s16532_s18 + $0x10] sm:$0xff] }
 0x3c5   : > { %vm7300_vm14 = vcmp.gt.f32.partialorder %v16159_v45, 0.0 }
 0x3c7   : > { %14429 = vmatmul.mubr.f32.gmra.mrb[148].mxu0 %v17693_v32 }
 0x3c8   : > { %14431 = vmatprep.mubr.f32.mxu0 %v17698_v55  ;;  %v16160_v55 = vld [vmem:[%s16532_s18 + $0x28] sm:$0xff] }
 0x3c9   : > { %vm7303_vm15 = vcmp.gt.f32.partialorder %v16160_v55, 0.0 }
 0x3cb   : > { %14432 = vmatmul.mubr.f32.gmra.mrb[150].mxu0 %v17705_v4 }
 0x421   : > { %v14244_v52 = vpop.f32.mrb[88].mxu0 }
 0x422   : > { %v17761_v5 = vsel %vm7299_vm11, %v14244_v52, -1e+30  ;;  %v6784_v28 = vpop.f32.mrb[89].mxu0  ;;  %vm7310_vm11 = vcmp.gt.f32.partialorder %v16170_v9, 0.0 }
 0x423   : > { %v17763_v21 = vsel %vm7298_vm12, %v6784_v28, -1e+30  ;;  %v7429_v10 = vsel %vm1005_vm1, %v17761_v5, -inf  ;;  %vm7317_vm12 = vcmp.gt.f32.partialorder %v16171_v11, 0.0  ;;  %v16172_v28 = vld [vmem:[%s16532_s18 + $0x70] sm:$0xff] }
 0x424   : > { %7430 = vmax.xlane.f32.xlu1 %v7429_v10  ;;  %v7426_v62 = vsel %vm1005_vm1, %v17763_v21, -inf }
 0x425   : > { %7427 = vmax.xlane.f32.xlu0 %v7426_v62  ;;  %v14247_v51 = vpop.f32.mrb[90].mxu0 }
 0x426   : > { %v17770_v41 = vsel %vm7301_vm13, %v14247_v51, -1e+30  ;;  %v6794_v15 = vpop.f32.mrb[91].mxu0  ;;  %vm7312_vm13 = vcmp.gt.f32.partialorder %v16172_v28, 0.0  ;;  %v16183_v28 = vld [vmem:[%s16532_s18 + $0xf0] sm:$0xff] }
 0x427   : > { %v7435_v32 = vsel %vm1005_vm1, %v17770_v41, -inf  ;;  %v17776_v4 = vsel %vm7300_vm14, %v6794_v15, -1e+30 }
 0x428   : > { %v7432_v19 = vsel %vm1005_vm1, %v17776_v4, -inf }
 0x429   : > { %7436 = vmax.xlane.f32.xlu0 %v7435_v32  ;;  %v14250_v39 = vpop.f32.mrb[92].mxu0  ;;  %v16173_v32 = vld [vmem:[%s16532_s18 + $0x88] sm:$0xff] }
 0x42a   : > { %v17779_v43 = vsel %vm7303_vm15, %v14250_v39, -1e+30  ;;  %v6804_v56 = vpop.f32.mrb[93].mxu0  ;;  %vm7315_vm14 = vcmp.gt.f32.partialorder %v16173_v32, 0.0 }
 0x42b   : > { %v7441_v47 = vsel %vm1005_vm1, %v17779_v43, -inf  ;;  %v17786_v27 = vsel %vm7302_vm2, %v6804_v56, -1e+30  ;;  %v16174_v56 = vld [vmem:[%s16532_s18 + $0xb8] sm:$0xff]  ;;  %vm7320_vm2 = vcmp.gt.f32.partialorder %v16175_v0, 0.0 }
 0x42c   : > { %7442 = vmax.xlane.f32.xlu1 %v7441_v47  ;;  %v7438_v31 = vsel %vm1005_vm1, %v17786_v27, -inf  ;;  %vm7321_vm15 = vcmp.gt.f32.partialorder %v16174_v56, 0.0  ;;  %v16185_v56 = vld [vmem:[%s16532_s18 + $0xc0] sm:$0xff] }
 0x42d   : > { %7433 = vmax.xlane.f32.xlu0 %v7432_v19  ;;  %v14253_v57 = vpop.f32.mrb[94].mxu0  ;;  %v16176_v19 = vld [vmem:[%s16532_s18 + $0x80] sm:$0xff] }
 0x42e   : > { %v17789_v8 = vsel %vm7305_vm3, %v14253_v57, -1e+30  ;;  %v6814_v53 = vpop.f32.mrb[95].mxu0  ;;  %vm7314_vm3 = vcmp.gt.f32.partialorder %v16176_v19, 0.0 }
 0x42f   : > { %v7447_v63 = vsel %vm1005_vm1, %v17789_v8, -inf  ;;  %v17795_v3 = vsel %vm7304_vm4, %v6814_v53, -1e+30 }
 0x430   : > { %7439 = vmax.xlane.f32.xlu1 %v7438_v31  ;;  %v7444_v35 = vsel %vm1005_vm1, %v17795_v3, -inf }
 0x431   : > { %7448 = vmax.xlane.f32.xlu0 %v7447_v63  ;;  %v14256_v23 = vpop.f32.mrb[96].mxu0 }
 0x432   : > { %v17800_v49 = vsel %vm7307_vm5, %v14256_v23, -1e+30  ;;  %v6824_v13 = vpop.f32.mrb[97].mxu0 }
 0x433   : > { %v7453_v7 = vsel %vm1005_vm1, %v17800_v49, -inf  ;;  %v17811_v14 = vsel %vm7306_vm7, %v6824_v13, -1e+30  ;;  %vm7319_vm7 = vcmp.gt.f32.partialorder %v16180_v61, 0.0 }
 0x434   : > { %7445 = vmax.xlane.f32.xlu1 %v7444_v35  ;;  %v7450_v12 = vsel %vm1005_vm1, %v17811_v14, -inf  ;;  %v16177_v35 = vld [vmem:[%s16532_s18 + $0x90] sm:$0xff] }
 0x435   : > { %v14259_v59 = vpop.f32.mrb[98].mxu0  ;;  %vm7316_vm4 = vcmp.gt.f32.partialorder %v16177_v35, 0.0  ;;  %v16187_v35 = vld [vmem:[%s16532_s18 + $0x110] sm:$0xff] }
 0x436   : > { %v17806_v26 = vsel %vm7309_vm6, %v14259_v59, -1e+30  ;;  %v6834_v42 = vpop.f32.mrb[99].mxu0 }
 0x437   : > { %v7459_v37 = vsel %vm1005_vm1, %v17806_v26, -inf  ;;  %v17813_v22 = vsel %vm7308_vm8, %v6834_v42, -1e+30 }
 0x438   : > { %7454 = vmax.xlane.f32.xlu1 %v7453_v7  ;;  %7460 = vmax.xlane.f32.xlu0 %v7459_v37  ;;  %v7456_v34 = vsel %vm1005_vm1, %v17813_v22, -inf  ;;  %v16178_v7 = vld [vmem:[%s16532_s18 + $0xd8] sm:$0xff]  ;;  %v16179_v37 = vld [vmem:[%s16532_s18 + $0xd0] sm:$0xff] }
 0x439   : > { %v14262_v17 = vpop.f32.mrb[100].mxu0  ;;  %vm7325_vm5 = vcmp.gt.f32.partialorder %v16178_v7, 0.0  ;;  %vm7324_vm6 = vcmp.gt.f32.partialorder %v16179_v37, 0.0 }
 0x43a   : > { %v6844_v29 = vpop.f32.mrb[101].mxu0  ;;  %v17821_v36 = vsel %vm7311_vm9, %v14262_v17, -1e+30 }
 0x43b   : > { %v7465_v1 = vsel %vm1005_vm1, %v17821_v36, -inf  ;;  %v17831_v52 = vsel %vm7310_vm11, %v6844_v29, -1e+30 }
 0x43c   : > { %7451 = vmax.xlane.f32.xlu1 %v7450_v12  ;;  %v7462_v51 = vsel %vm1005_vm1, %v17831_v52, -inf }
 0x43d   : > { %v14265_v30 = vpop.f32.mrb[102].mxu0 }
 0x43e   : > { %v17823_v46 = vsel %vm7313_vm10, %v14265_v30, -1e+30  ;;  %v6854_v24 = vpop.f32.mrb[103].mxu0  ;;  %vm7328_vm10 = vcmp.gt.f32.partialorder %v16183_v28, 0.0 }
 0x43f   : > { %v7471_v60 = vsel %vm1005_vm1, %v17823_v46, -inf  ;;  %v17840_v45 = vsel %vm7312_vm13, %v6854_v24, -1e+30  ;;  %v16181_v24 = vld [vmem:[%s16532_s18 + $0xa0] sm:$0xff] }
 0x440   : > { %7457 = vmax.xlane.f32.xlu1 %v7456_v34  ;;  %7472 = vmax.xlane.f32.xlu0 %v7471_v60  ;;  %v7468_v40 = vsel %vm1005_vm1, %v17840_v45, -inf  ;;  %vm7318_vm8 = vcmp.gt.f32.partialorder %v16181_v24, 0.0 }
 0x441   : > { %v14300_v58 = vpop.f32.mrb[104].mxu0 }
 0x442   : > { %v6929_v50 = vpop.f32.mrb[105].mxu0  ;;  %v17846_v47 = vsel %vm7315_vm14, %v14300_v58, -1e+30  ;;  %vm7332_vm14 = vcmp.gt.f32.partialorder %v16187_v35, 0.0  ;;  %v16194_v35 = vld [vmem:[%s16532_s18 + $0x100] sm:$0xff] }
 0x443   : > { %v7477_v31 = vsel %vm1005_vm1, %v17846_v47, -inf  ;;  %v17858_v23 = vsel %vm7314_vm3, %v6929_v50, -1e+30  ;;  %v16182_v50 = vld [vmem:[%s16532_s18 + $0xf8] sm:$0xff] }
 0x444   : > { %7466 = vmax.xlane.f32.xlu1 %v7465_v1  ;;  %v7474_v59 = vsel %vm1005_vm1, %v17858_v23, -inf  ;;  %vm7329_vm9 = vcmp.gt.f32.partialorder %v16182_v50, 0.0  ;;  %v17926_v50 = vpop.permute.xlu1 %15628 }
 0x445   : > { %v14303_v10 = vpop.f32.mrb[106].mxu0  ;;  %19562 = vst [vmem:[#allocation21_spill] sm:$0xff] %v17926_v50  ;;  %v16206_v50 = vld [vmem:[%s16532_s18 + $0x188] sm:$0xff] }
 0x446   : > { %v17834_v48 = vsel %vm7317_vm12, %v14303_v10, -1e+30  ;;  %v6939_v62 = vpop.f32.mrb[107].mxu0  ;;  %v16184_v10 = vld [vmem:[%s16532_s18 + $0xc8] sm:$0xff]  ;;  %vm7322_vm12 = vcmp.gt.f32.partialorder %v16185_v56, 0.0 }
 0x447   : > { %v7483_v15 = vsel %vm1005_vm1, %v17834_v48, -inf  ;;  %v17866_v42 = vsel %vm7316_vm4, %v6939_v62, -1e+30  ;;  %vm7323_vm11 = vcmp.gt.f32.partialorder %v16184_v10, 0.0 }
 0x448   : > { %7463 = vmax.xlane.f32.xlu1 %v7462_v51  ;;  %7484 = vmax.xlane.f32.xlu0 %v7483_v15  ;;  %v7480_v12 = vsel %vm1005_vm1, %v17866_v42, -inf }
 0x449   : > { %v14306_v55 = vpop.f32.mrb[108].mxu0 }
 0x44a   : > { %v6949_v39 = vpop.f32.mrb[109].mxu0  ;;  %v17878_v34 = vsel %vm7319_vm7, %v14306_v55, -1e+30  ;;  %vm7330_vm7 = vcmp.gt.f32.partialorder %v16194_v35, 0.0 }
 0x44b   : > { %v7489_v1 = vsel %vm1005_vm1, %v17878_v34, -inf  ;;  %v17886_v11 = vsel %vm7318_vm8, %v6949_v39, -1e+30 }
 0x44c   : > { %7469 = vmax.xlane.f32.xlu1 %v7468_v40  ;;  %v7486_v32 = vsel %vm1005_vm1, %v17886_v11, -inf }
 0x44d   : > { %v14309_v25 = vpop.f32.mrb[110].mxu0 }
 0x44e   : > { %v17850_v57 = vsel %vm7321_vm15, %v14309_v25, -1e+30  ;;  %v6959_v53 = vpop.f32.mrb[111].mxu0 }
 0x44f   : > { %v7495_v63 = vsel %vm1005_vm1, %v17850_v57, -inf  ;;  %v17856_v54 = vsel %vm7320_vm2, %v6959_v53, -1e+30 }
 0x450   : > { %7478 = vmax.xlane.f32.xlu1 %v7477_v31  ;;  %7496 = vmax.xlane.f32.xlu0 %v7495_v63  ;;  %v7492_v38 = vsel %vm1005_vm1, %v17856_v54, -inf  ;;  %v16186_v31 = vld [vmem:[%s16532_s18 + $0x118] sm:$0xff] }
 0x451   : > { %v14312_v13 = vpop.f32.mrb[112].mxu0  ;;  %vm7333_vm13 = vcmp.gt.f32.partialorder %v16186_v31, 0.0  ;;  %v17943_v31 = vpop.permute.xlu1 %15638 }
 0x452   : > { %v6969_v33 = vpop.f32.mrb[113].mxu0  ;;  %v17898_v40 = vsel %vm7323_vm11, %v14312_v13, -1e+30  ;;  %v16188_v13 = vld [vmem:[%s16532_s18 + $0xe8] sm:$0xff]  ;;  %19563 = vst [vmem:[#allocation38_spill] sm:$0xff] %v17943_v31 }
 0x453   : > { %v7501_v53 = vsel %vm1005_vm1, %v17898_v40, -inf  ;;  %v17906_v63 = vsel %vm7322_vm12, %v6969_v33, -1e+30  ;;  %vm7327_vm15 = vcmp.gt.f32.partialorder %v16188_v13, 0.0 }
 0x454   : > { %7475 = vmax.xlane.f32.xlu1 %v7474_v59  ;;  %7493 = vmax.xlane.f32.xlu0 %v7492_v38  ;;  %v7498_v37 = vsel %vm1005_vm1, %v17906_v63, -inf }
 0x455   : > { %v14315_v17 = vpop.f32.mrb[114].mxu0 }
 0x456   : > { %v17870_v29 = vsel %vm7325_vm5, %v14315_v17, -1e+30  ;;  %v6979_v18 = vpop.f32.mrb[115].mxu0  ;;  %v16189_v17 = vld [vmem:[%s16532_s18 + $0x128] sm:$0xff] }
 0x457   : > { %v7507_v44 = vsel %vm1005_vm1, %v17870_v29, -inf  ;;  %v17876_v30 = vsel %vm7324_vm6, %v6979_v18, -1e+30  ;;  %vm7335_vm2 = vcmp.gt.f32.partialorder %v16189_v17, 0.0 }
 0x458   : > { %7481 = vmax.xlane.f32.xlu1 %v7480_v12  ;;  %7508 = vmax.xlane.f32.xlu0 %v7507_v44  ;;  %v7504_v9 = vsel %vm1005_vm1, %v17876_v30, -inf  ;;  %v16190_v12 = vld [vmem:[%s16532_s18 + $0xe0] sm:$0xff] }
 0x459   : > { %v14318_v60 = vpop.f32.mrb[116].mxu0  ;;  %vm7326_vm3 = vcmp.gt.f32.partialorder %v16190_v12, 0.0  ;;  %v16196_v12 = vld [vmem:[%s16532_s18 + $0x120] sm:$0xff] }
 0x45a   : > { %v6989_v58 = vpop.f32.mrb[117].mxu0  ;;  %v17919_v18 = vsel %vm7327_vm15, %v14318_v60, -1e+30  ;;  %v16191_v60 = vld [vmem:[%s16532_s18 + $0x138] sm:$0xff] }
 0x45b   : > { %v7513_v28 = vsel %vm1005_vm1, %v17919_v18, -inf  ;;  %vm7337_vm4 = vcmp.gt.f32.partialorder %v16191_v60, 0.0  ;;  %v17931_v10 = vsel %vm7326_vm3, %v6989_v58, -1e+30  ;;  %vm7344_vm3 = vcmp.gt.f32.partialorder %v16204_v16, 0.0 }
 0x45c   : > { %7490 = vmax.xlane.f32.xlu1 %v7489_v1  ;;  %7505 = vmax.xlane.f32.xlu0 %v7504_v9 }
 0x45d   : > { %v14321_v62 = vpop.f32.mrb[118].mxu0 }
 0x45e   : > { %v17890_v51 = vsel %vm7329_vm9, %v14321_v62, -1e+30  ;;  %v6999_v15 = vpop.f32.mrb[119].mxu0  ;;  %v16192_v62 = vld [vmem:[%s16532_s18 + $0x108] sm:$0xff]  ;;  %vm7334_vm9 = vcmp.gt.f32.partialorder %v16196_v12, 0.0  ;;  %v16200_v12 = vld [vmem:[%s16532_s18 + $0x160] sm:$0xff] }
 0x45f   : > { %v7519_v55 = vsel %vm1005_vm1, %v17890_v51, -inf  ;;  %v17896_v39 = vsel %vm7328_vm10, %v6999_v15, -1e+30  ;;  %vm7331_vm5 = vcmp.gt.f32.partialorder %v16192_v62, 0.0  ;;  %v17960_v62 = vpop.permute.xlu1 %15648 }
 0x460   : > { %7487 = vmax.xlane.f32.xlu1 %v7486_v32  ;;  %7520 = vmax.xlane.f32.xlu0 %v7519_v55  ;;  %v7516_v19 = vsel %vm1005_vm1, %v17896_v39, -inf  ;;  %19564 = vst [vmem:[#allocation42_spill] sm:$0xff] %v17960_v62 }
 0x461   : > { %v14356_v0 = vpop.f32.mrb[120].mxu0 }
 0x462   : > { %v7074_v25 = vpop.f32.mrb[121].mxu0  ;;  %v17941_v58 = vsel %vm7331_vm5, %v14356_v0, -1e+30  ;;  %v16195_v0 = vld [vmem:[%s16532_s18 + $0x148] sm:$0xff]  ;;  %vm7347_vm5 = vcmp.gt.f32.partialorder %v16206_v50, 0.0 }
 0x463   : > { %vm7339_vm8 = vcmp.gt.f32.partialorder %v16195_v0, 0.0  ;;  %v17953_v17 = vsel %vm7330_vm7, %v7074_v25, -1e+30  ;;  %v16197_v25 = vld [vmem:[%s16532_s18 + $0x140] sm:$0xff]  ;;  %v16199_v0 = vld [vmem:[%s16532_s18 + $0x150] sm:$0xff] }
 0x464   : > { %7502 = vmax.xlane.f32.xlu1 %v7501_v53  ;;  %7517 = vmax.xlane.f32.xlu0 %v7516_v19  ;;  %v7510_v19 = vsel %vm1005_vm1, %v17931_v10, -inf  ;;  %v16193_v53 = vld [vmem:[%s16532_s18 + $0x130] sm:$0xff]  ;;  %vm7338_vm10 = vcmp.gt.f32.partialorder %v16197_v25, 0.0  ;;  %vm7340_vm12 = vcmp.gt.f32.partialorder %v16199_v0, 0.0  ;;  %v16201_v0 = vld [vmem:[%s16532_s18 + $0x168] sm:$0xff] }
 0x465   : > { %v14359_v38 = vpop.f32.mrb[122].mxu0  ;;  %vm7336_vm6 = vcmp.gt.f32.partialorder %v16193_v53, 0.0 }
 0x466   : > { %v17910_v59 = vsel %vm7333_vm13, %v14359_v38, -1e+30  ;;  %v7084_v7 = vpop.f32.mrb[123].mxu0  ;;  %vm7342_vm13 = vcmp.gt.f32.partialorder %v16200_v12, 0.0  ;;  %v16202_v12 = vld [vmem:[%s16532_s18 + $0x180] sm:$0xff] }
 0x467   : > { %v7531_v61 = vsel %vm1005_vm1, %v17910_v59, -inf  ;;  %v17916_v33 = vsel %vm7332_vm14, %v7084_v7, -1e+30  ;;  %vm7343_vm14 = vcmp.gt.f32.partialorder %v16201_v0, 0.0  ;;  %vm7346_vm15 = vcmp.gt.f32.partialorder %v16202_v12, 0.0 }
 0x468   : > { %7499 = vmax.xlane.f32.xlu1 %v7498_v37  ;;  %7532 = vmax.xlane.f32.xlu0 %v7531_v61  ;;  %v7528_v44 = vsel %vm1005_vm1, %v17916_v33, -inf  ;;  %v7525_v61 = vsel %vm1005_vm1, %v17941_v58, -inf }
 0x469   : > { %v14362_v24 = vpop.f32.mrb[124].mxu0 }
 0x46a   : > { %v17924_v9 = vsel %vm7335_vm2, %v14362_v24, -1e+30  ;;  %v7094_v1 = vpop.f32.mrb[125].mxu0 }
 0x46b   : > { %v7537_v15 = vsel %vm1005_vm1, %v17924_v9, -inf }
 0x46c   : > { %7514 = vmax.xlane.f32.xlu1 %v7513_v28  ;;  %7529 = vmax.xlane.f32.xlu0 %v7528_v44 }
 0x46d   : > { %v14365_v32 = vpop.f32.mrb[126].mxu0 }
 0x46e   : > { %v17936_v55 = vsel %vm7337_vm4, %v14365_v32, -1e+30  ;;  %v7104_v56 = vpop.f32.mrb[127].mxu0  ;;  %v16198_v32 = vld [vmem:[%s16532_s18 + $0x158] sm:$0xff] }
 0x46f   : > { %v7543_v13 = vsel %vm1005_vm1, %v17936_v55, -inf  ;;  %v17948_v7 = vsel %vm7336_vm6, %v7104_v56, -1e+30  ;;  %vm7341_vm11 = vcmp.gt.f32.partialorder %v16198_v32, 0.0  ;;  %v17966_v56 = vsel %vm7334_vm9, %v7094_v1, -1e+30  ;;  %v17978_v1 = vpop.permute.xlu1 %15658 }
 0x470   : > { %7511 = vmax.xlane.f32.xlu1 %v7510_v19  ;;  %7538 = vmax.xlane.f32.xlu0 %v7537_v15  ;;  %v7540_v44 = vsel %vm1005_vm1, %v17948_v7, -inf  ;;  %v7522_v15 = vsel %vm1005_vm1, %v17953_v17, -inf  ;;  %19565 = vst [vmem:[#allocation18_spill] sm:$0xff] %v17978_v1 }
 0x471   : > { %v14368_v38 = vpop.f32.mrb[128].mxu0 }
 0x472   : > { %v7114_v37 = vpop.f32.mrb[129].mxu0  ;;  %v17958_v28 = vsel %vm7339_vm8, %v14368_v38, -1e+30 }
 0x473   : > { %v7549_v19 = vsel %vm1005_vm1, %v17958_v28, -inf  ;;  %v17970_v35 = vsel %vm7338_vm10, %v7114_v37, -1e+30  ;;  %v17996_v62 = vpop.permute.xlu1 %15668 }
 0x474   : > { %7526 = vmax.xlane.f32.xlu1 %v7525_v61  ;;  %7544 = vmax.xlane.f32.xlu0 %v7543_v13  ;;  %v7534_v61 = vsel %vm1005_vm1, %v17966_v56, -inf  ;;  %v7546_v37 = vsel %vm1005_vm1, %v17970_v35, -inf  ;;  %19566 = vst [vmem:[#allocation19_spill] sm:$0xff] %v17996_v62 }
 0x475   : > { %v14371_v24 = vpop.f32.mrb[130].mxu0 }
 0x476   : > { %v7124_v60 = vpop.f32.mrb[131].mxu0  ;;  %v17972_v13 = vsel %vm7341_vm11, %v14371_v24, -1e+30 }
 0x478   : > { %7523 = vmax.xlane.f32.xlu1 %v7522_v15  ;;  %7541 = vmax.xlane.f32.xlu0 %v7540_v44  ;;  %v7555_v44 = vsel %vm1005_vm1, %v17972_v13, -inf  ;;  %v17984_v15 = vsel %vm7340_vm12, %v7124_v60, -1e+30 }
 0x479   : > { %v14374_v53 = vpop.f32.mrb[132].mxu0 }
 0x47a   : > { %v7134_v38 = vpop.f32.mrb[133].mxu0  ;;  %v17994_v1 = vsel %vm7343_vm14, %v14374_v53, -1e+30 }
 0x47b   : > { %v17986_v25 = vsel %vm7342_vm13, %v7134_v38, -1e+30  ;;  %v16203_v38 = vld [vmem:[%s16532_s18 + $0x178] sm:$0xff]  ;;  %v7561_v0 = vsel %vm1005_vm1, %v17994_v1, -inf }
 0x47c   : > { %7535 = vmax.xlane.f32.xlu1 %v7534_v61  ;;  %7550 = vmax.xlane.f32.xlu0 %v7549_v19  ;;  %v7558_v19 = vsel %vm1005_vm1, %v17986_v25, -inf  ;;  %v7552_v61 = vsel %vm1005_vm1, %v17984_v15, -inf  ;;  %vm7345_vm2 = vcmp.gt.f32.partialorder %v16203_v38, 0.0 }
 0x47d   : > { %v14377_v24 = vpop.f32.mrb[134].mxu0 }
 0x47e   : > { %v7144_v32 = vpop.f32.mrb[135].mxu0  ;;  %v18007_v12 = vsel %vm7345_vm2, %v14377_v24, -1e+30 }
 0x47f   : > { %19568 = vst [vmem:[#allocation25_spill] sm:$0xff] %v18007_v12 }
 0x480   : > { %7547 = vmax.xlane.f32.xlu1 %v7546_v37  ;;  %7556 = vmax.xlane.f32.xlu0 %v7555_v44  ;;  %v17999_v37 = vpop.permute.xlu0 %15663 }
 0x481   : > { %19567 = vst [vmem:[#allocation24_spill] sm:$0xff] %v17999_v37  ;;  %v18017_v37 = vsel %vm7344_vm3, %v7144_v32, -1e+30 }
 0x482   : > { %v14412_v60 = vpop.f32.mrb[136].mxu0 }
 0x483   : > { %v7219_v31 = vpop.f32.mrb[137].mxu0  ;;  %v18028_v32 = vsel %vm7347_vm5, %v14412_v60, -1e+30 }
 0x484   : > { %7553 = vmax.xlane.f32.xlu0 %v7552_v61  ;;  %7559 = vmax.xlane.f32.xlu1 %v7558_v19  ;;  %v18001_v44 = vsel %vm7346_vm15, %v7219_v31, -1e+30  ;;  %v18010_v61 = vpop.permute.xlu1 %15678  ;;  %v7567_v31 = vsel %vm1005_vm1, %v18007_v12, -inf  ;;  %v16205_v19 = vld [vmem:[%s16532_s18 + $0x1a0] sm:$0xff]  ;;  %v18015_v20 = vpop.permute.xlu0 %15673  ;;  %19572 = vst [vmem:[#allocation27_spill] sm:$0xff] %v18028_v32  ;;  %v7573_v60 = vsel %vm1005_vm1, %v18028_v32, -inf }
 0x485   : > { %v7570_v53 = vsel %vm1005_vm1, %v18001_v44, -inf  ;;  %19569 = vst [vmem:[#allocation39_spill] sm:$0xff] %v18010_v61  ;;  %vm7350_vm4 = vcmp.gt.f32.partialorder %v16205_v19, 0.0  ;;  %19570 = vst [vmem:[#allocation44_spill] sm:$0xff] %v18015_v20  ;;  %v16208_v61 = vld [vmem:[%s16532_s18 + $0x1b0] sm:$0xff]  ;;  %v16213_v12 = vld [vmem:[%s16532_s18 + $0x1e0] sm:$0xff] }
 0x486   : > { %v14415_v62 = vpop.f32.mrb[138].mxu0  ;;  %vm7352_vm7 = vcmp.gt.f32.partialorder %v16208_v61, 0.0  ;;  %vm7358_vm12 = vcmp.gt.f32.partialorder %v16213_v12, 0.0 }
 0x487   : > { %v7229_v38 = vpop.f32.mrb[139].mxu0 }
 0x488   : > { %7562 = vmax.xlane.f32.xlu0 %v7561_v0  ;;  %7571 = vmax.xlane.f32.xlu1 %v7570_v53  ;;  %v16207_v0 = vld [vmem:[%s16532_s18 + $0x1b8] sm:$0xff]  ;;  %v7564_v53 = vsel %vm1005_vm1, %v18017_v37, -inf  ;;  %v18030_v50 = vpop.permute.xlu1 %15688  ;;  %v18035_v6 = vpop.permute.xlu0 %15683 }
 0x489   : > { %vm7353_vm6 = vcmp.gt.f32.partialorder %v16207_v0, 0.0  ;;  %19573 = vst [vmem:[#allocation28_spill] sm:$0xff] %v18030_v50  ;;  %19575 = vst [vmem:[#allocation41_spill] sm:$0xff] %v18035_v6 }
 0x48a   : > { %v14418_v24 = vpop.f32.mrb[140].mxu0 }
 0x48b   : > { %v7239_v16 = vpop.f32.mrb[141].mxu0 }
 0x48c   : > { %v18020_v2 = vsel %vm7350_vm4, %v7239_v16, -1e+30  ;;  %7568 = vmax.xlane.f32.xlu0 %v7567_v31  ;;  %v16209_v16 = vld [vmem:[%s16532_s18 + $0x198] sm:$0xff] }
 0x48d   : > { %19571 = vst [vmem:[#allocation26_spill] sm:$0xff] %v18020_v2  ;;  %v7582_v19 = vsel %vm1005_vm1, %v18020_v2, -inf  ;;  %vm7349_vm8 = vcmp.gt.f32.partialorder %v16209_v16, 0.0 }
 0x48e   : > { %7583 = vmax.xlane.f32.xlu1 %v7582_v19  ;;  %v14421_v20 = vpop.f32.mrb[142].mxu0  ;;  %v18043_v19 = vsel %vm7349_vm8, %v14415_v62, -1e+30  ;;  %v18053_v62 = vpop.permute.xlu0 %15693 }
 0x48f   : > { %v18033_v31 = vsel %vm7353_vm6, %v14421_v20, -1e+30  ;;  %v7249_v0 = vpop.f32.mrb[143].mxu0  ;;  %v16210_v20 = vld [vmem:[%s16532_s18 + $0x190] sm:$0xff]  ;;  %19578 = vst [vmem:[#allocation17_spill] sm:$0xff] %v18053_v62 }
 0x490   : > { %19574 = vst [vmem:[#allocation29_spill] sm:$0xff] %v18033_v31  ;;  %v7591_v2 = vsel %vm1005_vm1, %v18033_v31, -inf  ;;  %7565 = vmax.xlane.f32.xlu0 %v7564_v53  ;;  %v18039_v61 = vsel %vm7352_vm7, %v7249_v0, -1e+30  ;;  %vm7348_vm9 = vcmp.gt.f32.partialorder %v16210_v20, 0.0  ;;  %v18048_v31 = vpop.permute.xlu1 %15698  ;;  %v7579_v53 = vsel %vm1005_vm1, %v18043_v19, -inf }
 0x491   : > { %19576 = vst [vmem:[#allocation46_spill] sm:$0xff] %v18039_v61  ;;  %v7588_v50 = vsel %vm1005_vm1, %v18039_v61, -inf  ;;  %19577 = vst [vmem:[#allocation16_spill] sm:$0xff] %v18048_v31  ;;  %v16211_v0 = vld [vmem:[%s16532_s18 + $0x1d0] sm:$0xff]  ;;  %v18055_v32 = vsel %vm7348_vm9, %v7229_v38, -1e+30 }
 0x492   : > { %7592 = vmax.xlane.f32.xlu1 %v7591_v2  ;;  %v14424_v16 = vpop.f32.mrb[144].mxu0  ;;  %vm7356_vm10 = vcmp.gt.f32.partialorder %v16211_v0, 0.0  ;;  %19579 = vst [vmem:[#allocation43_spill] sm:$0xff] %v18055_v32  ;;  %v16212_v20 = vld [vmem:[%s16532_s18 + $0x1a8] sm:$0xff]  ;;  %v7576_v31 = vsel %vm1005_vm1, %v18055_v32, -inf }
 0x493   : > { %v7259_v6 = vpop.f32.mrb[145].mxu0  ;;  %vm7351_vm11 = vcmp.gt.f32.partialorder %v16212_v20, 0.0  ;;  %v16214_v20 = vld [vmem:[%s16532_s18 + $0x1c8] sm:$0xff] }
 0x494   : > { %7574 = vmax.xlane.f32.xlu0 %v7573_v60  ;;  %v18065_v38 = vsel %vm7351_vm11, %v14418_v24, -1e+30  ;;  %v18067_v62 = vpop.permute.xlu1 %15708  ;;  %vm7355_vm13 = vcmp.gt.f32.partialorder %v16214_v20, 0.0  ;;  %v16215_v24 = vld [vmem:[%s16532_s18 + $0x1f0] sm:$0xff]  ;;  %v16216_v20 = vld [vmem:[%s16532_s18 + $0x1c0] sm:$0xff] }
 0x495   : > { %19581 = vst [vmem:[#allocation22_spill] sm:$0xff] %v18065_v38  ;;  %19582 = vst [vmem:[#allocation23_spill] sm:$0xff] %v18067_v62  ;;  %vm7360_vm14 = vcmp.gt.f32.partialorder %v16215_v24, 0.0  ;;  %vm7354_vm15 = vcmp.gt.f32.partialorder %v16216_v20, 0.0  ;;  %v16217_v24 = vld [vmem:[%s16532_s18 + $0x1d8] sm:$0xff] }
 0x496   : > { %7589 = vmax.xlane.f32.xlu1 %v7588_v50  ;;  %v14427_v2 = vpop.f32.mrb[146].mxu0  ;;  %vm7357_vm2 = vcmp.gt.f32.partialorder %v16217_v24, 0.0 }
 0x497   : > { %v7269_v61 = vpop.f32.mrb[147].mxu0 }
 0x498   : > { %7580 = vmax.xlane.f32.xlu0 %v7579_v53  ;;  %v18058_v60 = vsel %vm7356_vm10, %v7269_v61, -1e+30  ;;  %v18070_v53 = vpop.permute.xlu0 %15703 }
 0x499   : > { %19580 = vst [vmem:[#allocation48_spill] sm:$0xff] %v18058_v60  ;;  %v7600_v0 = vsel %vm1005_vm1, %v18058_v60, -inf  ;;  %19583 = vst [vmem:[#allocation45_spill] sm:$0xff] %v18070_v53  ;;  %v7585_v60 = vsel %vm1005_vm1, %v18065_v38, -inf }
 0x49a   : > { %7601 = vmax.xlane.f32.xlu1 %v7600_v0  ;;  %v14430_v50 = vpop.f32.mrb[148].mxu0  ;;  %v18079_v0 = vsel %vm7355_vm13, %v14424_v16, -1e+30 }
 0x49b   : > { %v7279_v61 = vpop.f32.mrb[149].mxu0  ;;  %19585 = vst [vmem:[#allocation30_spill] sm:$0xff] %v18079_v0  ;;  %v7597_v38 = vsel %vm1005_vm1, %v18079_v0, -inf }
 0x49c   : > { %7577 = vmax.xlane.f32.xlu0 %v7576_v31  ;;  %v18072_v32 = vsel %vm7358_vm12, %v7279_v61, -1e+30  ;;  %v18084_v61 = vpop.permute.xlu1 %15713  ;;  %v18090_v16 = vpop.permute.xlu0 %15718 }
 0x49d   : > { %19584 = vst [vmem:[#allocation50_spill] sm:$0xff] %v18072_v32  ;;  %v7606_v12 = vsel %vm1005_vm1, %v18072_v32, -inf  ;;  %19587 = vst [vmem:[#allocation47_spill] sm:$0xff] %v18084_v61  ;;  %v16218_v61 = vld [vmem:[%s16532_s18 + $0x1e8] sm:$0xff] }
 0x49e   : > { %7607 = vmax.xlane.f32.xlu1 %v7606_v12  ;;  %v14433_v62 = vpop.f32.mrb[150].mxu0  ;;  %19588 = vst [vmem:[#allocation52_spill] sm:$0xff] %v18090_v16  ;;  %v18092_v12 = vsel %vm7354_vm15, %v7259_v6, -1e+30  ;;  %vm7359_vm3 = vcmp.gt.f32.partialorder %v16218_v61, 0.0 }
 0x49f   : > { %v7289_v53 = vpop.f32.mrb[151].mxu0  ;;  %19589 = vst [vmem:[#allocation49_spill] sm:$0xff] %v18092_v12  ;;  %v18106_v16 = vsel %vm7359_vm3, %v14430_v50, -1e+30 }
 0x4a0   : > { %7586 = vmax.xlane.f32.xlu0 %v7585_v60  ;;  %v18082_v31 = vsel %vm7360_vm14, %v7289_v53, -1e+30  ;;  %v7594_v60 = vsel %vm1005_vm1, %v18092_v12, -inf  ;;  %v18097_v53 = vsel %vm7357_vm2, %v14427_v2, -1e+30  ;;  %v18099_v20 = vpop.permute.xlu1 %15728  ;;  %v18102_v0 = vpop.permute.xlu0 %15723  ;;  %19593 = vst [vmem:[#allocation53_spill] sm:$0xff] %v18106_v16 }
 0x4a1   : > { %19586 = vst [vmem:[#allocation31_spill] sm:$0xff] %v18082_v31  ;;  %v7612_v32 = vsel %vm1005_vm1, %v18082_v31, -inf  ;;  %19590 = vst [vmem:[#allocation54_spill] sm:$0xff] %v18097_v53  ;;  %v7603_v6 = vsel %vm1005_vm1, %v18097_v53, -inf  ;;  %v7609_v2 = vsel %vm1005_vm1, %v18106_v16, -inf }
 0x4a2   : > { %7613 = vmax.xlane.f32.xlu1 %v7612_v32  ;;  %19591 = vst [vmem:[#allocation51_spill] sm:$0xff] %v18099_v20  ;;  %19592 = vst [vmem:[#allocation56_spill] sm:$0xff] %v18102_v0  ;;  %v16219_v32 = vld [vmem:[%s16532_s18 + $0x1f8] sm:$0xff]  ;;  %s18429_s18 = sand.u32 1, %s16306_s22  }
 0x4a3   : > { %vm7361_vm4 = vcmp.gt.f32.partialorder %v16219_v32, 0.0  ;;  %s12607_s14 = sshll.u32 %s18429_s18, 9  ;;  %s12465_s10 = scalar_lea.sflag [#allocation5], %s18429_s18 }
 0x4a4   : > { %7598 = vmax.xlane.f32.xlu0 %v7597_v38  ;;  %v18109_v38 = vpop.permute.xlu1 %15738  ;;  %v18113_v24 = vpop.permute.xlu0 %15733  ;;  %v18115_v20 = vsel %vm7361_vm4, %v14433_v62, -1e+30  ;;  %s18439_s15 = scalar_lea.vmem [#allocation4], %s12607_s14 }
 0x4a5   : > { %19594 = vst [vmem:[#allocation58_spill] sm:$0xff] %v18109_v38  ;;  %19595 = vst [vmem:[#allocation55_spill] sm:$0xff] %v18113_v24  ;;  %v7615_v61 = vsel %vm1005_vm1, %v18115_v20, -inf  ;;  %s12496_s20 = sshll.u32 %s18439_s15, 4  ;;  %s19168_s20 = int_to_ptr.vmem [resolvable:$true] %s12496_s20 }
 0x4a6   : > { %19596 = vst [vmem:[#allocation60_spill] sm:$0xff] %v18115_v20  ;;  %s16220_s11 = scalar_lea.vmem %s19168_s20, 8192  ;;  %p16227_p0 = scmp.lt.s32.totalorder %s19168_s20, %s16225_s13 }
 0x4a7   : > { %p16221_p11 = scmp.ne.s32.totalorder %s19168_s20, %s16220_s11 }
 0x4a8   : > { %7595 = vmax.xlane.f32.xlu0 %v7594_v60 }
 0x4a9   : > { %p16222_p12 = pnand %p16221_p11, %p16395_p5 }
 0x4ab   : > { %p16223_p13 = pneg %p16222_p12 }
 0x4ac   : > { %7604 = vmax.xlane.f32.xlu0 %v7603_v6 }
 0x4b0   : > { %7610 = vmax.xlane.f32.xlu0 %v7609_v2 }
 0x4b1   : > { %v7431_v60 = vpop.xlane.xlu1 %7430 }
 0x4b2   : > { %v7619_v50 = vsub.f32 %v17761_v5, %v7431_v60  ;;  %v7428_v0 = vpop.xlane.xlu0 %7427 }
 0x4b3   : > { %v7618_v32 = vsub.f32 %v17763_v21, %v7428_v0 }
 0x4b4   : > { %v7684_v6 = vmul.f32 1.442695, %v7619_v50  ;;  %7616 = vmax.xlane.f32.xlu0 %v7615_v61 }
 0x4b5   : > { %v7682_v38 = vmul.f32 1.442695, %v7618_v32 }
 0x4b6   : > { %15772 = vpow2.f32 %v7684_v6  ;;  %v7437_v31 = vpop.xlane.xlu0 %7436 }
 0x4b7   : > { %15774 = vpow2.f32 %v7682_v38  ;;  %v7621_v24 = vsub.f32 %v17770_v41, %v7437_v31 }
 0x4b9   : > { %v7688_v62 = vmul.f32 1.442695, %v7621_v24  ;;  %v7443_v16 = vpop.xlane.xlu1 %7442 }
 0x4ba   : > { %v7623_v2 = vsub.f32 %v17779_v43, %v7443_v16  ;;  %v7434_v53 = vpop.xlane.xlu0 %7433 }
 0x4bb   : > { %15776 = vpow2.f32 %v7688_v62  ;;  %v7620_v20 = vsub.f32 %v17776_v4, %v7434_v53 }
 0x4bc   : > { %v7692_v5 = vmul.f32 1.442695, %v7623_v2 }
 0x4bd   : > { %v7686_v60 = vmul.f32 1.442695, %v7620_v20  ;;  %v7440_v12 = vpop.xlane.xlu1 %7439 }
 0x4be   : > { %15778 = vpow2.f32 %v7692_v5  ;;  %v7622_v21 = vsub.f32 %v17786_v27, %v7440_v12  ;;  %v7449_v0 = vpop.xlane.xlu0 %7448 }
 0x4bf   : > { %15780 = vpow2.f32 %v7686_v60  ;;  %v7625_v38 = vsub.f32 %v17789_v8, %v7449_v0 }
 0x4c0   : > { %v18126_v61 = vpop.eup %15772  ;;  %v7690_v41 = vmul.f32 1.442695, %v7622_v21 }
 0x4c1   : > { %v18128_v31 = vpop.eup %15774  ;;  %v7696_v43 = vmul.f32 1.442695, %v7625_v38  ;;  %v7446_v16 = vpop.xlane.xlu1 %7445  ;;  %v7813_v4 = vsel %vm1005_vm1, %v18126_v61, 0.0 }
 0x4c2   : > { %15782 = vpow2.f32 %v7690_v41  ;;  %v7624_v53 = vsub.f32 %v17795_v3, %v7446_v16  ;;  %7814 = vadd.xlane.f32.xlu0 %v7813_v4  ;;  %v7810_v27 = vsel %vm1005_vm1, %v18128_v31, 0.0 }
 0x4c3   : > { %7811 = vadd.xlane.f32.xlu1 %v7810_v27  ;;  %15784 = vpow2.f32 %v7696_v43 }
 0x4c4   : > { %v7694_v12 = vmul.f32 1.442695, %v7624_v53 }
 0x4c5   : > { %v18135_v8 = vpop.eup %15776  ;;  %v7455_v20 = vpop.xlane.xlu1 %7454 }
 0x4c6   : > { %v7461_v24 = vpop.xlane.xlu0 %7460  ;;  %15786 = vpow2.f32 %v7694_v12  ;;  %v7627_v50 = vsub.f32 %v17800_v49, %v7455_v20  ;;  %v7819_v6 = vsel %vm1005_vm1, %v18135_v8, 0.0 }
 0x4c7   : > { %v7629_v32 = vsub.f32 %v17806_v26, %v7461_v24  ;;  %7820 = vadd.xlane.f32.xlu0 %v7819_v6 }
 0x4c8   : > { %v18141_v3 = vpop.eup %15778  ;;  %v7700_v62 = vmul.f32 1.442695, %v7627_v50 }
 0x4c9   : > { %v18143_v2 = vpop.eup %15780  ;;  %v7704_v5 = vmul.f32 1.442695, %v7629_v32  ;;  %v7452_v60 = vpop.xlane.xlu1 %7451  ;;  %v7825_v21 = vsel %vm1005_vm1, %v18141_v3, 0.0 }
 0x4ca   : > { %15788 = vpow2.f32 %v7700_v62  ;;  %v7626_v0 = vsub.f32 %v17811_v14, %v7452_v60  ;;  %v7816_v49 = vsel %vm1005_vm1, %v18143_v2, 0.0 }
 0x4cb   : > { %7826 = vadd.xlane.f32.xlu0 %v7825_v21  ;;  %7817 = vadd.xlane.f32.xlu1 %v7816_v49  ;;  %15790 = vpow2.f32 %v7704_v5 }
 0x4cc   : > { %v18150_v26 = vpop.eup %15782  ;;  %v7698_v38 = vmul.f32 1.442695, %v7626_v0 }
 0x4cd   : > { %v7458_v41 = vpop.xlane.xlu1 %7457  ;;  %v7473_v43 = vpop.xlane.xlu0 %7472  ;;  %v7822_v16 = vsel %vm1005_vm1, %v18150_v26, 0.0 }
 0x4ce   : > { %15792 = vpow2.f32 %v7698_v38  ;;  %v7628_v4 = vsub.f32 %v17813_v22, %v7458_v41  ;;  %v7633_v53 = vsub.f32 %v17823_v46, %v7473_v43  ;;  %v18156_v14 = vpop.eup %15784 }
 0x4cf   : > { %7823 = vadd.xlane.f32.xlu0 %v7822_v16  ;;  %v7831_v22 = vsel %vm1005_vm1, %v18156_v14, 0.0 }
 0x4d0   : > { %v18158_v27 = vpop.eup %15786  ;;  %v7702_v12 = vmul.f32 1.442695, %v7628_v4  ;;  %v7712_v20 = vmul.f32 1.442695, %v7633_v53 }
 0x4d1   : > { %v7467_v24 = vpop.xlane.xlu1 %7466  ;;  %v7828_v50 = vsel %vm1005_vm1, %v18158_v27, 0.0 }
 0x4d2   : > { %15794 = vpow2.f32 %v7702_v12  ;;  %v7631_v32 = vsub.f32 %v17821_v36, %v7467_v24  ;;  %7829 = vadd.xlane.f32.xlu1 %v7828_v50 }
 0x4d3   : > { %7832 = vadd.xlane.f32.xlu0 %v7831_v22  ;;  %15796 = vpow2.f32 %v7712_v20 }
 0x4d4   : > { %v18165_v46 = vpop.eup %15788  ;;  %v7708_v6 = vmul.f32 1.442695, %v7631_v32 }
 0x4d5   : > { %v7464_v62 = vpop.xlane.xlu1 %7463  ;;  %v7837_v5 = vsel %vm1005_vm1, %v18165_v46, 0.0  ;;  %v18170_v21 = vpop.eup %15790 }
 0x4d6   : > { %15798 = vpow2.f32 %v7708_v6  ;;  %v7630_v60 = vsub.f32 %v17831_v52, %v7464_v62  ;;  %v7485_v49 = vpop.xlane.xlu0 %7484  ;;  %v7843_v16 = vsel %vm1005_vm1, %v18170_v21, 0.0 }
 0x4d7   : > { %7838 = vadd.xlane.f32.xlu0 %v7837_v5  ;;  %v7637_v4 = vsub.f32 %v17834_v48, %v7485_v49 }
 0x4d8   : > { %v18172_v36 = vpop.eup %15792  ;;  %v7706_v0 = vmul.f32 1.442695, %v7630_v60 }
 0x4d9   : > { %v7470_v38 = vpop.xlane.xlu1 %7469  ;;  %v7834_v41 = vsel %vm1005_vm1, %v18172_v36, 0.0  ;;  %v7720_v22 = vmul.f32 1.442695, %v7637_v4 }
 0x4da   : > { %15800 = vpow2.f32 %v7706_v0  ;;  %v7632_v43 = vsub.f32 %v17840_v45, %v7470_v38  ;;  %7835 = vadd.xlane.f32.xlu1 %v7834_v41 }
 0x4db   : > { %7844 = vadd.xlane.f32.xlu0 %v7843_v16 }
 0x4dc   : > { %v18179_v52 = vpop.eup %15794  ;;  %v7710_v53 = vmul.f32 1.442695, %v7632_v43 }
 0x4dd   : > { %v7479_v12 = vpop.xlane.xlu1 %7478  ;;  %v7497_v20 = vpop.xlane.xlu0 %7496  ;;  %v7840_v24 = vsel %vm1005_vm1, %v18179_v52, 0.0 }
 0x4de   : > { %15802 = vpow2.f32 %v7710_v53  ;;  %v7635_v50 = vsub.f32 %v17846_v47, %v7479_v12  ;;  %v18185_v32 = vpop.eup %15796  ;;  %v7641_v62 = vsub.f32 %v17850_v57, %v7497_v20 }
 0x4df   : > { %7841 = vadd.xlane.f32.xlu0 %v7840_v24  ;;  %v7855_v47 = vsel %vm1005_vm1, %v18185_v32, 0.0 }
 0x4e0   : > { %v18187_v45 = vpop.eup %15798  ;;  %v7716_v6 = vmul.f32 1.442695, %v7635_v50  ;;  %v7728_v38 = vmul.f32 1.442695, %v7641_v62 }
 0x4e1   : > { %v7476_v5 = vpop.xlane.xlu1 %7475  ;;  %v7494_v48 = vpop.xlane.xlu0 %7493  ;;  %v7849_v60 = vsel %vm1005_vm1, %v18187_v45, 0.0 }
 0x4e2   : > { %15804 = vpow2.f32 %v7716_v6  ;;  %v7634_v0 = vsub.f32 %v17858_v23, %v7476_v5  ;;  %7850 = vadd.xlane.f32.xlu1 %v7849_v60  ;;  %v7640_v57 = vsub.f32 %v17856_v54, %v7494_v48 }
 0x4e3   : > { %7856 = vadd.xlane.f32.xlu0 %v7855_v47  ;;  %15806 = vpow2.f32 %v7720_v22 }
 0x4e4   : > { %v18195_v49 = vpop.eup %15800  ;;  %v7714_v41 = vmul.f32 1.442695, %v7634_v0  ;;  %v7726_v12 = vmul.f32 1.442695, %v7640_v57 }
 0x4e5   : > { %v7482_v43 = vpop.xlane.xlu1 %7481  ;;  %v7509_v16 = vpop.xlane.xlu0 %7508  ;;  %v7846_v4 = vsel %vm1005_vm1, %v18195_v49, 0.0 }
 0x4e6   : > { %15808 = vpow2.f32 %v7714_v41  ;;  %v7636_v23 = vsub.f32 %v17866_v42, %v7482_v43  ;;  %7847 = vadd.xlane.f32.xlu1 %v7846_v4 }
 0x4e7   : > { %15810 = vpow2.f32 %v7728_v38 }
 0x4e8   : > { %v18201_v53 = vpop.eup %15802  ;;  %v7718_v20 = vmul.f32 1.442695, %v7636_v23 }
 0x4e9   : > { %v7491_v24 = vpop.xlane.xlu1 %7490  ;;  %v7506_v50 = vpop.xlane.xlu0 %7505  ;;  %v7852_v22 = vsel %vm1005_vm1, %v18201_v53, 0.0 }
 0x4ea   : > { %15812 = vpow2.f32 %v7718_v20  ;;  %v7639_v54 = vsub.f32 %v17878_v34, %v7491_v24  ;;  %7853 = vadd.xlane.f32.xlu1 %v7852_v22  ;;  %v7645_v20 = vsub.f32 %v17870_v29, %v7509_v16  ;;  %v7644_v16 = vsub.f32 %v17876_v30, %v7506_v50 }
 0x4eb   : > { %15814 = vpow2.f32 %v7726_v12 }
 0x4ec   : > { %v18206_v6 = vpop.eup %15804  ;;  %v7724_v62 = vmul.f32 1.442695, %v7639_v54  ;;  %v7736_v29 = vmul.f32 1.442695, %v7645_v20 }
 0x4ed   : > { %v7488_v42 = vpop.xlane.xlu1 %7487  ;;  %v7521_v5 = vpop.xlane.xlu0 %7520  ;;  %v7861_v48 = vsel %vm1005_vm1, %v18206_v6, 0.0 }
 0x4ee   : > { %v18210_v60 = vpop.eup %15806  ;;  %15816 = vpow2.f32 %v7724_v62  ;;  %v7638_v0 = vsub.f32 %v17886_v11, %v7488_v42  ;;  %v7649_v47 = vsub.f32 %v17890_v51, %v7521_v5  ;;  %7862 = vadd.xlane.f32.xlu0 %v7861_v48 }
 0x4ef   : > { %v7867_v4 = vsel %vm1005_vm1, %v18210_v60, 0.0 }
 0x4f0   : > { %v18214_v38 = vpop.eup %15808  ;;  %v7722_v34 = vmul.f32 1.442695, %v7638_v0  ;;  %v7744_v41 = vmul.f32 1.442695, %v7649_v47 }
 0x4f1   : > { %v7503_v57 = vpop.xlane.xlu1 %7502  ;;  %v7518_v43 = vpop.xlane.xlu0 %7517  ;;  %v7858_v23 = vsel %vm1005_vm1, %v18214_v38, 0.0 }
 0x4f2   : > { %v18220_v12 = vpop.eup %15810  ;;  %15818 = vpow2.f32 %v7722_v34  ;;  %v7643_v11 = vsub.f32 %v17898_v40, %v7503_v57  ;;  %7868 = vadd.xlane.f32.xlu0 %v7867_v4  ;;  %7859 = vadd.xlane.f32.xlu1 %v7858_v23  ;;  %v7734_v4 = vmul.f32 1.442695, %v7644_v16 }
 0x4f3   : > { %15820 = vpow2.f32 %v7744_v41  ;;  %v7879_v62 = vsel %vm1005_vm1, %v18220_v12, 0.0 }
 0x4f4   : > { %v18223_v51 = vpop.eup %15812  ;;  %v7732_v24 = vmul.f32 1.442695, %v7643_v11 }
 0x4f5   : > { %v7500_v22 = vpop.xlane.xlu1 %7499  ;;  %v18226_v54 = vpop.xlane.xlu0 %7532  ;;  %v7864_v42 = vsel %vm1005_vm1, %v18223_v51, 0.0 }
 0x4f6   : > { %v18232_v5 = vpop.eup %15814  ;;  %15822 = vpow2.f32 %v7732_v24  ;;  %v7642_v40 = vsub.f32 %v17906_v63, %v7500_v22  ;;  %7880 = vadd.xlane.f32.xlu0 %v7879_v62  ;;  %7865 = vadd.xlane.f32.xlu1 %v7864_v42 }
 0x4f7   : > { %v7876_v41 = vsel %vm1005_vm1, %v18232_v5, 0.0 }
 0x4f8   : > { %v18235_v48 = vpop.eup %15816  ;;  %v7730_v0 = vmul.f32 1.442695, %v7642_v40 }
 0x4f9   : > { %v7515_v47 = vpop.xlane.xlu1 %7514  ;;  %v18238_v34 = vpop.xlane.xlu0 %7529  ;;  %v7873_v57 = vsel %vm1005_vm1, %v18235_v48, 0.0 }
 0x4fa   : > { %15824 = vpow2.f32 %v7730_v0  ;;  %7877 = vadd.xlane.f32.xlu0 %v7876_v41  ;;  %7874 = vadd.xlane.f32.xlu1 %v7873_v57  ;;  %v7647_v23 = vsub.f32 %v17919_v18, %v7515_v47  ;;  %v7648_v0 = vsub.f32 %v17896_v39, %v7518_v43 }
 0x4fb   : > { %15826 = vpow2.f32 %v7736_v29 }
 0x4fc   : > { %v18244_v63 = vpop.eup %15818  ;;  %15828 = vpow2.f32 %v7734_v4  ;;  %v7740_v22 = vmul.f32 1.442695, %v7647_v23 }
 0x4fd   : > { %v7512_v30 = vpop.xlane.xlu1 %7511  ;;  %v18247_v50 = vpop.xlane.xlu0 %7538  ;;  %v7870_v11 = vsel %vm1005_vm1, %v18244_v63, 0.0 }
 0x4fe   : > { %v18251_v20 = vpop.eup %15820  ;;  %7871 = vadd.xlane.f32.xlu1 %v7870_v11  ;;  %v7646_v62 = vsub.f32 %v17931_v10, %v7512_v30  ;;  %15830 = vpow2.f32 %v7740_v22  ;;  %v7742_v11 = vmul.f32 1.442695, %v7648_v0 }
 0x4ff   : > { %v7903_v29 = vsel %vm1005_vm1, %v18251_v20, 0.0 }
 0x500   : > { %v18253_v24 = vpop.eup %15822  ;;  %v7738_v47 = vmul.f32 1.442695, %v7646_v62 }
 0x501   : > { %v7527_v42 = vpop.xlane.xlu1 %7526  ;;  %v7545_v40 = vpop.xlane.xlu0 %7544  ;;  %v7885_v18 = vsel %vm1005_vm1, %v18253_v24, 0.0 }
 0x502   : > { %7886 = vadd.xlane.f32.xlu0 %v7885_v18  ;;  %7904 = vadd.xlane.f32.xlu1 %v7903_v29  ;;  %v7651_v30 = vsub.f32 %v17941_v58, %v7527_v42  ;;  %15832 = vpow2.f32 %v7738_v47  ;;  %v7657_v18 = vsub.f32 %v17936_v55, %v7545_v40 }
 0x504   : > { %v18260_v16 = vpop.eup %15824  ;;  %v7748_v58 = vmul.f32 1.442695, %v7651_v30  ;;  %v7760_v42 = vmul.f32 1.442695, %v7657_v18 }
 0x505   : > { %19597 = vst [vmem:[#allocation57_spill] sm:$0xff] %v18260_v16  ;;  %v7524_v41 = vpop.xlane.xlu1 %7523  ;;  %v18263_v57 = vpop.xlane.xlu0 %7541  ;;  %v7882_v10 = vsel %vm1005_vm1, %v18260_v16, 0.0 }
 0x506   : > { %v18267_v4 = vpop.eup %15826  ;;  %v7650_v23 = vsub.f32 %v17953_v17, %v7524_v41  ;;  %7883 = vadd.xlane.f32.xlu0 %v7882_v10  ;;  %v7653_v17 = vsub.f32 %v17910_v59, %v18226_v54  ;;  %v7652_v59 = vsub.f32 %v17916_v33, %v18238_v34  ;;  %v7655_v33 = vsub.f32 %v17924_v9, %v18247_v50 }
 0x507   : > { %v7891_v62 = vsel %vm1005_vm1, %v18267_v4, 0.0  ;;  %v18274_v29 = vpop.eup %15828  ;;  %v7656_v9 = vsub.f32 %v17948_v7, %v18263_v57 }
 0x508   : > { %v7746_v39 = vmul.f32 1.442695, %v7650_v23  ;;  %v7888_v41 = vsel %vm1005_vm1, %v18274_v29, 0.0  ;;  %v18284_v10 = vpop.eup %15830  ;;  %v7750_v18 = vmul.f32 1.442695, %v7652_v59 }
 0x509   : > { %v7536_v43 = vpop.xlane.xlu1 %7535  ;;  %v7551_v22 = vpop.xlane.xlu0 %7550  ;;  %v7897_v23 = vsel %vm1005_vm1, %v18284_v10, 0.0  ;;  %v7758_v7 = vmul.f32 1.442695, %v7656_v9 }
 0x50a   : > { %15834 = vpow2.f32 %v7746_v39  ;;  %v7654_v16 = vsub.f32 %v17966_v56, %v7536_v43  ;;  %7892 = vadd.xlane.f32.xlu0 %v7891_v62  ;;  %v7659_v55 = vsub.f32 %v17958_v28, %v7551_v22  ;;  %v7752_v56 = vmul.f32 1.442695, %v7653_v17 }
 0x50b   : > { %15836 = vpow2.f32 %v7742_v11 }
 0x50c   : > { %v7754_v0 = vmul.f32 1.442695, %v7654_v16  ;;  %v7764_v54 = vmul.f32 1.442695, %v7659_v55  ;;  %v18292_v30 = vpop.eup %15832 }
 0x50d   : > { %v7548_v40 = vpop.xlane.xlu1 %7547  ;;  %v18280_v47 = vpop.xlane.xlu0 %7556  ;;  %v7894_v22 = vsel %vm1005_vm1, %v18292_v30, 0.0 }
 0x50e   : > { %15838 = vpow2.f32 %v7754_v0  ;;  %7889 = vadd.xlane.f32.xlu0 %v7888_v41  ;;  %v7658_v59 = vsub.f32 %v17970_v35, %v7548_v40 }
 0x50f   : > { %15840 = vpow2.f32 %v7748_v58  ;;  %v7756_v58 = vmul.f32 1.442695, %v7655_v33 }
 0x510   : > { %15842 = vpow2.f32 %v7760_v42  ;;  %v7762_v35 = vmul.f32 1.442695, %v7658_v59 }
 0x511   : > { %v18288_v16 = vpop.xlane.xlu0 %7553  ;;  %v7560_v28 = vpop.xlane.xlu1 %7559  ;;  %15844 = vpow2.f32 %v7752_v56 }
 0x512   : > { %v7662_v11 = vsub.f32 %v17986_v25, %v7560_v28  ;;  %7898 = vadd.xlane.f32.xlu0 %v7897_v23  ;;  %15846 = vpow2.f32 %v7764_v54 }
 0x513   : > { %15848 = vpow2.f32 %v7750_v18 }
 0x514   : > { %v18295_v39 = vpop.eup %15834  ;;  %v7770_v34 = vmul.f32 1.442695, %v7662_v11 }
 0x515   : > { %v18299_v43 = vpop.xlane.xlu0 %7562  ;;  %v7906_v62 = vsel %vm1005_vm1, %v18295_v39, 0.0  ;;  %v18305_v17 = vpop.eup %15836 }
 0x516   : > { %7895 = vadd.xlane.f32.xlu0 %v7894_v22  ;;  %7907 = vadd.xlane.f32.xlu1 %v7906_v62  ;;  %15850 = vpow2.f32 %v7770_v34  ;;  %v7572_v42 = vpop.xlane.xlu1 %7571  ;;  %v7900_v55 = vsel %vm1005_vm1, %v18305_v17, 0.0 }
 0x517   : > { %15852 = vpow2.f32 %v7756_v58  ;;  %v7666_v57 = vsub.f32 %v18001_v44, %v7572_v42  ;;  %v7661_v44 = vsub.f32 %v17972_v13, %v18280_v47  ;;  %v7660_v13 = vsub.f32 %v17984_v15, %v18288_v16 }
 0x518   : > { %v18307_v25 = vpop.eup %15838  ;;  %15854 = vpow2.f32 %v7758_v7 }
 0x519   : > { %v18311_v50 = vpop.eup %15840  ;;  %v18313_v0 = vpop.xlane.xlu0 %7568  ;;  %v7918_v41 = vsel %vm1005_vm1, %v18307_v25, 0.0  ;;  %v7778_v40 = vmul.f32 1.442695, %v7666_v57  ;;  %v7766_v57 = vmul.f32 1.442695, %v7660_v13  ;;  %v19605_v13 = vld [vmem:[#allocation27_spill] sm:$0xff] }
 0x51a   : > { %v18319_v56 = vpop.eup %15842  ;;  %7901 = vadd.xlane.f32.xlu0 %v7900_v55  ;;  %7919 = vadd.xlane.f32.xlu1 %v7918_v41  ;;  %v7909_v23 = vsel %vm1005_vm1, %v18311_v50, 0.0 }
 0x51b   : > { %v18323_v54 = vpop.eup %15844  ;;  %v7927_v11 = vsel %vm1005_vm1, %v18319_v56, 0.0 }
 0x51c   : > { %v18329_v18 = vpop.eup %15846  ;;  %v7915_v58 = vsel %vm1005_vm1, %v18323_v54, 0.0 }
 0x51d   : > { %v7566_v28 = vpop.xlane.xlu0 %7565  ;;  %v18334_v22 = vpop.eup %15848  ;;  %v7933_v9 = vsel %vm1005_vm1, %v18329_v18, 0.0 }
 0x51e   : > { %v7664_v33 = vsub.f32 %v18017_v37, %v7566_v28  ;;  %7910 = vadd.xlane.f32.xlu0 %v7909_v23  ;;  %7928 = vadd.xlane.f32.xlu1 %v7927_v11  ;;  %v7768_v37 = vmul.f32 1.442695, %v7661_v44  ;;  %v7912_v55 = vsel %vm1005_vm1, %v18334_v22, 0.0  ;;  %v7663_v28 = vsub.f32 %v17994_v1, %v18299_v43 }
 0x520   : > { %v7774_v34 = vmul.f32 1.442695, %v7664_v33  ;;  %v18340_v42 = vpop.eup %15850 }
 0x521   : > { %v7575_v62 = vpop.xlane.xlu0 %7574  ;;  %19598 = vst [vmem:[#allocation62_spill] sm:$0xff] %v18340_v42  ;;  %v7942_v41 = vsel %vm1005_vm1, %v18340_v42, 0.0  ;;  %v18348_v59 = vpop.eup %15852 }
 0x522   : > { %15856 = vpow2.f32 %v7774_v34  ;;  %7916 = vadd.xlane.f32.xlu0 %v7915_v58  ;;  %7934 = vadd.xlane.f32.xlu1 %v7933_v9  ;;  %19599 = vst [vmem:[#allocation59_spill] sm:$0xff] %v18348_v59  ;;  %v7921_v23 = vsel %vm1005_vm1, %v18348_v59, 0.0  ;;  %v18355_v11 = vpop.eup %15854  ;;  %v7584_v9 = vpop.xlane.xlu1 %7583 }
 0x523   : > { %15858 = vpow2.f32 %v7762_v35  ;;  %19600 = vst [vmem:[#allocation64_spill] sm:$0xff] %v18355_v11  ;;  %v19602_v35 = vld [vmem:[#allocation25_spill] sm:$0xff]  ;;  %v7924_v1 = vsel %vm1005_vm1, %v18355_v11, 0.0 }
 0x524   : > { %15860 = vpow2.f32 %v7778_v40  ;;  %v7665_v44 = vsub.f32 %v19602_v35, %v18313_v0 }
 0x525   : > { %v7581_v47 = vpop.xlane.xlu0 %7580  ;;  %15862 = vpow2.f32 %v7768_v37 }
 0x526   : > { %v7669_v7 = vsub.f32 %v18043_v19, %v7581_v47  ;;  %7913 = vadd.xlane.f32.xlu0 %v7912_v55  ;;  %7943 = vadd.xlane.f32.xlu1 %v7942_v41  ;;  %v7772_v19 = vmul.f32 1.442695, %v7663_v28  ;;  %v7776_v37 = vmul.f32 1.442695, %v7665_v44  ;;  %v7667_v47 = vsub.f32 %v19605_v13, %v7575_v62  ;;  %v18382_v28 = vpop.xlane.xlu1 %7592 }
 0x528   : > { %v7784_v15 = vmul.f32 1.442695, %v7669_v7 }
 0x529   : > { %v7578_v16 = vpop.xlane.xlu0 %7577 }
 0x52a   : > { %15864 = vpow2.f32 %v7784_v15  ;;  %7922 = vadd.xlane.f32.xlu0 %v7921_v23  ;;  %v7780_v15 = vmul.f32 1.442695, %v7667_v47  ;;  %v19608_v23 = vld [vmem:[#allocation43_spill] sm:$0xff] }
 0x52b   : > { %15866 = vpow2.f32 %v7766_v57  ;;  %v7668_v62 = vsub.f32 %v19608_v23, %v7578_v16  ;;  %v7590_v16 = vpop.xlane.xlu1 %7589 }
 0x52c   : > { %v18357_v33 = vpop.eup %15856  ;;  %15868 = vpow2.f32 %v7772_v19 }
 0x52d   : > { %19601 = vst [vmem:[#allocation61_spill] sm:$0xff] %v18357_v33  ;;  %v18361_v40 = vpop.eup %15858  ;;  %v18363_v34 = vpop.xlane.xlu0 %7586  ;;  %v7948_v43 = vsel %vm1005_vm1, %v18357_v33, 0.0  ;;  %15870 = vpow2.f32 %v7776_v37 }
 0x52e   : > { %19603 = vst [vmem:[#allocation66_spill] sm:$0xff] %v18361_v40  ;;  %v18369_v58 = vpop.eup %15860  ;;  %7925 = vadd.xlane.f32.xlu0 %v7924_v1  ;;  %7949 = vadd.xlane.f32.xlu1 %v7948_v43  ;;  %v7930_v0 = vsel %vm1005_vm1, %v18361_v40, 0.0  ;;  %15872 = vpow2.f32 %v7780_v15  ;;  %v7782_v1 = vmul.f32 1.442695, %v7668_v62 }
 0x52f   : > { %19604 = vst [vmem:[#allocation63_spill] sm:$0xff] %v18369_v58  ;;  %v7954_v55 = vsel %vm1005_vm1, %v18369_v58, 0.0  ;;  %v18376_v41 = vpop.eup %15862  ;;  %v18403_v15 = vpop.xlane.xlu1 %7601  ;;  %v19617_v58 = vld [vmem:[#allocation26_spill] sm:$0xff] }
 0x530   : > { %19606 = vst [vmem:[#allocation68_spill] sm:$0xff] %v18376_v41  ;;  %v7939_v19 = vsel %vm1005_vm1, %v18376_v41, 0.0  ;;  %15874 = vpow2.f32 %v7782_v1  ;;  %v7670_v40 = vsub.f32 %v19617_v58, %v7584_v9 }
 0x531   : > { %v18378_v7 = vpop.xlane.xlu0 %7598 }
 0x532   : > { %7931 = vadd.xlane.f32.xlu0 %v7930_v0  ;;  %7955 = vadd.xlane.f32.xlu1 %v7954_v55 }
 0x534   : > { %v18380_v57 = vpop.eup %15864 }
 0x535   : > { %19607 = vst [vmem:[#allocation65_spill] sm:$0xff] %v18380_v57  ;;  %v7963_v35 = vsel %vm1005_vm1, %v18380_v57, 0.0  ;;  %v18389_v44 = vpop.eup %15866  ;;  %v18391_v43 = vpop.xlane.xlu0 %7595 }
 0x536   : > { %19609 = vst [vmem:[#allocation70_spill] sm:$0xff] %v18389_v44  ;;  %7940 = vadd.xlane.f32.xlu0 %v7939_v19  ;;  %7964 = vadd.xlane.f32.xlu1 %v7963_v35  ;;  %v7936_v37 = vsel %vm1005_vm1, %v18389_v44, 0.0  ;;  %v18395_v13 = vpop.eup %15868 }
 0x537   : > { %19610 = vst [vmem:[#allocation67_spill] sm:$0xff] %v18395_v13  ;;  %v7945_v47 = vsel %vm1005_vm1, %v18395_v13, 0.0  ;;  %v18399_v0 = vpop.eup %15870  ;;  %v19615_v13 = vld [vmem:[#allocation37_spill] sm:$0xff] }
 0x538   : > { %19611 = vst [vmem:[#allocation72_spill] sm:$0xff] %v18399_v0  ;;  %v7951_v23 = vsel %vm1005_vm1, %v18399_v0, 0.0  ;;  %v18407_v62 = vpop.eup %15872 }
 0x539   : > { %v18401_v55 = vpop.xlane.xlu0 %7604  ;;  %19612 = vst [vmem:[#allocation69_spill] sm:$0xff] %v18407_v62  ;;  %v7957_v35 = vsel %vm1005_vm1, %v18407_v62, 0.0 }
 0x53a   : > { %7937 = vadd.xlane.f32.xlu0 %v7936_v37  ;;  %v18413_v1 = vpop.eup %15874  ;;  %v18415_v37 = vpop.xlane.xlu1 %7607 }
 0x53b   : > { %19613 = vst [vmem:[#allocation74_spill] sm:$0xff] %v18413_v1  ;;  %v7960_v0 = vsel %vm1005_vm1, %v18413_v1, 0.0 }
 0x53d   : > { %v18409_v19 = vpop.xlane.xlu0 %7610 }
 0x53e   : > { %7946 = vadd.xlane.f32.xlu0 %v7945_v47  ;;  %v19614_v47 = vld [vmem:[#allocation36_spill] sm:$0xff]  ;;  %v18425_v57 = vpop.xlane.xlu1 %7613 }
 0x53f   : > { %v19616_v44 = vpack.i.bf16 %v19614_v47, %v19615_v13  ;;  %v7786_v47 = vmul.f32 1.442695, %v7670_v40 }
 0x542   : > { %7952 = vadd.xlane.f32.xlu0 %v7951_v23  ;;  %v18423_v23 = vpop.xlane.xlu0 %7616 }
 0x546   : > { %7958 = vadd.xlane.f32.xlu0 %v7957_v35 }
 0x547   : > { %15748 = vrot.lane.b32.xlu1 %v19616_v44, %s16317_s28  ;;  %v19618_v44 = vld [vmem:[#allocation46_spill] sm:$0xff] }
 0x548   : > { %v7672_v13 = vsub.f32 %v19618_v44, %v7590_v16 }
 0x54a   : > { %7961 = vadd.xlane.f32.xlu0 %v7960_v0  ;;  %v7790_v58 = vmul.f32 1.442695, %v7672_v13  ;;  %v19622_v13 = vld [vmem:[#allocation20_spill] sm:$0xff] }
 0x54f   : > { %v7815_v41 = vpop.xlane.xlu0 %7814 }
 0x550   : > { %15876 = vrcp.f32 %v7815_v41  ;;  %v7812_v62 = vpop.xlane.xlu1 %7811  ;;  %v19619_v41 = vld [vmem:[#allocation40_spill] sm:$0xff] }
 0x551   : > { %15878 = vrcp.f32 %v7812_v62  ;;  %v15626_v59 = vunpack.i.h.bf16 %v19619_v41  ;;  %v15625_v62 = vunpack.i.l.bf16 %v19619_v41 }
 0x554   : > { %v7821_v35 = vpop.xlane.xlu0 %7820 }
 0x555   : > { %15880 = vrcp.f32 %v7821_v35  ;;  %v19620_v35 = vld [vmem:[#allocation30_spill] sm:$0xff] }
 0x556   : > { %v7675_v42 = vsub.f32 %v19620_v35, %v18378_v7 }
 0x558   : > { %v7827_v0 = vpop.xlane.xlu0 %7826  ;;  %v7818_v1 = vpop.xlane.xlu1 %7817 }
 0x559   : > { %15882 = vrcp.f32 %v7827_v0  ;;  %v19624_v0 = vld [vmem:[#allocation35_spill] sm:$0xff] }
 0x55a   : > { %v15877_v33 = vpop.eup %15876  ;;  %15884 = vrcp.f32 %v7818_v1  ;;  %v7796_v1 = vmul.f32 1.442695, %v7675_v42 }
 0x55b   : > { %v15879_v11 = vpop.eup %15878  ;;  %v8067_v9 = vmul.f32 %v15877_v33, %v18126_v61  ;;  %15886 = vpow2.f32 %v7786_v47  ;;  %v19621_v33 = vld [vmem:[#allocation49_spill] sm:$0xff]  ;;  %v19623_v47 = vld [vmem:[#allocation34_spill] sm:$0xff] }
 0x55c   : > { %v7824_v16 = vpop.xlane.xlu0 %7823  ;;  %v8066_v40 = vmul.f32 %v15879_v11, %v18128_v31  ;;  %v7674_v7 = vsub.f32 %v19621_v33, %v18391_v43  ;;  %v15230_v11 = vpack.c.bf16 %v15626_v59, %v15625_v62  ;;  %v19625_v41 = vpack.i.bf16 %v19623_v47, %v19624_v0 }
 0x55d   : > { %8131 = vst.msk [vmem:[%s18439_s15 + $0x8] sm:$0xff] %vm1005_vm1, %v8067_v9  ;;  %15888 = vrcp.f32 %v7824_v16 }
 0x55e   : > { %8130 = vst.msk [vmem:[%s18439_s15] sm:$0xff] %vm1005_vm1, %v8066_v40  ;;  %14438 = vmatprep.mubr.msk.f32.mxu0 %vm1005_vm1, %v8066_v40  ;;  %15890 = vpow2.f32 %v7790_v58  ;;  %v19626_v58 = vld [vmem:[#allocation21_spill] sm:$0xff]  ;;  %v7794_v42 = vmul.f32 1.442695, %v7674_v7  ;;  %v19628_v7 = vld [vmem:[#allocation24_spill] sm:$0xff] }
 0x55f   : > { %v15881_v61 = vpop.eup %15880  ;;  %14439 = vmatmul.mubr.msk.f32.vlgmr.msra.gmra.mrb[152].mxu0 %vm1005_vm1, %v8067_v9  ;;  %v7830_v31 = vpop.xlane.xlu1 %7829  ;;  %v15631_v59 = vunpack.i.h.bf16 %v19626_v58  ;;  %v15630_v62 = vunpack.i.l.bf16 %v19626_v58  ;;  %v19627_v9 = vld [vmem:[#allocation54_spill] sm:$0xff]  ;;  %v15666_v47 = vunpack.i.h.bf16 %v19628_v7  ;;  %v15665_v0 = vunpack.i.l.bf16 %v19628_v7 }
 0x560   : > { %v8069_v44 = vmul.f32 %v15881_v61, %v18135_v8  ;;  %15225 = vmatpush3.bf16.msra.mxu0 %v19622_v13  ;;  %15892 = vrcp.f32 %v7830_v31  ;;  %15743 = vrot.lane.b32.xlu0 %v19625_v41, %s16317_s28  ;;  %v7833_v35 = vpop.xlane.xlu0 %7832  ;;  %v7677_v16 = vsub.f32 %v19627_v9, %v18401_v55 }
 0x561   : > { %15894 = vrcp.f32 %v7833_v35  ;;  %15231 = vmatprep.subr.bf16.mxu0 %v15230_v11  ;;  %v15238_v35 = vpack.c.bf16 %v15631_v59, %v15630_v62 }
 0x562   : > { %8133 = vst.msk [vmem:[%s18439_s15 + $0x18] sm:$0xff] %vm1005_vm1, %v8069_v44  ;;  %15896 = vpow2.f32 %v7796_v1  ;;  %v19629_v1 = vld [vmem:[#allocation22_spill] sm:$0xff] }
 0x563   : > { %v15883_v43 = vpop.eup %15882  ;;  %v7671_v41 = vsub.f32 %v19629_v1, %v18363_v34 }
 0x564   : > { %v15885_v8 = vpop.eup %15884  ;;  %v8071_v40 = vmul.f32 %v15883_v43, %v18141_v3  ;;  %v7839_v61 = vpop.xlane.xlu0 %7838 }
 0x565   : > { %15898 = vrcp.f32 %v7839_v61  ;;  %v8068_v33 = vmul.f32 %v15885_v8, %v18143_v2  ;;  %v18463_v31 = vpop.eup %15886  ;;  %v7800_v2 = vmul.f32 1.442695, %v7677_v16  ;;  %v19631_v61 = vld [vmem:[#allocation33_spill] sm:$0xff] }
 0x566   : > { %8135 = vst.msk [vmem:[%s18439_s15 + $0x28] sm:$0xff] %vm1005_vm1, %v8071_v40  ;;  %15900 = vpow2.f32 %v7794_v42  ;;  %v19630_v42 = vld [vmem:[#allocation32_spill] sm:$0xff] }
 0x567   : > { %v15889_v13 = vpop.eup %15888  ;;  %8132 = vst.msk [vmem:[%s18439_s15 + $0x10] sm:$0xff] %vm1005_vm1, %v8068_v33  ;;  %14445 = vmatprep.mubr.msk.f32.mxu0 %vm1005_vm1, %v8068_v33  ;;  %v7836_v3 = vpop.xlane.xlu1 %7835  ;;  %v15636_v8 = vunpack.i.h.bf16 %v19630_v42  ;;  %v15635_v9 = vunpack.i.l.bf16 %v19630_v42 }
 0x568   : > { %14446 = vmatmul.mubr.msk.f32.vlgmr.msra.gmra.mrb[154].mxu0 %vm1005_vm1, %v8069_v44  ;;  %15902 = vrcp.f32 %v7836_v3  ;;  %v7845_v55 = vpop.xlane.xlu0 %7844  ;;  %v8070_v43 = vmul.f32 %v15889_v13, %v18150_v26  ;;  %v18476_v58 = vpop.eup %15890  ;;  %v7966_v44 = vsel %vm1005_vm1, %v18463_v31, 0.0  ;;  %v7788_v26 = vmul.f32 1.442695, %v7671_v41  ;;  %v19632_v13 = vld [vmem:[#allocation29_spill] sm:$0xff] }
 0x569   : > { %15233 = vmatpush3.bf16.msra.mxu0 %v15230_v11  ;;  %15904 = vrcp.f32 %v7845_v55  ;;  %v15242_v11 = vpack.c.bf16 %v15666_v47, %v15665_v0  ;;  %v7673_v7 = vsub.f32 %v19632_v13, %v18382_v28 }
 0x56a   : > { %v15893_v34 = vpop.eup %15892  ;;  %15239 = vmatprep.subr.bf16.mxu0 %v15238_v35  ;;  %8134 = vst.msk [vmem:[%s18439_s15 + $0x20] sm:$0xff] %vm1005_vm1, %v8070_v43  ;;  %14452 = vmatprep.mubr.msk.f32.mxu1 %vm1005_vm1, %v8070_v43  ;;  %15906 = vpow2.f32 %v7800_v2  ;;  %v19633_v2 = vld [vmem:[#allocation48_spill] sm:$0xff] }
 0x56b   : > { %v15895_v59 = vpop.eup %15894  ;;  %14453 = vmatmul.mubr.msk.f32.vlgmr.msra.gmra.mrb[104].mxu1 %vm1005_vm1, %v8071_v40  ;;  %7967 = vadd.xlane.f32.xlu1 %v7966_v44  ;;  %v8072_v62 = vmul.f32 %v15893_v34, %v18158_v27  ;;  %v15246_v27 = vpack.c.bf16 %v15636_v8, %v15635_v9  ;;  %v7792_v3 = vmul.f32 1.442695, %v7673_v7  ;;  %v7676_v55 = vsub.f32 %v19633_v2, %v18403_v15  ;;  %v19634_v34 = vld [vmem:[#allocation44_spill] sm:$0xff] }
 0x56c   : > { %v8073_v16 = vmul.f32 %v15895_v59, %v18156_v14  ;;  %15237 = vmatpush3.bf16.msra.mxu1 %v19631_v61  ;;  %v7842_v33 = vpop.xlane.xlu0 %7841  ;;  %v18494_v40 = vpop.eup %15896  ;;  %v7972_v14 = vsel %vm1005_vm1, %v18476_v58, 0.0  ;;  %v15676_v42 = vunpack.i.h.bf16 %v19634_v34 }
 0x56d   : > { %15243 = vmatprep.subr.bf16.mxu1 %v15242_v11  ;;  %15908 = vrcp.f32 %v7842_v33  ;;  %8136 = vst.msk [vmem:[%s18439_s15 + $0x30] sm:$0xff] %vm1005_vm1, %v8072_v62  ;;  %14459 = vmatprep.mubr.msk.f32.mxu0 %vm1005_vm1, %v8072_v62  ;;  %v7798_v15 = vmul.f32 1.442695, %v7676_v55  ;;  %v19636_v55 = vld [vmem:[#allocation41_spill] sm:$0xff] }
 0x56e   : > { %8137 = vst.msk [vmem:[%s18439_s15 + $0x38] sm:$0xff] %vm1005_vm1, %v8073_v16  ;;  %14460 = vmatmul.mubr.msk.f32.vlgmr.msra.gmra.mrb[156].mxu0 %vm1005_vm1, %v8073_v16  ;;  %15910 = vpow2.f32 %v7788_v26 }
 0x56f   : > { %v15899_v47 = vpop.eup %15898  ;;  %15241 = vmatpush3.bf16.msra.mxu0 %v15238_v35  ;;  %7973 = vadd.xlane.f32.xlu1 %v7972_v14  ;;  %v7851_v28 = vpop.xlane.xlu1 %7850  ;;  %v15675_v35 = vunpack.i.l.bf16 %v19634_v34  ;;  %v15685_v34 = vunpack.i.l.bf16 %v19636_v55 }
 0x570   : > { %v8075_v0 = vmul.f32 %v15899_v47, %v18165_v46  ;;  %15247 = vmatprep.subr.bf16.mxu0 %v15246_v27  ;;  %15912 = vrcp.f32 %v7851_v28  ;;  %v7857_v1 = vpop.xlane.xlu0 %7856  ;;  %v18502_v41 = vpop.eup %15900  ;;  %v7981_v46 = vsel %vm1005_vm1, %v18494_v40, 0.0 }
 0x571   : > { %15914 = vrcp.f32 %v7857_v1  ;;  %v7978_v62 = vsel %vm1005_vm1, %v18502_v41, 0.0 }
 0x572   : > { %v15903_v43 = vpop.eup %15902  ;;  %8139 = vst.msk [vmem:[%s18439_s15 + $0x48] sm:$0xff] %vm1005_vm1, %v8075_v0 }
 0x573   : > { %v15905_v8 = vpop.eup %15904  ;;  %7982 = vadd.xlane.f32.xlu1 %v7981_v46  ;;  %v7848_v9 = vpop.xlane.xlu1 %7847  ;;  %v8074_v44 = vmul.f32 %v15903_v43, %v18172_v36  ;;  %v15250_v36 = vpack.c.bf16 %v15676_v42, %v15675_v35  ;;  %v15686_v43 = vunpack.i.h.bf16 %v19636_v55 }
 0x574   : > { %v8077_v59 = vmul.f32 %v15905_v8, %v18170_v21  ;;  %15916 = vrcp.f32 %v7848_v9  ;;  %v18517_v26 = vpop.eup %15906  ;;  %v19635_v21 = vld [vmem:[#allocation38_spill] sm:$0xff] }
 0x575   : > { %15918 = vpow2.f32 %v7792_v3  ;;  %8138 = vst.msk [vmem:[%s18439_s15 + $0x40] sm:$0xff] %vm1005_vm1, %v8074_v44  ;;  %14466 = vmatprep.mubr.msk.f32.mxu1 %vm1005_vm1, %v8074_v44  ;;  %v15641_v61 = vunpack.i.h.bf16 %v19635_v21  ;;  %v15640_v33 = vunpack.i.l.bf16 %v19635_v21  ;;  %v7987_v28 = vsel %vm1005_vm1, %v18517_v26, 0.0  ;;  %v19637_v8 = vld [vmem:[#allocation42_spill] sm:$0xff] }
 0x576   : > { %8141 = vst.msk [vmem:[%s18439_s15 + $0x58] sm:$0xff] %vm1005_vm1, %v8077_v59  ;;  %14467 = vmatmul.mubr.msk.f32.vlgmr.msra.gmra.mrb[106].mxu1 %vm1005_vm1, %v8075_v0  ;;  %v15651_v9 = vunpack.i.h.bf16 %v19637_v8  ;;  %v15650_v44 = vunpack.i.l.bf16 %v19637_v8 }
 0x577   : > { %v15909_v16 = vpop.eup %15908  ;;  %15245 = vmatpush3.bf16.msra.mxu1 %v15242_v11  ;;  %7979 = vadd.xlane.f32.xlu1 %v7978_v62  ;;  %v7854_v13 = vpop.xlane.xlu1 %7853 }
 0x578   : > { %15251 = vmatprep.subr.bf16.mxu1 %v15250_v36  ;;  %15920 = vrcp.f32 %v7854_v13  ;;  %v8076_v7 = vmul.f32 %v15909_v16, %v18179_v52  ;;  %v18527_v14 = vpop.eup %15910  ;;  %v15254_v52 = vpack.c.bf16 %v15641_v61, %v15640_v33 }
 0x579   : > { %15922 = vpow2.f32 %v7798_v15  ;;  %v15258_v15 = vpack.c.bf16 %v15686_v43, %v15685_v34 }
 0x57a   : > { %v15913_v47 = vpop.eup %15912  ;;  %8140 = vst.msk [vmem:[%s18439_s15 + $0x50] sm:$0xff] %vm1005_vm1, %v8076_v7  ;;  %14473 = vmatprep.mubr.msk.f32.mxu0 %vm1005_vm1, %v8076_v7 }
 0x57b   : > { %v15915_v11 = vpop.eup %15914  ;;  %v8079_v0 = vmul.f32 %v15913_v47, %v18187_v45  ;;  %v7863_v1 = vpop.xlane.xlu0 %7862  ;;  %7988 = vadd.xlane.f32.xlu1 %v7987_v28  ;;  %14474 = vmatmul.mubr.msk.f32.vlgmr.msra.gmra.mrb[158].mxu0 %vm1005_vm1, %v8077_v59  ;;  %v7969_v45 = vsel %vm1005_vm1, %v18527_v14, 0.0 }
 0x57c   : > { %v8081_v3 = vmul.f32 %v15915_v11, %v18185_v32  ;;  %15924 = vrcp.f32 %v7863_v1  ;;  %15249 = vmatpush3.bf16.msra.mxu0 %v15246_v27  ;;  %v19638_v11 = vld [vmem:[#allocation17_spill] sm:$0xff] }
 0x57d   : > { %8143 = vst.msk [vmem:[%s18439_s15 + $0x68] sm:$0xff] %vm1005_vm1, %v8079_v0  ;;  %15255 = vmatprep.subr.bf16.mxu0 %v15254_v52  ;;  %v15695_v1 = vunpack.i.l.bf16 %v19638_v11 }
 0x57e   : > { %v15917_v2 = vpop.eup %15916  ;;  %8145 = vst.msk [vmem:[%s18439_s15 + $0x78] sm:$0xff] %vm1005_vm1, %v8081_v3 }
 0x57f   : > { %v18545_v42 = vpop.eup %15918  ;;  %7970 = vadd.xlane.f32.xlu0 %v7969_v45  ;;  %v7869_v32 = vpop.xlane.xlu0 %7868  ;;  %v8078_v27 = vmul.f32 %v15917_v2, %v18195_v49  ;;  %v19640_v2 = vld [vmem:[#allocation11_spill] sm:$0xff] }
 0x580   : > { %v7860_v35 = vpop.xlane.xlu1 %7859  ;;  %15926 = vrcp.f32 %v7869_v32  ;;  %v7975_v59 = vsel %vm1005_vm1, %v18545_v42, 0.0 }
 0x581   : > { %15928 = vrcp.f32 %v7860_v35  ;;  %8142 = vst.msk [vmem:[%s18439_s15 + $0x60] sm:$0xff] %vm1005_vm1, %v8078_v27  ;;  %14480 = vmatprep.mubr.msk.f32.mxu1 %vm1005_vm1, %v8078_v27 }
 0x582   : > { %v15921_v46 = vpop.eup %15920  ;;  %14481 = vmatmul.mubr.msk.f32.vlgmr.msra.gmra.mrb[108].mxu1 %vm1005_vm1, %v8079_v0  ;;  %v15696_v0 = vunpack.i.h.bf16 %v19638_v11 }
 0x583   : > { %v18556_v62 = vpop.eup %15922  ;;  %15253 = vmatpush3.bf16.msra.mxu1 %v15250_v36  ;;  %7976 = vadd.xlane.f32.xlu0 %v7975_v59  ;;  %v7881_v49 = vpop.xlane.xlu0 %7880  ;;  %v8080_v21 = vmul.f32 %v15921_v46, %v18201_v53  ;;  %v15262_v36 = vpack.c.bf16 %v15651_v9, %v15650_v44  ;;  %v19643_v59 = vld [vmem:[#allocation19_spill] sm:$0xff] }
 0x584   : > { %v7866_v16 = vpop.xlane.xlu1 %7865  ;;  %15930 = vrcp.f32 %v7881_v49  ;;  %15259 = vmatprep.subr.bf16.mxu1 %v15258_v15  ;;  %v7984_v33 = vsel %vm1005_vm1, %v18556_v62, 0.0  ;;  %v15671_v49 = vunpack.i.h.bf16 %v19643_v59 }
 0x585   : > { %15932 = vrcp.f32 %v7866_v16  ;;  %8144 = vst.msk [vmem:[%s18439_s15 + $0x70] sm:$0xff] %vm1005_vm1, %v8080_v21  ;;  %14487 = vmatprep.mubr.msk.f32.mxu0 %vm1005_vm1, %v8080_v21  ;;  %v15670_v16 = vunpack.i.l.bf16 %v19643_v59 }
 0x586   : > { %v15925_v61 = vpop.eup %15924  ;;  %14488 = vmatmul.mubr.msk.f32.vlgmr.msra.gmra.mrb[160].mxu0 %vm1005_vm1, %v8081_v3 }
 0x587   : > { %v8083_v13 = vmul.f32 %v15925_v61, %v18206_v6  ;;  %15257 = vmatpush3.bf16.msra.mxu0 %v15254_v52  ;;  %7985 = vadd.xlane.f32.xlu0 %v7984_v33  ;;  %v7878_v53 = vpop.xlane.xlu0 %7877  ;;  %v19639_v52 = vld [vmem:[#allocation10_spill] sm:$0xff] }
 0x588   : > { %v7875_v7 = vpop.xlane.xlu1 %7874  ;;  %15934 = vrcp.f32 %v7878_v53  ;;  %15263 = vmatprep.subr.bf16.mxu0 %v15262_v36  ;;  %v19641_v55 = vpack.i.bf16 %v19639_v52, %v19640_v2  ;;  %v19646_v52 = vld [vmem:[#allocation8_spill] sm:$0xff] }
 0x589   : > { %8147 = vst.msk [vmem:[%s18439_s15 + $0x88] sm:$0xff] %vm1005_vm1, %v8083_v13  ;;  %15936 = vrcp.f32 %v7875_v7 }
 0x58a   : > { %v15927_v47 = vpop.eup %15926 }
 0x58b   : > { %v15929_v28 = vpop.eup %15928  ;;  %v8085_v3 = vmul.f32 %v15927_v47, %v18210_v60  ;;  %v19642_v60 = vld [vmem:[#allocation18_spill] sm:$0xff]  ;;  %v18604_v47 = vpack.c.bf16 %v15671_v49, %v15670_v16  ;;  %v19653_v49 = vld [vmem:[#allocation39_spill] sm:$0xff] }
 0x58c   : > { %v7872_v6 = vpop.xlane.xlu1 %7871  ;;  %15758 = vrot.lane.b32.xlu1 %v19641_v55, %s16317_s28  ;;  %v8082_v43 = vmul.f32 %v15929_v28, %v18214_v38  ;;  %v15661_v32 = vunpack.i.h.bf16 %v19642_v60  ;;  %v15660_v35 = vunpack.i.l.bf16 %v19642_v60  ;;  %v15266_v38 = vpack.c.bf16 %v15696_v0, %v15695_v1  ;;  %v19645_v28 = vld [vmem:[#allocation53_spill] sm:$0xff] }
 0x58d   : > { %15938 = vrcp.f32 %v7872_v6  ;;  %8149 = vst.msk [vmem:[%s18439_s15 + $0x98] sm:$0xff] %vm1005_vm1, %v8085_v3  ;;  %v7679_v11 = vsub.f32 %v19645_v28, %v18409_v19  ;;  %v19647_v19 = vld [vmem:[#allocation9_spill] sm:$0xff]  ;;  %v15681_v16 = vunpack.i.h.bf16 %v19653_v49 }
 0x58e   : > { %v15931_v34 = vpop.eup %15930  ;;  %8146 = vst.msk [vmem:[%s18439_s15 + $0x80] sm:$0xff] %vm1005_vm1, %v8082_v43  ;;  %14494 = vmatprep.mubr.msk.f32.mxu1 %vm1005_vm1, %v8082_v43  ;;  %v19648_v2 = vpack.i.bf16 %v19646_v52, %v19647_v19  ;;  %v19649_v43 = vld [vmem:[#allocation47_spill] sm:$0xff] }
 0x58f   : > { %v15933_v45 = vpop.eup %15932  ;;  %v8089_v27 = vmul.f32 %v15931_v34, %v18220_v12  ;;  %14495 = vmatmul.mubr.msk.f32.vlgmr.msra.gmra.mrb[110].mxu1 %vm1005_vm1, %v8083_v13  ;;  %v7887_v46 = vpop.xlane.xlu0 %7886  ;;  %v19644_v13 = vld [vmem:[#allocation45_spill] sm:$0xff]  ;;  %v15716_v34 = vunpack.i.h.bf16 %v19649_v43 }
 0x590   : > { %v7905_v8 = vpop.xlane.xlu1 %7904  ;;  %15261 = vmatpush3.bf16.msra.mxu1 %v15258_v15  ;;  %15940 = vrcp.f32 %v7887_v46  ;;  %v8084_v9 = vmul.f32 %v15933_v45, %v18223_v51  ;;  %v15270_v51 = vpack.c.bf16 %v15661_v32, %v15660_v35  ;;  %v15706_v53 = vunpack.i.h.bf16 %v19644_v13  ;;  %v19650_v45 = vld [vmem:[#allocation50_spill] sm:$0xff]  ;;  %v19651_v35 = vld [vmem:[#allocation57_spill] sm:$0xff] }
 0x591   : > { %8153 = vst.msk [vmem:[%s18439_s15 + $0xb8] sm:$0xff] %vm1005_vm1, %v8089_v27  ;;  %15267 = vmatprep.subr.bf16.mxu1 %v15266_v38  ;;  %15942 = vrcp.f32 %v7905_v8  ;;  %v15705_v7 = vunpack.i.l.bf16 %v19644_v13  ;;  %v7678_v60 = vsub.f32 %v19650_v45, %v18415_v37  ;;  %v7804_v32 = vmul.f32 1.442695, %v7679_v11  ;;  %v19652_v8 = vld [vmem:[#allocation60_spill] sm:$0xff] }
 0x592   : > { %v15935_v44 = vpop.eup %15934  ;;  %8148 = vst.msk [vmem:[%s18439_s15 + $0x90] sm:$0xff] %vm1005_vm1, %v8084_v9  ;;  %14501 = vmatprep.mubr.msk.f32.mxu0 %vm1005_vm1, %v8084_v9  ;;  %v7681_v9 = vsub.f32 %v19652_v8, %v18423_v23  ;;  %v19654_v23 = vld [vmem:[#allocation31_spill] sm:$0xff]  ;;  %v19655_v11 = vld [vmem:[#allocation56_spill] sm:$0xff] }
 0x593   : > { %v15937_v12 = vpop.eup %15936  ;;  %14502 = vmatmul.mubr.msk.f32.vlgmr.msra.gmra.mrb[162].mxu0 %vm1005_vm1, %v8085_v3  ;;  %v7884_v15 = vpop.xlane.xlu0 %7883  ;;  %v8088_v21 = vmul.f32 %v15935_v44, %v18232_v5  ;;  %v15274_v0 = vpack.c.bf16 %v15706_v53, %v15705_v7 }
 0x594   : > { %v8087_v61 = vmul.f32 %v15937_v12, %v18235_v48  ;;  %15265 = vmatpush3.bf16.msra.mxu0 %v15262_v36  ;;  %15944 = vrcp.f32 %v7884_v15 }
 0x595   : > { %15271 = vmatprep.subr.bf16.mxu0 %v15270_v51  ;;  %8152 = vst.msk [vmem:[%s18439_s15 + $0xb0] sm:$0xff] %vm1005_vm1, %v8088_v21  ;;  %14515 = vmatprep.mubr.msk.f32.mxu0 %vm1005_vm1, %v8088_v21  ;;  %v7680_v21 = vsub.f32 %v19654_v23, %v18425_v57 }
 0x596   : > { %8151 = vst.msk [vmem:[%s18439_s15 + $0xa8] sm:$0xff] %vm1005_vm1, %v8087_v61 }
 0x597   : > { %v15939_v33 = vpop.eup %15938  ;;  %14516 = vmatmul.mubr.msk.f32.vlgmr.msra.gmra.mrb[164].mxu0 %vm1005_vm1, %v8089_v27  ;;  %v7893_v5 = vpop.xlane.xlu0 %7892  ;;  %v7806_v7 = vmul.f32 1.442695, %v7680_v21 }
 0x598   : > { %v8086_v48 = vmul.f32 %v15939_v33, %v18244_v63  ;;  %15273 = vmatpush3.bf16.msra.mxu0 %v15270_v51  ;;  %15946 = vrcp.f32 %v7893_v5  ;;  %v15680_v51 = vunpack.i.l.bf16 %v19653_v49 }
 0x599   : > { %15279 = vmatprep.subr.bf16.mxu0 %v18604_v47 }
 0x59a   : > { %8150 = vst.msk [vmem:[%s18439_s15 + $0xa0] sm:$0xff] %vm1005_vm1, %v8086_v48  ;;  %14508 = vmatprep.mubr.msk.f32.mxu1 %vm1005_vm1, %v8086_v48  ;;  %v15941_v36 = vpop.eup %15940  ;;  %v15286_v5 = vpack.c.bf16 %v15681_v16, %v15680_v51 }
 0x59b   : > { %14509 = vmatmul.mubr.msk.f32.vlgmr.msra.gmra.mrb[112].mxu1 %vm1005_vm1, %v8087_v61  ;;  %v15943_v1 = vpop.eup %15942  ;;  %v8091_v63 = vmul.f32 %v15941_v36, %v18253_v24  ;;  %v7890_v3 = vpop.xlane.xlu0 %7889  ;;  %v15715_v24 = vunpack.i.l.bf16 %v19649_v43  ;;  %v7808_v61 = vmul.f32 1.442695, %v7681_v9  ;;  %v19656_v43 = vld [vmem:[#allocation28_spill] sm:$0xff] }
 0x59c   : > { %15269 = vmatpush3.bf16.msra.mxu1 %v15266_v38  ;;  %v18616_v6 = vmul.f32 %v15943_v1, %v18251_v20  ;;  %15948 = vrcp.f32 %v7890_v3  ;;  %v7802_v38 = vmul.f32 1.442695, %v7678_v60  ;;  %v15725_v1 = vunpack.i.l.bf16 %v19655_v11 }
 0x59d   : > { %15275 = vmatprep.subr.bf16.mxu1 %v15274_v0  ;;  %8155 = vst.msk [vmem:[%s18439_s15 + $0xc8] sm:$0xff] %vm1005_vm1, %v8091_v63  ;;  %15753 = vrot.lane.b32.xlu0 %v19648_v2, %s16317_s28  ;;  %v15282_v37 = vpack.c.bf16 %v15716_v34, %v15715_v24  ;;  %v15691_v34 = vunpack.i.h.bf16 %v19656_v43  ;;  %v15690_v24 = vunpack.i.l.bf16 %v19656_v43 }
 0x59e   : > { %v15945_v55 = vpop.eup %15944  ;;  %8161 = vst.msk [vmem:[%s18439_s15 + $0xf8] sm:$0xff] %vm1005_vm1, %v18616_v6 }
 0x59f   : > { %v7899_v20 = vpop.xlane.xlu0 %7898  ;;  %v8090_v27 = vmul.f32 %v15945_v55, %v19651_v35 }
 0x5a0   : > { %15950 = vrcp.f32 %v7899_v20 }
 0x5a1   : > { %8154 = vst.msk [vmem:[%s18439_s15 + $0xc0] sm:$0xff] %vm1005_vm1, %v8090_v27  ;;  %14522 = vmatprep.mubr.msk.f32.mxu1 %vm1005_vm1, %v8090_v27  ;;  %15952 = vpow2.f32 %v7804_v32 }
 0x5a2   : > { %v15947_v46 = vpop.eup %15946  ;;  %14523 = vmatmul.mubr.msk.f32.vlgmr.msra.gmra.mrb[114].mxu1 %vm1005_vm1, %v8091_v63 }
 0x5a3   : > { %v8093_v44 = vmul.f32 %v15947_v46, %v18267_v4  ;;  %15277 = vmatpush3.bf16.msra.mxu1 %v15274_v0  ;;  %v7896_v12 = vpop.xlane.xlu0 %7895  ;;  %v7908_v59 = vpop.xlane.xlu1 %7907  ;;  %v15726_v0 = vunpack.i.h.bf16 %v19655_v11  ;;  %v19657_v46 = vld [vmem:[#allocation51_spill] sm:$0xff] }
 0x5a4   : > { %15954 = vrcp.f32 %v7896_v12  ;;  %15283 = vmatprep.subr.bf16.mxu1 %v15282_v37  ;;  %v15730_v8 = vunpack.i.l.bf16 %v19657_v46 }
 0x5a5   : > { %8157 = vst.msk [vmem:[%s18439_s15 + $0xd8] sm:$0xff] %vm1005_vm1, %v8093_v44  ;;  %15956 = vrcp.f32 %v7908_v59 }
 0x5a6   : > { %v15949_v15 = vpop.eup %15948  ;;  %15958 = vpow2.f32 %v7802_v38  ;;  %v15731_v38 = vunpack.i.h.bf16 %v19657_v46  ;;  %v19668_v46 = vld [vmem:[#allocation58_spill] sm:$0xff] }
 0x5a7   : > { %v7902_v4 = vpop.xlane.xlu0 %7901  ;;  %v7920_v33 = vpop.xlane.xlu1 %7919  ;;  %v8092_v13 = vmul.f32 %v15949_v15, %v18274_v29 }
 0x5a8   : > { %15960 = vrcp.f32 %v7902_v4  ;;  %v19658_v4 = vld [vmem:[#allocation16_spill] sm:$0xff] }
 0x5a9   : > { %15962 = vrcp.f32 %v7920_v33  ;;  %8156 = vst.msk [vmem:[%s18439_s15 + $0xd0] sm:$0xff] %vm1005_vm1, %v8092_v13  ;;  %14529 = vmatprep.mubr.msk.f32.mxu0 %vm1005_vm1, %v8092_v13  ;;  %v15701_v33 = vunpack.i.h.bf16 %v19658_v4 }
 0x5aa   : > { %v15951_v53 = vpop.eup %15950  ;;  %15964 = vpow2.f32 %v7808_v61  ;;  %14530 = vmatmul.mubr.msk.f32.vlgmr.msra.gmra.mrb[166].mxu0 %vm1005_vm1, %v8093_v44 }
 0x5ab   : > { %v8095_v57 = vmul.f32 %v15951_v53, %v18284_v10  ;;  %15281 = vmatpush3.bf16.msra.mxu0 %v18604_v47  ;;  %v7911_v48 = vpop.xlane.xlu0 %7910  ;;  %v7929_v36 = vpop.xlane.xlu1 %7928 }
 0x5ac   : > { %v18652_v29 = vpop.eup %15952  ;;  %15966 = vrcp.f32 %v7911_v48  ;;  %15287 = vmatprep.subr.bf16.mxu0 %v15286_v5  ;;  %v19660_v48 = vld [vmem:[#allocation55_spill] sm:$0xff] }
 0x5ad   : > { %8159 = vst.msk [vmem:[%s18439_s15 + $0xe8] sm:$0xff] %vm1005_vm1, %v8095_v57  ;;  %15968 = vrcp.f32 %v7929_v36  ;;  %v7993_v3 = vsel %vm1005_vm1, %v18652_v29, 0.0  ;;  %v15736_v36 = vunpack.i.h.bf16 %v19660_v48 }
 0x5ae   : > { %v15955_v28 = vpop.eup %15954  ;;  %15970 = vpow2.f32 %v7806_v7 }
 0x5af   : > { %v15957_v63 = vpop.eup %15956  ;;  %v7917_v10 = vpop.xlane.xlu0 %7916  ;;  %v8094_v52 = vmul.f32 %v15955_v28, %v18292_v30  ;;  %v15290_v30 = vpack.c.bf16 %v15726_v0, %v15725_v1  ;;  %v15735_v28 = vunpack.i.l.bf16 %v19660_v48 }
 0x5b0   : > { %v7935_v47 = vpop.xlane.xlu1 %7934  ;;  %v18661_v19 = vpop.eup %15958  ;;  %15972 = vrcp.f32 %v7917_v10  ;;  %7994 = vadd.xlane.f32.xlu1 %v7993_v3  ;;  %v8098_v2 = vmul.f32 %v15957_v63, %v18295_v39 }
 0x5b1   : > { %15974 = vrcp.f32 %v7935_v47  ;;  %8158 = vst.msk [vmem:[%s18439_s15 + $0xe0] sm:$0xff] %vm1005_vm1, %v8094_v52  ;;  %14536 = vmatprep.mubr.msk.f32.mxu1 %vm1005_vm1, %v8094_v52  ;;  %v7990_v32 = vsel %vm1005_vm1, %v18661_v19, 0.0  ;;  %v15306_v47 = vpack.c.bf16 %v15736_v36, %v15735_v28  ;;  %v19662_v52 = vld [vmem:[#allocation23_spill] sm:$0xff] }
 0x5b2   : > { %v15961_v55 = vpop.eup %15960  ;;  %14537 = vmatmul.mubr.msk.f32.vlgmr.msra.gmra.mrb[116].mxu1 %vm1005_vm1, %v8095_v57  ;;  %8162 = vst.msk [vmem:[%s18439_s15 + $0x100] sm:$0xff] %vm1005_vm1, %v8098_v2 }
 0x5b3   : > { %v15963_v45 = vpop.eup %15962  ;;  %15285 = vmatpush3.bf16.msra.mxu1 %v15282_v37  ;;  %v7914_v60 = vpop.xlane.xlu0 %7913  ;;  %14550 = vmatprep.mubr.msk.f32.mxu1 %vm1005_vm1, %v8098_v2  ;;  %v8096_v20 = vmul.f32 %v15961_v55, %v18305_v17  ;;  %v15294_v17 = vpack.c.bf16 %v15691_v34, %v15690_v24  ;;  %v15711_v2 = vunpack.i.h.bf16 %v19662_v52  ;;  %v15710_v55 = vunpack.i.l.bf16 %v19662_v52  ;;  %v19663_v24 = vld [vmem:[#allocation64_spill] sm:$0xff] }
 0x5b4   : > { %v7944_v39 = vpop.xlane.xlu1 %7943  ;;  %v18676_v35 = vpop.eup %15964  ;;  %15976 = vrcp.f32 %v7914_v60  ;;  %15291 = vmatprep.subr.bf16.mxu1 %v15290_v30  ;;  %7991 = vadd.xlane.f32.xlu1 %v7990_v32  ;;  %v8102_v27 = vmul.f32 %v15963_v45, %v18307_v25  ;;  %v19664_v45 = vld [vmem:[#allocation61_spill] sm:$0xff]  ;;  %v19666_v32 = vld [vmem:[#allocation15_spill] sm:$0xff] }
 0x5b5   : > { %15978 = vrcp.f32 %v7944_v39  ;;  %8160 = vst.msk [vmem:[%s18439_s15 + $0xf0] sm:$0xff] %vm1005_vm1, %v8096_v20  ;;  %14543 = vmatprep.mubr.msk.f32.mxu0 %vm1005_vm1, %v8096_v20  ;;  %v7999_v12 = vsel %vm1005_vm1, %v18676_v35, 0.0  ;;  %v19665_v39 = vld [vmem:[#allocation14_spill] sm:$0xff] }
 0x5b6   : > { %v15967_v9 = vpop.eup %15966  ;;  %14544 = vmatmul.mubr.msk.f32.vlgmr.msra.gmra.mrb[168].mxu0 %vm1005_vm1, %v18616_v6  ;;  %8166 = vst.msk [vmem:[%s18439_s15 + $0x120] sm:$0xff] %vm1005_vm1, %v8102_v27  ;;  %v15298_v6 = vpack.c.bf16 %v15731_v38, %v15730_v8  ;;  %v19667_v20 = vpack.i.bf16 %v19665_v39, %v19666_v32  ;;  %v15741_v38 = vunpack.i.h.bf16 %v19668_v46  ;;  %v15740_v8 = vunpack.i.l.bf16 %v19668_v46  ;;  %v19681_v39 = vld [vmem:[#allocation74_spill] sm:$0xff] }
 0x5b7   : > { %v15969_v37 = vpop.eup %15968  ;;  %v8099_v25 = vmul.f32 %v15967_v9, %v18311_v50  ;;  %15289 = vmatpush3.bf16.msra.mxu0 %v15286_v5  ;;  %v7923_v44 = vpop.xlane.xlu0 %7922  ;;  %v19659_v5 = vld [vmem:[#allocation62_spill] sm:$0xff]  ;;  %v15310_v9 = vpack.c.bf16 %v15711_v2, %v15710_v55 }
 0x5b8   : > { %v18691_v59 = vpop.eup %15970  ;;  %v18694_v49 = vmul.f32 %v15969_v37, %v18319_v56  ;;  %15980 = vrcp.f32 %v7923_v44  ;;  %15295 = vmatprep.subr.bf16.mxu0 %v15294_v17  ;;  %8000 = vadd.xlane.f32.xlu1 %v7999_v12  ;;  %v19670_v12 = vld [vmem:[#allocation63_spill] sm:$0xff] }
 0x5b9   : > { %8163 = vst.msk [vmem:[%s18439_s15 + $0x108] sm:$0xff] %vm1005_vm1, %v8099_v25  ;;  %14551 = vmatmul.mubr.msk.f32.vlgmr.msra.gmra.mrb[118].mxu1 %vm1005_vm1, %v8099_v25  ;;  %v7996_v23 = vsel %vm1005_vm1, %v18691_v59, 0.0  ;;  %v19669_v25 = vld [vmem:[#allocation66_spill] sm:$0xff] }
 0x5ba   : > { %v15973_v50 = vpop.eup %15972  ;;  %8169 = vst.msk [vmem:[%s18439_s15 + $0x138] sm:$0xff] %vm1005_vm1, %v18694_v49  ;;  %15293 = vmatpush3.bf16.msra.mxu1 %v15290_v30  ;;  %14564 = vmatprep.mubr.msk.f32.mxu1 %vm1005_vm1, %v8102_v27 }
 0x5bb   : > { %v15975_v16 = vpop.eup %15974  ;;  %v8101_v56 = vmul.f32 %v15973_v50, %v18323_v54  ;;  %15299 = vmatprep.subr.bf16.mxu1 %v15298_v6  ;;  %v7926_v15 = vpop.xlane.xlu0 %7925  ;;  %v15700_v54 = vunpack.i.l.bf16 %v19658_v4 }
 0x5bc   : > { %v7950_v51 = vpop.xlane.xlu1 %7949  ;;  %v18707_v21 = vmul.f32 %v15975_v16, %v18329_v18  ;;  %15982 = vrcp.f32 %v7926_v15  ;;  %7997 = vadd.xlane.f32.xlu0 %v7996_v23  ;;  %v19672_v23 = vld [vmem:[#allocation65_spill] sm:$0xff] }
 0x5bd   : > { %8165 = vst.msk [vmem:[%s18439_s15 + $0x118] sm:$0xff] %vm1005_vm1, %v8101_v56  ;;  %15984 = vrcp.f32 %v7950_v51  ;;  %v15302_v0 = vpack.c.bf16 %v15701_v33, %v15700_v54  ;;  %v19673_v33 = vld [vmem:[#allocation52_spill] sm:$0xff] }
 0x5be   : > { %v15977_v61 = vpop.eup %15976  ;;  %8171 = vst.msk [vmem:[%s18439_s15 + $0x148] sm:$0xff] %vm1005_vm1, %v18707_v21  ;;  %v15720_v54 = vunpack.i.l.bf16 %v19673_v33 }
 0x5bf   : > { %v15979_v13 = vpop.eup %15978  ;;  %v7932_v53 = vpop.xlane.xlu0 %7931  ;;  %v8100_v18 = vmul.f32 %v15977_v61, %v18334_v22  ;;  %v19661_v22 = vld [vmem:[#allocation59_spill] sm:$0xff] }
 0x5c0   : > { %v7956_v7 = vpop.xlane.xlu1 %7955  ;;  %15986 = vrcp.f32 %v7932_v53  ;;  %v8110_v57 = vmul.f32 %v15979_v13, %v19659_v5  ;;  %v19674_v13 = vld [vmem:[#allocation12_spill] sm:$0xff]  ;;  %v19675_v53 = vld [vmem:[#allocation13_spill] sm:$0xff]  ;;  %v19677_v5 = vld [vmem:[#allocation70_spill] sm:$0xff] }
 0x5c1   : > { %15988 = vrcp.f32 %v7956_v7  ;;  %8164 = vst.msk [vmem:[%s18439_s15 + $0x110] sm:$0xff] %vm1005_vm1, %v8100_v18  ;;  %14557 = vmatprep.mubr.msk.f32.mxu0 %vm1005_vm1, %v8100_v18  ;;  %v19676_v7 = vpack.i.bf16 %v19674_v13, %v19675_v53 }
 0x5c2   : > { %v15981_v11 = vpop.eup %15980  ;;  %14558 = vmatmul.mubr.msk.f32.vlgmr.msra.gmra.mrb[170].mxu0 %vm1005_vm1, %v8101_v56  ;;  %8174 = vst.msk [vmem:[%s18439_s15 + $0x160] sm:$0xff] %vm1005_vm1, %v8110_v57  ;;  %v19671_v56 = vld [vmem:[#allocation68_spill] sm:$0xff] }
 0x5c3   : > { %v8103_v1 = vmul.f32 %v15981_v11, %v19661_v22  ;;  %15297 = vmatpush3.bf16.msra.mxu0 %v15294_v17  ;;  %v7941_v63 = vpop.xlane.xlu0 %7940  ;;  %v19678_v11 = vld [vmem:[#allocation67_spill] sm:$0xff] }
 0x5c4   : > { %v7965_v10 = vpop.xlane.xlu1 %7964  ;;  %15990 = vrcp.f32 %v7941_v63  ;;  %15303 = vmatprep.subr.bf16.mxu0 %v15302_v0 }
 0x5c5   : > { %8167 = vst.msk [vmem:[%s18439_s15 + $0x128] sm:$0xff] %vm1005_vm1, %v8103_v1  ;;  %15992 = vrcp.f32 %v7965_v10  ;;  %14565 = vmatmul.mubr.msk.f32.vlgmr.msra.gmra.mrb[120].mxu1 %vm1005_vm1, %v8103_v1 }
 0x5c6   : > { %v15983_v3 = vpop.eup %15982  ;;  %15301 = vmatpush3.bf16.msra.mxu1 %v15298_v6 }
 0x5c7   : > { %v15985_v43 = vpop.eup %15984  ;;  %15307 = vmatprep.subr.bf16.mxu1 %v15306_v47  ;;  %v7938_v34 = vpop.xlane.xlu0 %7937  ;;  %v8104_v30 = vmul.f32 %v15983_v3, %v19663_v24 }
 0x5c8   : > { %15994 = vrcp.f32 %v7938_v34  ;;  %v8112_v60 = vmul.f32 %v15985_v43, %v19664_v45  ;;  %v15749_v36 = vpop.permute.xlu1 %15748 }
 0x5c9   : > { %15768 = vrot.lane.b32.xlu1 %v19667_v20, %s16317_s28  ;;  %8168 = vst.msk [vmem:[%s18439_s15 + $0x130] sm:$0xff] %vm1005_vm1, %v8104_v30  ;;  %14571 = vmatprep.mubr.msk.f32.mxu0 %vm1005_vm1, %v8104_v30  ;;  %v15751_v1 = vunpack.i.h.bf16 %v15749_v36  ;;  %v15750_v63 = vunpack.i.l.bf16 %v15749_v36  ;;  %v19680_v30 = vld [vmem:[#allocation69_spill] sm:$0xff] }
 0x5ca   : > { %v15987_v27 = vpop.eup %15986  ;;  %14572 = vmatmul.mubr.msk.f32.vlgmr.msra.gmra.mrb[172].mxu0 %vm1005_vm1, %v18694_v49  ;;  %8176 = vst.msk [vmem:[%s18439_s15 + $0x170] sm:$0xff] %vm1005_vm1, %v8112_v60  ;;  %v15314_v49 = vpack.c.bf16 %v15741_v38, %v15740_v8 }
 0x5cb   : > { %v15989_v17 = vpop.eup %15988  ;;  %15305 = vmatpush3.bf16.msra.mxu0 %v15302_v0  ;;  %v7947_v37 = vpop.xlane.xlu0 %7946  ;;  %v8106_v44 = vmul.f32 %v15987_v27, %v19669_v25  ;;  %v15326_v43 = vpack.c.bf16 %v15751_v1, %v15750_v63 }
 0x5cc   : > { %15996 = vrcp.f32 %v7947_v37  ;;  %15311 = vmatprep.subr.bf16.mxu0 %v15310_v9  ;;  %v8114_v6 = vmul.f32 %v15989_v17, %v19670_v12 }
 0x5cd   : > { %8170 = vst.msk [vmem:[%s18439_s15 + $0x140] sm:$0xff] %vm1005_vm1, %v8106_v44  ;;  %14578 = vmatprep.mubr.msk.f32.mxu1 %vm1005_vm1, %v8106_v44 }
 0x5ce   : > { %v15991_v50 = vpop.eup %15990  ;;  %14579 = vmatmul.mubr.msk.f32.vlgmr.msra.gmra.mrb[122].mxu1 %vm1005_vm1, %v18707_v21  ;;  %8178 = vst.msk [vmem:[%s18439_s15 + $0x180] sm:$0xff] %vm1005_vm1, %v8114_v6  ;;  %v15721_v21 = vunpack.i.h.bf16 %v19673_v33 }
 0x5cf   : > { %v15993_v16 = vpop.eup %15992  ;;  %v8109_v15 = vmul.f32 %v15991_v50, %v19671_v56  ;;  %15309 = vmatpush3.bf16.msra.mxu1 %v15306_v47  ;;  %v7953_v51 = vpop.xlane.xlu0 %7952  ;;  %14592 = vmatprep.mubr.msk.f32.mxu1 %vm1005_vm1, %v8110_v57  ;;  %v19679_v47 = vld [vmem:[#allocation72_spill] sm:$0xff] }
 0x5d0   : > { %v8117_v61 = vmul.f32 %v15993_v16, %v19672_v23  ;;  %15998 = vrcp.f32 %v7953_v51  ;;  %15315 = vmatprep.subr.bf16.mxu1 %v15314_v49  ;;  %v15318_v28 = vpack.c.bf16 %v15721_v21, %v15720_v54 }
 0x5d1   : > { %8173 = vst.msk [vmem:[%s18439_s15 + $0x158] sm:$0xff] %vm1005_vm1, %v8109_v15 }
 0x5d2   : > { %v15995_v4 = vpop.eup %15994  ;;  %8181 = vst.msk [vmem:[%s18439_s15 + $0x198] sm:$0xff] %vm1005_vm1, %v8117_v61  ;;  %15763 = vrot.lane.b32.xlu0 %v19676_v7, %s16317_s28 }
 0x5d3   : > { %v7959_v18 = vpop.xlane.xlu0 %7958  ;;  %v8108_v57 = vmul.f32 %v15995_v4, %v19677_v5 }
 0x5d4   : > { %16000 = vrcp.f32 %v7959_v18 }
 0x5d5   : > { %8172 = vst.msk [vmem:[%s18439_s15 + $0x150] sm:$0xff] %vm1005_vm1, %v8108_v57  ;;  %14585 = vmatprep.mubr.msk.f32.mxu0 %vm1005_vm1, %v8108_v57 }
 0x5d6   : > { %v15997_v48 = vpop.eup %15996  ;;  %14586 = vmatmul.mubr.msk.f32.vlgmr.msra.gmra.mrb[174].mxu0 %vm1005_vm1, %v8109_v15 }
 0x5d7   : > { %v8111_v0 = vmul.f32 %v15997_v48, %v19678_v11  ;;  %15313 = vmatpush3.bf16.msra.mxu0 %v15310_v9  ;;  %v7962_v22 = vpop.xlane.xlu0 %7961  ;;  %14599 = vmatprep.mubr.msk.f32.mxu0 %vm1005_vm1, %v8112_v60 }
 0x5d8   : > { %16002 = vrcp.f32 %v7962_v22  ;;  %15319 = vmatprep.subr.bf16.mxu0 %v15318_v28 }
 0x5d9   : > { %8175 = vst.msk [vmem:[%s18439_s15 + $0x168] sm:$0xff] %vm1005_vm1, %v8111_v0  ;;  %14593 = vmatmul.mubr.msk.f32.vlgmr.msra.gmra.mrb[124].mxu1 %vm1005_vm1, %v8111_v0 }
 0x5da   : > { %v15999_v10 = vpop.eup %15998  ;;  %15317 = vmatpush3.bf16.msra.mxu1 %v15314_v49  ;;  %14606 = vmatprep.mubr.msk.f32.mxu1 %vm1005_vm1, %v8114_v6 }
 0x5db   : > { %v8113_v3 = vmul.f32 %v15999_v10, %v19679_v47  ;;  %v15744_v52 = vpop.permute.xlu0 %15743 }
 0x5dc   : > { %v15746_v2 = vunpack.i.h.bf16 %v15744_v52  ;;  %v15745_v55 = vunpack.i.l.bf16 %v15744_v52 }
 0x5dd   : > { %8177 = vst.msk [vmem:[%s18439_s15 + $0x178] sm:$0xff] %vm1005_vm1, %v8113_v3  ;;  %14600 = vmatmul.mubr.msk.f32.vlgmr.msra.gmra.mrb[176].mxu0 %vm1005_vm1, %v8113_v3 }
 0x5de   : > { %v16001_v34 = vpop.eup %16000  ;;  %v15322_v24 = vpack.c.bf16 %v15746_v2, %v15745_v55  ;;  %15321 = vmatpush3.bf16.msra.mxu0 %v15318_v28 }
 0x5df   : > { %v8115_v45 = vmul.f32 %v16001_v34, %v19680_v30  ;;  %15327 = vmatprep.subr.bf16.mxu0 %v15326_v43 }
 0x5e0   : > { %15323 = vmatprep.subr.bf16.mxu1 %v15322_v24 }
 0x5e1   : > { %8179 = vst.msk [vmem:[%s18439_s15 + $0x188] sm:$0xff] %vm1005_vm1, %v8115_v45  ;;  %14607 = vmatmul.mubr.msk.f32.vlgmr.msra.gmra.mrb[126].mxu1 %vm1005_vm1, %v8115_v45 }
 0x5e2   : > { %v16003_v60 = vpop.eup %16002  ;;  %15325 = vmatpush3.bf16.msra.mxu1 %v15322_v24 }
 0x5e3   : > { %v8116_v32 = vmul.f32 %v16003_v60, %v19681_v39 }
 0x5e5   : > { %8180 = vst.msk [vmem:[%s18439_s15 + $0x190] sm:$0xff] %vm1005_vm1, %v8116_v32  ;;  %14613 = vmatprep.mubr.msk.f32.mxu0 %vm1005_vm1, %v8116_v32 }
 0x5e6   : > { %14614 = vmatmul.mubr.msk.f32.vlgmr.msra.gmra.mrb[178].mxu0 %vm1005_vm1, %v8117_v61 }
 0x5e7   : > { %15329 = vmatpush3.bf16.msra.mxu0 %v15326_v43 }
 0x5f8   : > { %v7968_v20 = vpop.xlane.xlu1 %7967 }
 0x5f9   : > { %16004 = vrcp.f32 %v7968_v20 }
 0x5fc   : > { %v7974_v27 = vpop.xlane.xlu1 %7973 }
 0x5fd   : > { %16006 = vrcp.f32 %v7974_v27 }
 0x600   : > { %v7983_v46 = vpop.xlane.xlu1 %7982 }
 0x601   : > { %16008 = vrcp.f32 %v7983_v46 }
 0x603   : > { %v16005_v38 = vpop.eup %16004 }
 0x604   : > { %v7980_v8 = vpop.xlane.xlu1 %7979  ;;  %v8118_v9 = vmul.f32 %v16005_v38, %v18463_v31 }
 0x605   : > { %16010 = vrcp.f32 %v7980_v8 }
 0x606   : > { %8182 = vst.msk [vmem:[%s18439_s15 + $0x1a0] sm:$0xff] %vm1005_vm1, %v8118_v9  ;;  %14620 = vmatprep.mubr.msk.f32.mxu1 %vm1005_vm1, %v8118_v9 }
 0x607   : > { %v16007_v17 = vpop.eup %16006 }
 0x608   : > { %v7989_v37 = vpop.xlane.xlu1 %7988  ;;  %v8120_v25 = vmul.f32 %v16007_v17, %v18476_v58  ;;  %v11363_v17 = vld [vmem:[%s19262_s4 + $0x8] sm:$0xff] }
 0x609   : > { %16012 = vrcp.f32 %v7989_v37 }
 0x60a   : > { %8184 = vst.msk [vmem:[%s18439_s15 + $0x1b0] sm:$0xff] %vm1005_vm1, %v8120_v25  ;;  %14627 = vmatprep.mubr.msk.f32.mxu0 %vm1005_vm1, %v8120_v25 }
 0x60b   : > { %v16009_v44 = vpop.eup %16008 }
 0x60c   : > { %v8123_v12 = vmul.f32 %v16009_v44, %v18494_v40  ;;  %v7971_v31 = vpop.xlane.xlu0 %7970  ;;  %v15759_v6 = vpop.permute.xlu1 %15758 }
 0x60d   : > { %16014 = vrcp.f32 %v7971_v31  ;;  %v15761_v50 = vunpack.i.h.bf16 %v15759_v6  ;;  %v15760_v49 = vunpack.i.l.bf16 %v15759_v6 }
 0x60e   : > { %8187 = vst.msk [vmem:[%s18439_s15 + $0x1c8] sm:$0xff] %vm1005_vm1, %v8123_v12 }
 0x60f   : > { %v16011_v16 = vpop.eup %16010  ;;  %v15334_v56 = vpack.c.bf16 %v15761_v50, %v15760_v49  ;;  %v11362_v50 = vld [vmem:[%s19262_s4] sm:$0xff] }
 0x610   : > { %v7977_v58 = vpop.xlane.xlu0 %7976  ;;  %v8122_v15 = vmul.f32 %v16011_v16, %v18502_v41 }
 0x611   : > { %16016 = vrcp.f32 %v7977_v58  ;;  %15335 = vmatprep.subr.bf16.mxu0 %v15334_v56 }
 0x612   : > { %8186 = vst.msk [vmem:[%s18439_s15 + $0x1c0] sm:$0xff] %vm1005_vm1, %v8122_v15 }
 0x613   : > { %v16013_v51 = vpop.eup %16012 }
 0x614   : > { %v8125_v40 = vmul.f32 %v16013_v51, %v18517_v26  ;;  %v7986_v23 = vpop.xlane.xlu0 %7985 }
 0x615   : > { %16018 = vrcp.f32 %v7986_v23 }
 0x616   : > { %8189 = vst.msk [vmem:[%s18439_s15 + $0x1d8] sm:$0xff] %vm1005_vm1, %v8125_v40 }
 0x617   : > { %v16015_v61 = vpop.eup %16014 }
 0x618   : > { %v8119_v4 = vmul.f32 %v16015_v61, %v18527_v14  ;;  %v15754_v33 = vpop.permute.xlu0 %15753 }
 0x619   : > { %v15756_v21 = vunpack.i.h.bf16 %v15754_v33  ;;  %v15755_v54 = vunpack.i.l.bf16 %v15754_v33 }
 0x61a   : > { %8183 = vst.msk [vmem:[%s18439_s15 + $0x1a8] sm:$0xff] %vm1005_vm1, %v8119_v4  ;;  %14621 = vmatmul.mubr.msk.f32.vlgmr.msra.gmra.mrb[128].mxu1 %vm1005_vm1, %v8119_v4 }
 0x61b   : > { %v16017_v41 = vpop.eup %16016  ;;  %v15330_v13 = vpack.c.bf16 %v15756_v21, %v15755_v54  ;;  %14634 = vmatprep.mubr.msk.f32.mxu1 %vm1005_vm1, %v8122_v15 }
 0x61c   : > { %v8121_v26 = vmul.f32 %v16017_v41, %v18545_v42 }
 0x61d   : > { %15331 = vmatprep.subr.bf16.mxu1 %v15330_v13 }
 0x61e   : > { %8185 = vst.msk [vmem:[%s18439_s15 + $0x1b8] sm:$0xff] %vm1005_vm1, %v8121_v26  ;;  %14628 = vmatmul.mubr.msk.f32.vlgmr.msra.gmra.mrb[180].mxu0 %vm1005_vm1, %v8121_v26  ;;  %15333 = vmatpush3.bf16.msra.mxu1 %v15330_v13 }
 0x61f   : > { %v16019_v14 = vpop.eup %16018  ;;  %15337 = vmatpush3.bf16.msra.mxu0 %v15334_v56  ;;  %v18880_v56 = vld [vmem:[%s19262_s4 + $0x10] sm:$0xff] }
 0x620   : > { %v8124_v53 = vmul.f32 %v16019_v14, %v18556_v62 }
 0x621   : > { %14635 = vmatmul.mubr.msk.f32.vlgmr.msra.gmra.mrb[130].mxu1 %vm1005_vm1, %v8123_v12 }
 0x622   : > { %8188 = vst.msk [vmem:[%s18439_s15 + $0x1d0] sm:$0xff] %vm1005_vm1, %v8124_v53  ;;  %14641 = vmatprep.mubr.msk.f32.mxu0 %vm1005_vm1, %v8124_v53 }
 0x623   : > { %14642 = vmatmul.mubr.msk.f32.vlgmr.msra.gmra.mrb[182].mxu0 %vm1005_vm1, %v8125_v40 }
 0x632   : > { %v18825_v7 = vpop.f32.mrb[152].mxu0 }
 0x633   : > { %v18827_v42 = vpop.f32.mrb[153].mxu0 }
 0x63b   : > { %v14447_v18 = vpop.f32.mrb[154].mxu0 }
 0x63c   : > { %v8363_v5 = vpop.f32.mrb[155].mxu0  ;;  %v11109_v22 = vmul.f32 0.70710677, %v14447_v18  ;;  %v11045_v6 = vmul.f32 0.5, %v14447_v18 }
 0x63d   : > { %v7995_v57 = vpop.xlane.xlu1 %7994  ;;  %v11108_v62 = vmul.f32 0.70710677, %v8363_v5 }
 0x63e   : > { %v18829_v48 = vpop.f32.mrb[104].mxu1  ;;  %16020 = vrcp.f32 %v7995_v57 }
 0x63f   : > { %v18831_v36 = vpop.f32.mrb[105].mxu1 }
 0x641   : > { %v18833_v28 = vpop.f32.mrb[156].mxu0  ;;  %v7992_v11 = vpop.xlane.xlu1 %7991 }
 0x642   : > { %v18835_v0 = vpop.f32.mrb[157].mxu0  ;;  %16022 = vrcp.f32 %v7992_v11 }
 0x643   : > { %16024 = verf.f32 %v11108_v62 }
 0x645   : > { %v8001_v1 = vpop.xlane.xlu1 %8000 }
 0x646   : > { %16026 = vrcp.f32 %v8001_v1 }
 0x647   : > { %16028 = verf.f32 %v11109_v22 }
 0x648   : > { %v16021_v47 = vpop.eup %16020 }
 0x649   : > { %v7998_v63 = vpop.xlane.xlu0 %7997  ;;  %v18837_v10 = vpop.f32.mrb[106].mxu1  ;;  %v8127_v2 = vmul.f32 %v16021_v47, %v18652_v29 }
 0x64a   : > { %16030 = vrcp.f32 %v7998_v63  ;;  %v15769_v3 = vpop.permute.xlu1 %15768  ;;  %v18839_v52 = vpop.f32.mrb[107].mxu1 }
 0x64b   : > { %v15771_v55 = vunpack.i.h.bf16 %v15769_v3  ;;  %v15770_v43 = vunpack.i.l.bf16 %v15769_v3  ;;  %8191 = vst.msk [vmem:[%s18439_s15 + $0x1e8] sm:$0xff] %vm1005_vm1, %v8127_v2 }
 0x64c   : > { %v16023_v34 = vpop.eup %16022 }
 0x64d   : > { %v15342_v24 = vpack.c.bf16 %v15771_v55, %v15770_v43  ;;  %v15764_v30 = vpop.permute.xlu0 %15763  ;;  %v16025_v45 = vpop.eup %16024  ;;  %v8126_v20 = vmul.f32 %v16023_v34, %v18661_v19  ;;  %v11044_v19 = vmul.f32 0.5, %v8363_v5 }
 0x64e   : > { %v15766_v60 = vunpack.i.h.bf16 %v15764_v30  ;;  %v15765_v39 = vunpack.i.l.bf16 %v15764_v30  ;;  %v18844_v32 = vpop.f32.mrb[158].mxu0  ;;  %v11236_v8 = vadd.f32 1.0, %v16025_v45 }
 0x64f   : > { %15343 = vmatprep.subr.bf16.mxu0 %v15342_v24  ;;  %v18847_v27 = vpop.f32.mrb[159].mxu0  ;;  %8190 = vst.msk [vmem:[%s18439_s15 + $0x1e0] sm:$0xff] %vm1005_vm1, %v8126_v20  ;;  %14648 = vmatprep.mubr.msk.f32.mxu1 %vm1005_vm1, %v8126_v20 }
 0x650   : > { %v16027_v29 = vpop.eup %16026  ;;  %v15338_v46 = vpack.c.bf16 %v15766_v60, %v15765_v39  ;;  %15345 = vmatpush3.bf16.msra.mxu0 %v15342_v24  ;;  %v11300_v44 = vmul.f32 %v11236_v8, %v11044_v19 }
 0x651   : > { %v16029_v38 = vpop.eup %16028  ;;  %v8129_v9 = vmul.f32 %v16027_v29, %v18676_v35 }
 0x652   : > { %15339 = vmatprep.subr.bf16.mxu1 %v15338_v46  ;;  %v11237_v25 = vadd.f32 1.0, %v16029_v38 }
 0x653   : > { %8193 = vst.msk [vmem:[%s18439_s15 + $0x1f8] sm:$0xff] %vm1005_vm1, %v8129_v9  ;;  %15341 = vmatpush3.bf16.msra.mxu1 %v15338_v46 }
 0x654   : > { %v16031_v37 = vpop.eup %16030  ;;  %14658 = vmatprep.subr.mxu1 %v11363_v17  ;;  %v11301_v49 = vmul.f32 %v11237_v25, %v11045_v6 }
 0x655   : > { %v18858_v12 = vpop.f32.mrb[108].mxu1  ;;  %v8128_v31 = vmul.f32 %v16031_v37, %v18691_v59 }
 0x656   : > { %v18861_v35 = vpop.f32.mrb[109].mxu1  ;;  %14649 = vmatmul.mubr.msk.f32.vlgmr.msra.gmra.mrb[132].mxu1 %vm1005_vm1, %v8127_v2 }
 0x657   : > { %8192 = vst.msk [vmem:[%s18439_s15 + $0x1f0] sm:$0xff] %vm1005_vm1, %v8128_v31  ;;  %14655 = vmatprep.mubr.msk.f32.mxu0 %vm1005_vm1, %v8128_v31  ;;  %14660 = vmatprep.mubr.msk.f32.mxu1 %vm363_vm0, %v11300_v44  ;;  %s16226_s15 = scalar_lea.vmem %s16225_s13, 16384 }
 0x658   : > { %14656 = vmatmul.mubr.msk.f32.vlgmr.msra.gmra.mrb[184].mxu0 %vm1005_vm1, %v8129_v9  ;;  %14659 = vmatpush3.msra.mxu1 %v11363_v17  ;;  %p16228_p1 = scmp.lt.s32.totalorder %s16226_s15, %s16220_s11 }
 0x659   : > { %v18872_v59 = vpop.f32.mrb[160].mxu0  ;;  %14672 = vmatprep.subr.mxu1 %v11362_v50 }
 0x65a   : > { %v18874_v16 = vpop.f32.mrb[161].mxu0  ;;  %14661 = vmatmul.mubr.msk.f32.vlgmr.msra.gmra.mrb[134].mxu1 %vm363_vm0, %v11301_v49  ;;  %p16229_p2 = por %p16228_p1, %p16227_p0 }
 0x65b   : > { %14673 = vmatpush3.msra.mxu1 %v11362_v50 }
 0x65c   : > { %14686 = vmatprep.subr.mxu1 %v18880_v56  ;;  %p16230_p3 = pnand %p16229_p2, %p16223_p13 }
 0x662   : > { %v18883_v58 = vpop.f32.mrb[110].mxu1 }
 0x663   : > { %v18885_v15 = vpop.f32.mrb[111].mxu1 }
 0x666   : > { %v14503_v51 = vpop.f32.mrb[162].mxu0 }
 0x667   : > { %v11125_v40 = vmul.f32 0.70710677, %v14503_v51  ;;  %v9075_v23 = vpop.f32.mrb[163].mxu0  ;;  %v11061_v5 = vmul.f32 0.5, %v14503_v51 }
 0x668   : > { %v11124_v61 = vmul.f32 0.70710677, %v9075_v23  ;;  %v11060_v14 = vmul.f32 0.5, %v9075_v23 }
 0x669   : > { %16032 = verf.f32 %v11125_v40 }
 0x66a   : > { %16034 = verf.f32 %v11124_v61  ;;  %v18887_v4 = vpop.f32.mrb[164].mxu0 }
 0x66b   : > { %v18889_v33 = vpop.f32.mrb[165].mxu0 }
 0x66e   : > { %v18891_v21 = vpop.f32.mrb[112].mxu1 }
 0x66f   : > { %v18893_v54 = vpop.f32.mrb[113].mxu1 }
 0x673   : > { %v16033_v41 = vpop.eup %16032 }
 0x674   : > { %v16035_v13 = vpop.eup %16034  ;;  %v11253_v26 = vadd.f32 1.0, %v16033_v41 }
 0x675   : > { %v11252_v53 = vadd.f32 1.0, %v16035_v13  ;;  %v18895_v18 = vpop.f32.mrb[114].mxu1  ;;  %v11106_v13 = vmul.f32 0.70710677, %v18827_v42 }
 0x676   : > { %v18897_v57 = vpop.f32.mrb[115].mxu1  ;;  %v11317_v11 = vmul.f32 %v11253_v26, %v11061_v5 }
 0x677   : > { %v11316_v62 = vmul.f32 %v11252_v53, %v11060_v14  ;;  %v11107_v14 = vmul.f32 0.70710677, %v18825_v7 }
 0x679   : > { %14663 = vmatprep.mubr.msk.f32.mxu1 %vm363_vm0, %v11316_v62  ;;  %v11122_v62 = vmul.f32 0.70710677, %v18885_v15 }
 0x67a   : > { %14664 = vmatmul.mubr.msk.f32.gmra.mrb[136].mxu1 %vm363_vm0, %v11317_v11 }
 0x67d   : > { %v18901_v22 = vpop.f32.mrb[166].mxu0 }
 0x67e   : > { %v18903_v1 = vpop.f32.mrb[167].mxu0 }
 0x685   : > { %v18905_v63 = vpop.f32.mrb[116].mxu1 }
 0x686   : > { %v18907_v47 = vpop.f32.mrb[117].mxu1 }
 0x689   : > { %v18909_v3 = vpop.f32.mrb[168].mxu0 }
 0x68a   : > { %19682 = vst [vmem:[#allocation71_spill] sm:$0xff] %v18909_v3  ;;  %v18911_v2 = vpop.f32.mrb[169].mxu0 }
 0x68c   : > { %v18913_v55 = vpop.f32.mrb[118].mxu1 }
 0x68d   : > { %v18915_v43 = vpop.f32.mrb[119].mxu1 }
 0x695   : > { %v14559_v34 = vpop.f32.mrb[170].mxu0 }
 0x696   : > { %v11141_v24 = vmul.f32 0.70710677, %v14559_v34  ;;  %v9787_v30 = vpop.f32.mrb[171].mxu0  ;;  %v11077_v25 = vmul.f32 0.5, %v14559_v34  ;;  %v11123_v34 = vmul.f32 0.70710677, %v18883_v58 }
 0x697   : > { %v11140_v45 = vmul.f32 0.70710677, %v9787_v30  ;;  %v11076_v19 = vmul.f32 0.5, %v9787_v30  ;;  %v11139_v30 = vmul.f32 0.70710677, %v18913_v55 }
 0x698   : > { %16036 = verf.f32 %v11141_v24  ;;  %v18917_v60 = vpop.f32.mrb[120].mxu1  ;;  %v11138_v24 = vmul.f32 0.70710677, %v18915_v43 }
 0x699   : > { %16038 = verf.f32 %v11140_v45  ;;  %v18919_v39 = vpop.f32.mrb[121].mxu1 }
 0x69a   : > { %16040 = verf.f32 %v11106_v13 }
 0x69d   : > { %v18921_v20 = vpop.f32.mrb[172].mxu0 }
 0x69e   : > { %v18923_v29 = vpop.f32.mrb[173].mxu0 }
 0x6a1   : > { %v18925_v46 = vpop.f32.mrb[122].mxu1 }
 0x6a2   : > { %v16037_v38 = vpop.eup %16036  ;;  %v18927_v8 = vpop.f32.mrb[123].mxu1 }
 0x6a3   : > { %v16039_v9 = vpop.eup %16038  ;;  %v11269_v17 = vadd.f32 1.0, %v16037_v38 }
 0x6a4   : > { %v11268_v37 = vadd.f32 1.0, %v16039_v9  ;;  %v16041_v38 = vpop.eup %16040 }
 0x6a5   : > { %v11333_v31 = vmul.f32 %v11269_v17, %v11077_v25 }
 0x6a6   : > { %v11332_v44 = vmul.f32 %v11268_v37, %v11076_v19  ;;  %v11110_v37 = vmul.f32 0.70710677, %v18831_v36 }
 0x6a8   : > { %14666 = vmatprep.mubr.msk.f32.mxu1 %vm363_vm0, %v11332_v44 }
 0x6a9   : > { %v18930_v6 = vpop.f32.mrb[174].mxu0  ;;  %14667 = vmatmul.mubr.msk.f32.gmra.mrb[138].mxu1 %vm363_vm0, %v11333_v31  ;;  %v11234_v31 = vadd.f32 1.0, %v16041_v38  ;;  %v11043_v38 = vmul.f32 0.5, %v18825_v7  ;;  %v11760_v7 = vld [vmem:[%s19262_s4 + $0x18] sm:$0xff] }
 0x6aa   : > { %v18933_v50 = vpop.f32.mrb[175].mxu0 }
 0x6ac   : > { %v18935_v49 = vpop.f32.mrb[124].mxu1 }
 0x6ad   : > { %v18937_v51 = vpop.f32.mrb[125].mxu1 }
 0x6b0   : > { %v18939_v40 = vpop.f32.mrb[176].mxu0 }
 0x6b1   : > { %19683 = vst [vmem:[#allocation76_spill] sm:$0xff] %v18939_v40  ;;  %v18941_v23 = vpop.f32.mrb[177].mxu0  ;;  %v11126_v40 = vmul.f32 0.70710677, %v18893_v54 }
 0x6b2   : > { %19684 = vst [vmem:[#allocation73_spill] sm:$0xff] %v18941_v23 }
 0x6b4   : > { %v18943_v61 = vpop.f32.mrb[126].mxu1 }
 0x6b5   : > { %v18945_v41 = vpop.f32.mrb[127].mxu1  ;;  %v11155_v17 = vmul.f32 0.70710677, %v18943_v61 }
 0x6b6   : > { %v11154_v45 = vmul.f32 0.70710677, %v18945_v41 }
 0x6b9   : > { %v14615_v26 = vpop.f32.mrb[178].mxu0 }
 0x6ba   : > { %v11157_v53 = vmul.f32 0.70710677, %v14615_v26  ;;  %v10499_v5 = vpop.f32.mrb[179].mxu0 }
 0x6bb   : > { %v11156_v11 = vmul.f32 0.70710677, %v10499_v5  ;;  %v11092_v13 = vmul.f32 0.5, %v10499_v5 }
 0x6bc   : > { %16042 = verf.f32 %v11157_v53 }
 0x6bd   : > { %16044 = verf.f32 %v11156_v11  ;;  %v11042_v11 = vmul.f32 0.5, %v18827_v42  ;;  %v11058_v42 = vmul.f32 0.5, %v18885_v15  ;;  %v11074_v15 = vmul.f32 0.5, %v18915_v43 }
 0x6be   : > { %16046 = verf.f32 %v11107_v14  ;;  %v11090_v43 = vmul.f32 0.5, %v18945_v41 }
 0x6bf   : > { %16048 = verf.f32 %v11122_v62  ;;  %v11093_v62 = vmul.f32 0.5, %v14615_v26  ;;  %v11127_v26 = vmul.f32 0.70710677, %v18891_v21 }
 0x6c0   : > { %16050 = verf.f32 %v11123_v34  ;;  %v11111_v34 = vmul.f32 0.70710677, %v18829_v48 }
 0x6c1   : > { %16052 = verf.f32 %v11138_v24 }
 0x6c2   : > { %16054 = verf.f32 %v11139_v30 }
 0x6c3   : > { %16056 = verf.f32 %v11154_v45  ;;  %v11298_v45 = vmul.f32 %v11234_v31, %v11042_v11 }
 0x6c4   : > { %16058 = verf.f32 %v11155_v17 }
 0x6c5   : > { %16060 = verf.f32 %v11110_v37  ;;  %v11142_v37 = vmul.f32 0.70710677, %v18919_v39 }
 0x6c6   : > { %v16043_v9 = vpop.eup %16042  ;;  %16062 = verf.f32 %v11111_v34 }
 0x6c7   : > { %v16045_v19 = vpop.eup %16044  ;;  %v11285_v25 = vadd.f32 1.0, %v16043_v9  ;;  %16064 = verf.f32 %v11126_v40 }
 0x6c8   : > { %v16047_v44 = vpop.eup %16046  ;;  %v11284_v14 = vadd.f32 1.0, %v16045_v19  ;;  %16066 = verf.f32 %v11127_v26 }
 0x6c9   : > { %v16049_v53 = vpop.eup %16048  ;;  %v11235_v30 = vadd.f32 1.0, %v16047_v44  ;;  %v11349_v23 = vmul.f32 %v11285_v25, %v11093_v62  ;;  %16068 = verf.f32 %v11142_v37 }
 0x6ca   : > { %v11348_v24 = vmul.f32 %v11284_v14, %v11092_v13  ;;  %v16051_v3 = vpop.eup %16050  ;;  %v11250_v9 = vadd.f32 1.0, %v16049_v53  ;;  %v11059_v13 = vmul.f32 0.5, %v18883_v58  ;;  %v11075_v58 = vmul.f32 0.5, %v18913_v55 }
 0x6cb   : > { %v16053_v5 = vpop.eup %16052  ;;  %v11299_v17 = vmul.f32 %v11235_v30, %v11043_v38  ;;  %v11251_v19 = vadd.f32 1.0, %v16051_v3  ;;  %v11143_v3 = vmul.f32 0.70710677, %v18917_v60  ;;  %v11091_v38 = vmul.f32 0.5, %v18943_v61 }
 0x6cc   : > { %14669 = vmatprep.mubr.msk.f32.mxu1 %vm363_vm0, %v11348_v24  ;;  %v16055_v25 = vpop.eup %16054  ;;  %v11314_v44 = vmul.f32 %v11250_v9, %v11058_v42  ;;  %v11266_v31 = vadd.f32 1.0, %v16053_v5  ;;  %v11046_v42 = vmul.f32 0.5, %v18831_v36 }
 0x6cd   : > { %14670 = vmatmul.mubr.msk.f32.gmra.mrb[140].mxu1 %vm363_vm0, %v11349_v23  ;;  %v16057_v23 = vpop.eup %16056  ;;  %v11315_v40 = vmul.f32 %v11251_v19, %v11059_v13  ;;  %v11267_v14 = vadd.f32 1.0, %v16055_v25  ;;  %16070 = verf.f32 %v11143_v3  ;;  %v11047_v25 = vmul.f32 0.5, %v18829_v48 }
 0x6ce   : > { %14674 = vmatprep.mubr.msk.f32.mxu1 %vm363_vm0, %v11298_v45  ;;  %v16059_v53 = vpop.eup %16058  ;;  %v11330_v62 = vmul.f32 %v11266_v31, %v11074_v15  ;;  %v11282_v11 = vadd.f32 1.0, %v16057_v23  ;;  %v18990_v15 = vld [vmem:[%s19262_s4 + $0x20] sm:$0xff]  ;;  %v11063_v3 = vmul.f32 0.5, %v18891_v21  ;;  %v11078_v48 = vmul.f32 0.5, %v18919_v39 }
 0x6cf   : > { %v16061_v34 = vpop.eup %16060  ;;  %v11331_v24 = vmul.f32 %v11267_v14, %v11075_v58  ;;  %v11283_v30 = vadd.f32 1.0, %v16059_v53  ;;  %v11079_v53 = vmul.f32 0.5, %v18917_v60  ;;  %v11112_v21 = vmul.f32 0.70710677, %v18835_v0 }
 0x6d0   : > { %v11238_v45 = vadd.f32 1.0, %v16061_v34  ;;  %v11346_v9 = vmul.f32 %v11282_v11, %v11090_v43  ;;  %v11113_v11 = vmul.f32 0.70710677, %v18833_v28  ;;  %v11128_v58 = vmul.f32 0.70710677, %v18889_v33 }
 0x6d1   : > { %14675 = vmatmul.mubr.msk.f32.vlgmr.msra.gmra.mrb[134].mxu1 %vm363_vm0, %v11299_v17  ;;  %v11347_v26 = vmul.f32 %v11283_v30, %v11091_v38  ;;  %16072 = verf.f32 %v11112_v21 }
 0x6d2   : > { %14677 = vmatprep.mubr.msk.f32.mxu1 %vm363_vm0, %v11314_v44  ;;  %14687 = vmatpush3.msra.mxu1 %v18880_v56  ;;  %v16063_v56 = vpop.eup %16062  ;;  %v11302_v41 = vmul.f32 %v11238_v45, %v11046_v42  ;;  %v11062_v44 = vmul.f32 0.5, %v18893_v54 }
 0x6d3   : > { %14700 = vmatprep.subr.mxu1 %v11760_v7  ;;  %v16065_v5 = vpop.eup %16064  ;;  %v11239_v55 = vadd.f32 1.0, %v16063_v56  ;;  %v11144_v56 = vmul.f32 0.70710677, %v18923_v29 }
 0x6d4   : > { %v16067_v17 = vpop.eup %16066  ;;  %v11254_v19 = vadd.f32 1.0, %v16065_v5  ;;  %v11145_v5 = vmul.f32 0.70710677, %v18921_v20 }
 0x6d5   : > { %14678 = vmatmul.mubr.msk.f32.gmra.mrb[136].mxu1 %vm363_vm0, %v11315_v40  ;;  %v16069_v37 = vpop.eup %16068  ;;  %v11303_v61 = vmul.f32 %v11239_v55, %v11047_v25  ;;  %v11255_v31 = vadd.f32 1.0, %v16067_v17 }
 0x6d6   : > { %14680 = vmatprep.mubr.msk.f32.mxu1 %vm363_vm0, %v11330_v62  ;;  %v11318_v36 = vmul.f32 %v11254_v19, %v11062_v44  ;;  %v11270_v13 = vadd.f32 1.0, %v16069_v37  ;;  %v11114_v37 = vmul.f32 0.70710677, %v18839_v52 }
 0x6d7   : > { %v16071_v23 = vpop.eup %16070  ;;  %v11319_v54 = vmul.f32 %v11255_v31, %v11063_v3  ;;  %v11048_v3 = vmul.f32 0.5, %v18835_v0  ;;  %v11064_v0 = vmul.f32 0.5, %v18889_v33  ;;  %v11065_v33 = vmul.f32 0.5, %v18887_v4 }
 0x6d8   : > { %v11271_v40 = vadd.f32 1.0, %v16071_v23  ;;  %v11334_v14 = vmul.f32 %v11270_v13, %v11078_v48  ;;  %v11115_v48 = vmul.f32 0.70710677, %v18837_v10 }
 0x6d9   : > { %14681 = vmatmul.mubr.msk.f32.gmra.mrb[138].mxu1 %vm363_vm0, %v11331_v24  ;;  %v11129_v24 = vmul.f32 0.70710677, %v18887_v4 }
 0x6da   : > { %14683 = vmatprep.mubr.msk.f32.mxu1 %vm363_vm0, %v11346_v9  ;;  %v11335_v62 = vmul.f32 %v11271_v40, %v11079_v53 }
 0x6dd   : > { %14684 = vmatmul.mubr.msk.f32.gmra.mrb[140].mxu1 %vm363_vm0, %v11347_v26  ;;  %v16073_v26 = vpop.eup %16072 }
 0x6de   : > { %14688 = vmatprep.mubr.msk.f32.mxu1 %vm363_vm0, %v11302_v41 }
 0x6e1   : > { %14689 = vmatmul.mubr.msk.f32.vlgmr.msra.gmra.mrb[134].mxu1 %vm363_vm0, %v11303_v61  ;;  %v11240_v61 = vadd.f32 1.0, %v16073_v26 }
 0x6e2   : > { %14691 = vmatprep.mubr.msk.f32.mxu1 %vm363_vm0, %v11318_v36  ;;  %14701 = vmatpush3.msra.mxu1 %v11760_v7 }
 0x6e3   : > { %14714 = vmatprep.subr.mxu1 %v18990_v15  ;;  %v11304_v21 = vmul.f32 %v11240_v61, %v11048_v3 }
 0x6e5   : > { %14692 = vmatmul.mubr.msk.f32.gmra.mrb[136].mxu1 %vm363_vm0, %v11319_v54 }
 0x6e6   : > { %14694 = vmatprep.mubr.msk.f32.mxu1 %vm363_vm0, %v11334_v14  ;;  %v11130_v14 = vmul.f32 0.70710677, %v18897_v57 }
 0x6e9   : > { %14695 = vmatmul.mubr.msk.f32.gmra.mrb[138].mxu1 %vm363_vm0, %v11335_v62 }
 0x6ed   : > { %v14622_v39 = vpop.f32.mrb[128].mxu1 }
 0x6ee   : > { %v11159_v7 = vmul.f32 0.70710677, %v14622_v39  ;;  %v10588_v34 = vpop.f32.mrb[129].mxu1  ;;  %v11095_v13 = vmul.f32 0.5, %v14622_v39  ;;  %v11131_v39 = vmul.f32 0.70710677, %v18895_v18 }
 0x6ef   : > { %v11158_v43 = vmul.f32 0.70710677, %v10588_v34  ;;  %v11094_v31 = vmul.f32 0.5, %v10588_v34  ;;  %v11049_v34 = vmul.f32 0.5, %v18833_v28  ;;  %v19035_v28 = vld [vmem:[%s19262_s4 + $0x28] sm:$0xff] }
 0x6f0   : > { %16074 = verf.f32 %v11159_v7 }
 0x6f1   : > { %16076 = verf.f32 %v11158_v43  ;;  %v19004_v60 = vpop.f32.mrb[180].mxu0 }
 0x6f2   : > { %16078 = verf.f32 %v11113_v11  ;;  %v19007_v30 = vpop.f32.mrb[181].mxu0  ;;  %v11161_v41 = vmul.f32 0.70710677, %v19004_v60 }
 0x6f3   : > { %16080 = verf.f32 %v11128_v58  ;;  %v11160_v42 = vmul.f32 0.70710677, %v19007_v30 }
 0x6f4   : > { %v19010_v45 = vpop.f32.mrb[130].mxu1  ;;  %16082 = verf.f32 %v11129_v24  ;;  %v11146_v24 = vmul.f32 0.70710677, %v18927_v8 }
 0x6f5   : > { %v19012_v9 = vpop.f32.mrb[131].mxu1  ;;  %16084 = verf.f32 %v11144_v56 }
 0x6f6   : > { %v19015_v38 = vpop.f32.mrb[182].mxu0  ;;  %16086 = verf.f32 %v11145_v5 }
 0x6f7   : > { %v19018_v55 = vpop.f32.mrb[183].mxu0  ;;  %16088 = verf.f32 %v11160_v42 }
 0x6f8   : > { %16090 = verf.f32 %v11161_v41  ;;  %v11147_v41 = vmul.f32 0.70710677, %v18925_v46 }
 0x6f9   : > { %16092 = verf.f32 %v11114_v37 }
 0x6fa   : > { %v16075_v17 = vpop.eup %16074  ;;  %16094 = verf.f32 %v11115_v48 }
 0x6fb   : > { %v16077_v19 = vpop.eup %16076  ;;  %v11287_v25 = vadd.f32 1.0, %v16075_v17  ;;  %16096 = verf.f32 %v11130_v14  ;;  %v11080_v17 = vmul.f32 0.5, %v18923_v29  ;;  %v11096_v29 = vmul.f32 0.5, %v19007_v30 }
 0x6fc   : > { %v16079_v44 = vpop.eup %16078  ;;  %v11286_v23 = vadd.f32 1.0, %v16077_v19  ;;  %16098 = verf.f32 %v11131_v39  ;;  %v11117_v30 = vmul.f32 0.70710677, %v18844_v32 }
 0x6fd   : > { %v16081_v36 = vpop.eup %16080  ;;  %v11241_v40 = vadd.f32 1.0, %v16079_v44  ;;  %v11351_v53 = vmul.f32 %v11287_v25, %v11095_v13  ;;  %16100 = verf.f32 %v11146_v24  ;;  %v11162_v25 = vmul.f32 0.70710677, %v19012_v9 }
 0x6fe   : > { %v11350_v54 = vmul.f32 %v11286_v23, %v11094_v31  ;;  %v16083_v62 = vpop.eup %16082  ;;  %v11256_v11 = vadd.f32 1.0, %v16081_v36  ;;  %v11081_v23 = vmul.f32 0.5, %v18921_v20  ;;  %16102 = verf.f32 %v11147_v41 }
 0x6ff   : > { %v16085_v7 = vpop.eup %16084  ;;  %v11305_v58 = vmul.f32 %v11241_v40, %v11049_v34  ;;  %v11257_v43 = vadd.f32 1.0, %v16083_v62  ;;  %v11116_v36 = vmul.f32 0.70710677, %v18847_v27  ;;  %16104 = verf.f32 %v11162_v25 }
 0x700   : > { %14697 = vmatprep.mubr.msk.f32.mxu1 %vm363_vm0, %v11350_v54  ;;  %v16087_v56 = vpop.eup %16086  ;;  %v11320_v5 = vmul.f32 %v11256_v11, %v11064_v0  ;;  %v11272_v42 = vadd.f32 1.0, %v16085_v7  ;;  %v11097_v20 = vmul.f32 0.5, %v19004_v60  ;;  %v11051_v60 = vmul.f32 0.5, %v18837_v10  ;;  %v19066_v10 = vld [vmem:[%s19262_s4 + $0x30] sm:$0xff] }
 0x701   : > { %14698 = vmatmul.mubr.msk.f32.gmra.mrb[140].mxu1 %vm363_vm0, %v11351_v53  ;;  %v16089_v26 = vpop.eup %16088  ;;  %v11321_v19 = vmul.f32 %v11257_v43, %v11065_v33  ;;  %v11273_v37 = vadd.f32 1.0, %v16087_v56  ;;  %v11050_v53 = vmul.f32 0.5, %v18839_v52  ;;  %v11066_v52 = vmul.f32 0.5, %v18897_v57 }
 0x702   : > { %14702 = vmatprep.mubr.msk.f32.mxu1 %vm363_vm0, %v11304_v21  ;;  %v16091_v44 = vpop.eup %16090  ;;  %v11336_v4 = vmul.f32 %v11272_v42, %v11080_v17  ;;  %v11288_v61 = vadd.f32 1.0, %v16089_v26  ;;  %v11132_v21 = vmul.f32 0.70710677, %v18903_v1  ;;  %v11148_v56 = vmul.f32 0.70710677, %v18933_v50 }
 0x703   : > { %v16093_v31 = vpop.eup %16092  ;;  %v11337_v13 = vmul.f32 %v11273_v37, %v11081_v23  ;;  %v11289_v3 = vadd.f32 1.0, %v16091_v44  ;;  %v11067_v57 = vmul.f32 0.5, %v18895_v18  ;;  %v11082_v17 = vmul.f32 0.5, %v18927_v8 }
 0x704   : > { %v16095_v48 = vpop.eup %16094  ;;  %v11242_v54 = vadd.f32 1.0, %v16093_v31  ;;  %v11352_v40 = vmul.f32 %v11288_v61, %v11096_v29  ;;  %v11149_v41 = vmul.f32 0.70710677, %v18930_v6  ;;  %v11164_v25 = vmul.f32 0.70710677, %v19018_v55 }
 0x705   : > { %14703 = vmatmul.mubr.msk.f32.vlgmr.msra.gmra.mrb[134].mxu1 %vm363_vm0, %v11305_v58  ;;  %v16097_v14 = vpop.eup %16096  ;;  %v11243_v62 = vadd.f32 1.0, %v16095_v48  ;;  %v11353_v11 = vmul.f32 %v11289_v3, %v11097_v20  ;;  %v11133_v58 = vmul.f32 0.70710677, %v18901_v22  ;;  %v11083_v31 = vmul.f32 0.5, %v18925_v46 }
 0x706   : > { %14705 = vmatprep.mubr.msk.f32.mxu1 %vm363_vm0, %v11320_v5  ;;  %14715 = vmatpush3.msra.mxu1 %v18990_v15  ;;  %v11163_v15 = vmul.f32 0.70710677, %v19010_v45  ;;  %v16099_v7 = vpop.eup %16098  ;;  %v11306_v34 = vmul.f32 %v11242_v54, %v11050_v53  ;;  %v11258_v0 = vadd.f32 1.0, %v16097_v14  ;;  %v11098_v8 = vmul.f32 0.5, %v19012_v9 }
 0x707   : > { %14728 = vmatprep.subr.mxu1 %v19035_v28  ;;  %v16101_v39 = vpop.eup %16100  ;;  %v11307_v43 = vmul.f32 %v11243_v62, %v11051_v60  ;;  %v11259_v24 = vadd.f32 1.0, %v16099_v7  ;;  %v11118_v23 = vmul.f32 0.70710677, %v18861_v35  ;;  %v11099_v46 = vmul.f32 0.5, %v19010_v45 }
 0x708   : > { %16106 = verf.f32 %v11163_v15  ;;  %v16103_v5 = vpop.eup %16102  ;;  %v11322_v42 = vmul.f32 %v11258_v0, %v11066_v52  ;;  %v11274_v26 = vadd.f32 1.0, %v16101_v39  ;;  %v11052_v54 = vmul.f32 0.5, %v18847_v27 }
 0x709   : > { %14706 = vmatmul.mubr.msk.f32.gmra.mrb[136].mxu1 %vm363_vm0, %v11321_v19  ;;  %16108 = verf.f32 %v11116_v36  ;;  %v16105_v33 = vpop.eup %16104  ;;  %v11323_v19 = vmul.f32 %v11259_v24, %v11067_v57  ;;  %v11275_v37 = vadd.f32 1.0, %v16103_v5  ;;  %v11119_v9 = vmul.f32 0.70710677, %v18858_v12 }
 0x70a   : > { %14708 = vmatprep.mubr.msk.f32.mxu1 %vm363_vm0, %v11336_v4  ;;  %16110 = verf.f32 %v11117_v30  ;;  %v11338_v18 = vmul.f32 %v11274_v26, %v11082_v17  ;;  %v11290_v4 = vadd.f32 1.0, %v16105_v33  ;;  %v11134_v14 = vmul.f32 0.70710677, %v18907_v47 }
 0x70b   : > { %16112 = verf.f32 %v11132_v21  ;;  %v11339_v29 = vmul.f32 %v11275_v37, %v11083_v31  ;;  %v11053_v45 = vmul.f32 0.5, %v18844_v32  ;;  %v11068_v27 = vmul.f32 0.5, %v18903_v1  ;;  %v19097_v32 = vld [vmem:[%s19262_s4 + $0x38] sm:$0xff] }
 0x70c   : > { %16114 = verf.f32 %v11133_v58  ;;  %v11354_v3 = vmul.f32 %v11290_v4, %v11098_v8  ;;  %v11150_v0 = vmul.f32 0.70710677, %v18937_v51  ;;  %v11069_v1 = vmul.f32 0.5, %v18901_v22 }
 0x70d   : > { %14709 = vmatmul.mubr.msk.f32.gmra.mrb[138].mxu1 %vm363_vm0, %v11337_v13  ;;  %16116 = verf.f32 %v11148_v56  ;;  %v11151_v24 = vmul.f32 0.70710677, %v18935_v49  ;;  %v11085_v57 = vmul.f32 0.5, %v18930_v6 }
 0x70e   : > { %14711 = vmatprep.mubr.msk.f32.mxu1 %vm363_vm0, %v11352_v40  ;;  %16118 = verf.f32 %v11149_v41 }
 0x70f   : > { %16120 = verf.f32 %v11164_v25 }
 0x711   : > { %14712 = vmatmul.mubr.msk.f32.gmra.mrb[140].mxu1 %vm363_vm0, %v11353_v11  ;;  %v11135_v11 = vmul.f32 0.70710677, %v18905_v63 }
 0x712   : > { %14716 = vmatprep.mubr.msk.f32.mxu1 %vm363_vm0, %v11306_v34  ;;  %v16107_v44 = vpop.eup %16106 }
 0x713   : > { %v16109_v61 = vpop.eup %16108  ;;  %v11291_v15 = vadd.f32 1.0, %v16107_v44 }
 0x714   : > { %v16111_v36 = vpop.eup %16110  ;;  %v11244_v13 = vadd.f32 1.0, %v16109_v61 }
 0x715   : > { %14717 = vmatmul.mubr.msk.f32.vlgmr.msra.gmra.mrb[134].mxu1 %vm363_vm0, %v11307_v43  ;;  %v16113_v48 = vpop.eup %16112  ;;  %v11245_v40 = vadd.f32 1.0, %v16111_v36  ;;  %v11355_v20 = vmul.f32 %v11291_v15, %v11099_v46  ;;  %v11084_v43 = vmul.f32 0.5, %v18933_v50  ;;  %v11100_v50 = vmul.f32 0.5, %v19018_v55 }
 0x716   : > { %14719 = vmatprep.mubr.msk.f32.mxu1 %vm363_vm0, %v11322_v42  ;;  %14729 = vmatpush3.msra.mxu1 %v19035_v28  ;;  %v11165_v28 = vmul.f32 0.70710677, %v19015_v38  ;;  %v16115_v53 = vpop.eup %16114  ;;  %v11308_v30 = vmul.f32 %v11244_v13, %v11052_v54  ;;  %v11260_v62 = vadd.f32 1.0, %v16113_v48  ;;  %v11101_v55 = vmul.f32 0.5, %v19015_v38  ;;  %v19685_v54 = vld [vmem:[#allocation71_spill] sm:$0xff] }
 0x717   : > { %14742 = vmatprep.subr.mxu1 %v19066_v10  ;;  %v16117_v21 = vpop.eup %16116  ;;  %v11309_v7 = vmul.f32 %v11245_v40, %v11053_v45  ;;  %v11261_v34 = vadd.f32 1.0, %v16115_v53  ;;  %v11136_v15 = vmul.f32 0.70710677, %v18911_v2  ;;  %v11055_v38 = vmul.f32 0.5, %v18858_v12 }
 0x718   : > { %16122 = verf.f32 %v11165_v28  ;;  %v16119_v39 = vpop.eup %16118  ;;  %v11324_v60 = vmul.f32 %v11260_v62, %v11068_v27  ;;  %v11276_v52 = vadd.f32 1.0, %v16117_v21  ;;  %v11054_v28 = vmul.f32 0.5, %v18861_v35 }
 0x719   : > { %14720 = vmatmul.mubr.msk.f32.gmra.mrb[136].mxu1 %vm363_vm0, %v11323_v19  ;;  %16124 = verf.f32 %v11118_v23  ;;  %v16121_v58 = vpop.eup %16120  ;;  %v11325_v56 = vmul.f32 %v11261_v34, %v11069_v1  ;;  %v11277_v5 = vadd.f32 1.0, %v16119_v39  ;;  %v11120_v19 = vmul.f32 0.70710677, %v18874_v16 }
 0x71a   : > { %14722 = vmatprep.mubr.msk.f32.mxu1 %vm363_vm0, %v11338_v18  ;;  %16126 = verf.f32 %v11119_v9  ;;  %v11340_v26 = vmul.f32 %v11276_v52, %v11084_v43  ;;  %v11292_v33 = vadd.f32 1.0, %v16121_v58  ;;  %v11121_v23 = vmul.f32 0.70710677, %v18872_v59 }
 0x71b   : > { %16128 = verf.f32 %v11134_v14  ;;  %v11341_v37 = vmul.f32 %v11277_v5, %v11085_v57  ;;  %v11070_v35 = vmul.f32 0.5, %v18907_v47  ;;  %v11137_v9 = vmul.f32 0.70710677, %v19685_v54  ;;  %v19687_v47 = vld [vmem:[#allocation76_spill] sm:$0xff] }
 0x71c   : > { %16130 = verf.f32 %v11135_v11  ;;  %v11356_v61 = vmul.f32 %v11292_v33, %v11100_v50  ;;  %v11071_v45 = vmul.f32 0.5, %v18905_v63  ;;  %v11086_v12 = vmul.f32 0.5, %v18937_v51 }
 0x71d   : > { %14723 = vmatmul.mubr.msk.f32.gmra.mrb[138].mxu1 %vm363_vm0, %v11339_v29  ;;  %16132 = verf.f32 %v11150_v0  ;;  %v11153_v27 = vmul.f32 0.70710677, %v19687_v47  ;;  %v11087_v58 = vmul.f32 0.5, %v18935_v49  ;;  %v11056_v49 = vmul.f32 0.5, %v18874_v16 }
 0x71e   : > { %14725 = vmatprep.mubr.msk.f32.mxu1 %vm363_vm0, %v11354_v3  ;;  %16134 = verf.f32 %v11151_v24 }
 0x721   : > { %14726 = vmatmul.mubr.msk.f32.gmra.mrb[140].mxu1 %vm363_vm0, %v11355_v20  ;;  %v19686_v20 = vld [vmem:[#allocation73_spill] sm:$0xff] }
 0x722   : > { %14730 = vmatprep.mubr.msk.f32.mxu1 %vm363_vm0, %v11308_v30  ;;  %v16123_v42 = vpop.eup %16122  ;;  %v11152_v53 = vmul.f32 0.70710677, %v19686_v20 }
 0x723   : > { %v16125_v22 = vpop.eup %16124  ;;  %v11293_v25 = vadd.f32 1.0, %v16123_v42 }
 0x724   : > { %v16127_v6 = vpop.eup %16126  ;;  %v11246_v4 = vadd.f32 1.0, %v16125_v22 }
 0x725   : > { %14731 = vmatmul.mubr.msk.f32.vlgmr.msra.gmra.mrb[134].mxu1 %vm363_vm0, %v11309_v7  ;;  %v16129_v8 = vpop.eup %16128  ;;  %v11247_v29 = vadd.f32 1.0, %v16127_v6  ;;  %v11357_v36 = vmul.f32 %v11293_v25, %v11101_v55 }
 0x726   : > { %14733 = vmatprep.mubr.msk.f32.mxu1 %vm363_vm0, %v11324_v60  ;;  %14743 = vmatpush3.msra.mxu1 %v19066_v10  ;;  %v16131_v13 = vpop.eup %16130  ;;  %v11310_v3 = vmul.f32 %v11246_v4, %v11054_v28  ;;  %v11262_v48 = vadd.f32 1.0, %v16129_v8  ;;  %v11088_v8 = vmul.f32 0.5, %v19686_v20 }
 0x727   : > { %14756 = vmatprep.subr.mxu1 %v19097_v32  ;;  %v16133_v46 = vpop.eup %16132  ;;  %v11311_v40 = vmul.f32 %v11247_v29, %v11055_v38  ;;  %v11263_v14 = vadd.f32 1.0, %v16131_v13  ;;  %v11089_v29 = vmul.f32 0.5, %v19687_v47 }
 0x728   : > { %v16135_v30 = vpop.eup %16134  ;;  %v11326_v62 = vmul.f32 %v11262_v48, %v11070_v35  ;;  %v11278_v21 = vadd.f32 1.0, %v16133_v46 }
 0x729   : > { %v19107_v17 = vpop.f32.mrb[132].mxu1  ;;  %14734 = vmatmul.mubr.msk.f32.gmra.mrb[136].mxu1 %vm363_vm0, %v11325_v56  ;;  %v11327_v7 = vmul.f32 %v11263_v14, %v11071_v45  ;;  %v11279_v34 = vadd.f32 1.0, %v16135_v30 }
 0x72a   : > { %v11167_v10 = vmul.f32 0.70710677, %v19107_v17  ;;  %v10944_v41 = vpop.f32.mrb[133].mxu1  ;;  %14736 = vmatprep.mubr.msk.f32.mxu1 %vm363_vm0, %v11340_v26  ;;  %v11342_v60 = vmul.f32 %v11278_v21, %v11086_v12  ;;  %v11103_v26 = vmul.f32 0.5, %v19107_v17 }
 0x72b   : > { %v11166_v44 = vmul.f32 0.70710677, %v10944_v41  ;;  %v19114_v18 = vpop.f32.mrb[184].mxu0  ;;  %v11102_v51 = vmul.f32 0.5, %v10944_v41 }
 0x72c   : > { %v19116_v31 = vpop.f32.mrb[185].mxu0  ;;  %v11169_v1 = vmul.f32 0.70710677, %v19114_v18  ;;  %v11105_v48 = vmul.f32 0.5, %v19114_v18 }
 0x72d   : > { %16136 = verf.f32 %v11166_v44  ;;  %14737 = vmatmul.mubr.msk.f32.gmra.mrb[138].mxu1 %vm363_vm0, %v11341_v37  ;;  %v11168_v0 = vmul.f32 0.70710677, %v19116_v31  ;;  %v11072_v37 = vmul.f32 0.5, %v18911_v2 }
 0x72e   : > { %16138 = verf.f32 %v11167_v10  ;;  %14739 = vmatprep.mubr.msk.f32.mxu1 %vm363_vm0, %v11356_v61  ;;  %v11073_v61 = vmul.f32 0.5, %v19685_v54 }
 0x72f   : > { %16140 = verf.f32 %v11120_v19  ;;  %v11057_v19 = vmul.f32 0.5, %v18872_v59 }
 0x730   : > { %16142 = verf.f32 %v11121_v23 }
 0x731   : > { %14740 = vmatmul.mubr.msk.f32.gmra.mrb[140].mxu1 %vm363_vm0, %v11357_v36  ;;  %16144 = verf.f32 %v11136_v15  ;;  %v11104_v15 = vmul.f32 0.5, %v19116_v31 }
 0x732   : > { %14744 = vmatprep.mubr.msk.f32.mxu1 %vm363_vm0, %v11310_v3  ;;  %16146 = verf.f32 %v11137_v9 }
 0x733   : > { %16148 = verf.f32 %v11152_v53 }
 0x734   : > { %16150 = verf.f32 %v11153_v27 }
 0x735   : > { %14745 = vmatmul.mubr.msk.f32.vlgmr.msra.gmra.mrb[134].mxu1 %vm363_vm0, %v11311_v40  ;;  %16152 = verf.f32 %v11168_v0 }
 0x736   : > { %14747 = vmatprep.mubr.msk.f32.mxu1 %vm363_vm0, %v11326_v62  ;;  %14757 = vmatpush3.msra.mxu1 %v19097_v32  ;;  %v11343_v32 = vmul.f32 %v11279_v34, %v11087_v58  ;;  %16154 = verf.f32 %v11169_v1 }
 0x737   : > { %v16137_v11 = vpop.eup %16136 }
 0x738   : > { %v16139_v39 = vpop.eup %16138  ;;  %v11294_v63 = vadd.f32 1.0, %v16137_v11 }
 0x739   : > { %v16141_v52 = vpop.eup %16140  ;;  %14748 = vmatmul.mubr.msk.f32.gmra.mrb[136].mxu1 %vm363_vm0, %v11327_v7  ;;  %v11295_v43 = vadd.f32 1.0, %v16139_v39 }
 0x73a   : > { %14750 = vmatprep.mubr.msk.f32.mxu1 %vm363_vm0, %v11342_v60  ;;  %v16143_v24 = vpop.eup %16142  ;;  %v11248_v56 = vadd.f32 1.0, %v16141_v52  ;;  %v11358_v5 = vmul.f32 %v11294_v63, %v11102_v51 }
 0x73b   : > { %v16145_v42 = vpop.eup %16144  ;;  %v11249_v33 = vadd.f32 1.0, %v16143_v24  ;;  %v11359_v22 = vmul.f32 %v11295_v43, %v11103_v26 }
 0x73c   : > { %v16147_v57 = vpop.eup %16146  ;;  %v11312_v50 = vmul.f32 %v11248_v56, %v11056_v49  ;;  %v11264_v10 = vadd.f32 1.0, %v16145_v42 }
 0x73d   : > { %14751 = vmatmul.mubr.msk.f32.gmra.mrb[138].mxu1 %vm363_vm0, %v11343_v32  ;;  %v16149_v41 = vpop.eup %16148  ;;  %v11313_v17 = vmul.f32 %v11249_v33, %v11057_v19  ;;  %v11265_v25 = vadd.f32 1.0, %v16147_v57 }
 0x73e   : > { %14753 = vmatprep.mubr.msk.f32.mxu1 %vm363_vm0, %v11358_v5  ;;  %v16151_v16 = vpop.eup %16150  ;;  %v11328_v44 = vmul.f32 %v11264_v10, %v11072_v37  ;;  %v11280_v6 = vadd.f32 1.0, %v16149_v41 }
 0x73f   : > { %v16153_v4 = vpop.eup %16152  ;;  %v11329_v59 = vmul.f32 %v11265_v25, %v11073_v61  ;;  %v11281_v55 = vadd.f32 1.0, %v16151_v16 }
 0x740   : > { %v16155_v2 = vpop.eup %16154  ;;  %v11344_v28 = vmul.f32 %v11280_v6, %v11088_v8  ;;  %v11296_v23 = vadd.f32 1.0, %v16153_v4 }
 0x741   : > { %14754 = vmatmul.mubr.msk.f32.gmra.mrb[140].mxu1 %vm363_vm0, %v11359_v22  ;;  %v11345_v36 = vmul.f32 %v11281_v55, %v11089_v29  ;;  %v11297_v13 = vadd.f32 1.0, %v16155_v2 }
 0x742   : > { %14758 = vmatprep.mubr.msk.f32.mxu1 %vm363_vm0, %v11312_v50  ;;  %v11360_v3 = vmul.f32 %v11296_v23, %v11104_v15 }
 0x743   : > { %v11361_v46 = vmul.f32 %v11297_v13, %v11105_v48 }
 0x745   : > { %14759 = vmatmul.mubr.msk.f32.vlgmr.msra.gmra.mrb[134].mxu1 %vm363_vm0, %v11313_v17 }
 0x746   : > { %14761 = vmatprep.mubr.msk.f32.mxu1 %vm363_vm0, %v11328_v44 }
 0x749   : > { %14762 = vmatmul.mubr.msk.f32.gmra.mrb[136].mxu1 %vm363_vm0, %v11329_v59 }
 0x74a   : > { %14764 = vmatprep.mubr.msk.f32.mxu1 %vm363_vm0, %v11344_v28 }
 0x74d   : > { %14765 = vmatmul.mubr.msk.f32.gmra.mrb[138].mxu1 %vm363_vm0, %v11345_v36 }
 0x74e   : > { %14767 = vmatprep.mubr.msk.f32.mxu1 %vm363_vm0, %v11360_v3 }
 0x751   : > { %14768 = vmatmul.mubr.msk.f32.gmra.mrb[140].mxu1 %vm363_vm0, %v11361_v46 }
 0x752   : > { %16233 = shalt.err (!%p16230_p3)
}
 0x753   : > { %s16234_s14 = scalar_lea.hbm %s19166_s9, 8192  ;;  %s16238_s17 = scalar_lea.hbm %s19264_s6, 16384 }
 0x754   : > { %p16235_p4 = scmp.ne.s32.totalorder %s19166_s9, %s16234_s14  ;;  %p16239_p9 = scmp.lt.u32.totalorder %s19166_s9, %s19264_s6 }
 0x755   : > { %p16240_p10 = scmp.lt.u32.totalorder %s16238_s17, %s16234_s14  ;;  %p16242_p12 = scmp.lt.u32.totalorder %s16234_s14, %s19166_s9 }
 0x756   : > { %p16236_p7 = pnand %p16235_p4, %p16395_p5 }
 0x757   : > { %p16241_p11 = por %p16240_p10, %p16239_p9 }
 0x758   : > { %p16237_p8 = pneg %p16236_p7 }
 0x759   : > { %p16243_p13 = por %p16242_p12, %p16241_p11 }
 0x75b   : > { %p16244_p0 = pnand %p16243_p13, %p16237_p8 }
 0x75d   : > { %16247 = shalt.err (!%p16244_p0)
}
 0x75e   : > { %s16319_s29 = smov 128   ;;  %s16320_s11 = smov 8   ;;  %vm12450_vm0 = vcmask 523264  }
 0x75f   : > { %15405 = dma.vmem_to_hbm [thread:$0]  (%p16395_p5), %s19168_s20, 8192, %s19166_s9, %s12465_s10, %s16319_s29, %s16319_s29, %s16320_s11  }
 0x760   : > { %s12606_s12 = sshll.u32 %s18429_s18, 6  ;;  %s13012_s20 = sshll.u32 %s16378_s25, 10 }
 0x761   : > { %s269_s13 = scalar_lea.vmem [#allocation2], %s12606_s12  ;;  %s19208_s14 = scalar_lea.hbm %s19263_s5, %s13012_s20 }
 0x762   : > { %s12479_s9 = sshll.u32 %s269_s13, 4  ;;  %s12460_s25 = scalar_lea.sflag [#allocation3], %s18429_s18  ;;  %s19210_s9 = int_to_ptr.vmem [resolvable:$true] %s12479_s9 }
 0x763   : > { %s16248_s28 = scalar_lea.vmem %s19210_s9, 1024  ;;  %s16321_s16 = smov [#allocation2]  }
 0x764   : > { %p16249_p1 = scmp.ne.s32.totalorder %s19210_s9, %s16248_s28  ;;  %s16252_s17 = sshll.u32 %s16321_s16, 4  ;;  %s16253_s17 = int_to_ptr.vmem [resolvable:$false] %s16252_s17 }
 0x765   : > { %s16254_s19 = scalar_lea.vmem %s16253_s17, 2048  ;;  %p16255_p4 = scmp.lt.s32.totalorder %s19210_s9, %s16253_s17 }
 0x766   : > { %p16250_p2 = pnand %p16249_p1, %p16395_p5  ;;  %p16256_p7 = scmp.lt.s32.totalorder %s16254_s19, %s16248_s28 }
 0x768   : > { %p16251_p3 = pneg %p16250_p2  ;;  %p16257_p8 = por %p16256_p7, %p16255_p4 }
 0x76a   : > { %p16258_p9 = pnand %p16257_p8, %p16251_p3 }
 0x818   : > { %v14760_v18 = vpop.f32.mrb[134].mxu1 }
 0x819   : > { %12452 = vst.msk [vmem:[%s269_s13 + $0x8] sm:$0xff] %vm12450_vm0, %v14760_v18  ;;  %v12403_v31 = vpop.f32.mrb[135].mxu1 }
 0x81a   : > { %12451 = vst.msk [vmem:[%s269_s13] sm:$0xff] %vm12450_vm0, %v12403_v31 }
 0x81c   : > { %v14763_v38 = vpop.f32.mrb[136].mxu1 }
 0x81d   : > { %12454 = vst.msk [vmem:[%s269_s13 + $0x18] sm:$0xff] %vm12450_vm0, %v14763_v38  ;;  %v12413_v35 = vpop.f32.mrb[137].mxu1 }
 0x81e   : > { %12453 = vst.msk [vmem:[%s269_s13 + $0x10] sm:$0xff] %vm12450_vm0, %v12413_v35 }
 0x820   : > { %v14766_v54 = vpop.f32.mrb[138].mxu1 }
 0x821   : > { %12456 = vst.msk [vmem:[%s269_s13 + $0x28] sm:$0xff] %vm12450_vm0, %v14766_v54  ;;  %v12423_v9 = vpop.f32.mrb[139].mxu1 }
 0x822   : > { %12455 = vst.msk [vmem:[%s269_s13 + $0x20] sm:$0xff] %vm12450_vm0, %v12423_v9 }
 0x824   : > { %v14769_v40 = vpop.f32.mrb[140].mxu1 }
 0x825   : > { %12458 = vst.msk [vmem:[%s269_s13 + $0x38] sm:$0xff] %vm12450_vm0, %v14769_v40  ;;  %v12433_v14 = vpop.f32.mrb[141].mxu1 }
 0x826   : > { %12457 = vst.msk [vmem:[%s269_s13 + $0x30] sm:$0xff] %vm12450_vm0, %v12433_v14 }
 0x827   : > { %16261 = shalt.err (!%p16258_p9)
}
 0x828   : > { %s16262_s26 = scalar_lea.hbm %s19208_s14, 1024  ;;  %s16266_s20 = scalar_lea.hbm %s19263_s5, 2048 }
 0x829   : > { %p16263_p10 = scmp.ne.s32.totalorder %s19208_s14, %s16262_s26  ;;  %p16267_p13 = scmp.lt.u32.totalorder %s19208_s14, %s19263_s5 }
 0x82a   : > { %p16268_p0 = scmp.lt.u32.totalorder %s16266_s20, %s16262_s26  ;;  %p16270_p2 = scmp.lt.u32.totalorder %s16262_s26, %s19208_s14 }
 0x82b   : > { %p16264_p11 = pnand %p16263_p10, %p16395_p5 }
 0x82c   : > { %p16269_p1 = por %p16268_p0, %p16267_p13 }
 0x82d   : > { %p16265_p12 = pneg %p16264_p11 }
 0x82e   : > { %p16271_p3 = por %p16270_p2, %p16269_p1 }
 0x830   : > { %p16272_p4 = pnand %p16271_p3, %p16265_p12 }
 0x832   : > { %16275 = shalt.err (!%p16272_p4)
}
 0x833   : > { %15404 = dma.vmem_to_hbm [thread:$0]  (%p16395_p5), %s19210_s9, 1024, %s19208_s14, %s12460_s25, %s16319_s29, %s16319_s29, %s16320_s11  }
 0x834 PF: > { %p15415_p7 = scmp.ge.s32.totalorder %s16314_s24, 2  ;;  %s12511_s28 = sand.u32 1, %s16302_s21  }
 0x835   : > { %s12512_s16 = scalar_lea.sflag [#allocation3], %s12511_s28 }
 0x836   : > { %p15409_p8 = pnand %p15415_p7, %p16399_p6 }
 0x838   : > { %16293 = dma.done.wait (!%p15409_p8), %s12512_s16, 1024  }
 0x839   : > { %16295 = vsyncadd (!%p15409_p8), %s12512_s16, 4294966272  ;;  %s12521_s7 = scalar_lea.sflag [#allocation5], %s12511_s28 }
 0x83a   : > { %16297 = dma.done.wait (!%p15409_p8), %s12521_s7, 8192  }
 0x83b   : > { %16299 = vsyncadd (!%p15409_p8), %s12521_s7, 4294959104  ;;  %p20_p5 = scmp.ge.s32.totalorder %s16382_s27, 4   ;;  %s19688_s21 = smov %s16306_s22 }
 0x83c   : > { %s19689_s22 = smov %s16310_s23  ;;  %s19690_s23 = smov %s16393_s30 }
 0x83d   : > { %s19691_s24 = smov %s16382_s27  ;;  %22 = sbr.rel (!%p20_p5) target bundleno = 5 (0x5), region = 95 }
 0x844   :  { %12526 = vsyncpa [#allocation3], 1 }
 0x845   :  { %12528 = vsyncpa [#allocation3 + $0x1], 1 }
 0x846   :  { %12529 = vsyncpa [#allocation5], 1 }
 0x847   :  { %12531 = vsyncpa [#allocation5 + $0x1], 1 }

</bundles_post_ra>
